<compile_context>
chip_gen: v7x
topology: tpu7x:2x2x1
jax: 0.10.0
libtpu: 0.0.40
codegen_flags: <defaults>
</compile_context>

<pallas_src>
import functools
import math

import jax
import jax.numpy as jnp
from jax.experimental import pallas as pl
from jax.experimental.pallas import tpu as pltpu

SIGMA = 0.1
EPS = 1e-10          # torch MutualInformation epsilon (pdf normalization)
RANGE_EPS = 1e-12    # guards vmax == vmin (ReLU-dead channel)
TAU = 0.1
ZIP = 2              # zip_num
BINS = 32            # bin_num
CIN = 128            # feature channels
_SENTINEL = 1e9      # masked samples -> exp underflows to exact 0
_INV = 1.0 / (math.sqrt(2.0) * SIGMA)   # folds the 0.5 and sigma into the affine


def _round_up(x, m):
    return (x + m - 1) // m * m


def _cdiv(a, b):
    return (a + b - 1) // b


def _lcm(a, b):
    return a * b // math.gcd(a, b)


def _vmem_caps():
    try:
        cap = int(pltpu.get_tpu_info().vmem_capacity_bytes)
    except Exception:  # pragma: no cover - conservative fallback (v7x-sized)
        cap = 64 * 1024 * 1024
    limit = int(min(0.9 * cap, 100 * 1024 * 1024))
    target = max(2 * 1024 * 1024, min(8 * 1024 * 1024, cap // 10))
    return limit, target


_VMEM_LIMIT, _TARGET_BLOCK_BYTES = _vmem_caps()


def _cparams(*sems):
    return pltpu.CompilerParams(dimension_semantics=sems,
                                vmem_limit_bytes=_VMEM_LIMIT)


# ----------------------------------------------------------------------------
# Conv pass A: per-pixel tap projection  t = W_all @ x  on the RAW (C, H*W)
# slab (no HBM pad of the 128-channel image).  Output goes straight into a
# [zero block | data blocks | zero block] slab so pass B's halos see zeros at
# the image top/bottom.  Grid steps 0 and nb+1 only write the zero blocks.
# ----------------------------------------------------------------------------
def _tap_project_kernel(x_ref, w_ref, o_ref, *, nb, sb, s_valid):
    j = pl.program_id(0)

    @pl.when((j == 0) | (j == nb + 1))
    def _():
        o_ref[...] = jnp.zeros_like(o_ref)

    @pl.when((j > 0) & (j < nb))
    def _():
        o_ref[...] = jnp.dot(w_ref[...], x_ref[...],
                             preferred_element_type=jnp.float32)

    @pl.when(j == nb)  # last (possibly partial) data block: zero the tail
    def _():
        t = jnp.dot(w_ref[...], x_ref[...], preferred_element_type=jnp.float32)
        col = jax.lax.broadcasted_iota(jnp.int32, t.shape, 1) + (nb - 1) * sb
        o_ref[...] = jnp.where(col < s_valid, t, 0.0)


# ----------------------------------------------------------------------------
# Conv pass B: combine the 9 tap responses with static shifted adds.  Each
# block reads its own sb columns plus a small (18, sbh) halo on each side (all
# slices provably in bounds), applies the two precomputed column-boundary
# masks (left/right image edge), adds the bias and applies ReLU.
# ----------------------------------------------------------------------------
def _tap_combine_kernel(l_ref, m_ref, r_ref, b_ref, mask_ref, o_ref,
                        *, w, sbh, sb):
    buf = jnp.concatenate([l_ref[...], m_ref[...], r_ref[...]], axis=1)
    acc = jnp.zeros((ZIP, sb), jnp.float32)
    for kh in range(3):
        for kw in range(3):
            t = kh * 3 + kw
            off = sbh + (kh - 1) * w + (kw - 1)        # >= 0, off + sb <= buf width
            v = buf[t * ZIP:(t + 1) * ZIP, off:off + sb]
            if kw == 0:
                v = v * mask_ref[0:1, :]               # image column 0
            elif kw == 2:
                v = v * mask_ref[1:2, :]               # image column W-1
            acc = acc + v
    o_ref[...] = jnp.maximum(acc + b_ref[...], 0.0)


def conv_zip(img_chw, w_all, b_fold):
    """3x3 conv (BN folded) + ReLU, channel-major.

    img_chw: (CIN, H, W) -> (zip_pad, sb) where zip_pad is (ZIP, nb*sb) and
    only the first H*W columns are valid.
    """
    c, h, w = img_chw.shape
    s = h * w
    x = img_chw.reshape(c, s)                      # free view: no pad, no copy

    sbh = _round_up(w + 1, 128)                    # halo width (lane aligned)
    base = _lcm(_lcm(w, 128), sbh)                 # block multiple: rows + lanes
    tgt_cols = max(base, (_TARGET_BLOCK_BYTES // (c * 4) // base) * base)
    sb = min(tgt_cols, _round_up(s, base))
    nb = _cdiv(s, sb)
    k = sb // sbh

    t_pad = pl.pallas_call(
        functools.partial(_tap_project_kernel, nb=nb, sb=sb, s_valid=s),
        out_shape=jax.ShapeDtypeStruct((9 * ZIP, (nb + 2) * sb), jnp.float32),
        grid=(nb + 2,),
        in_specs=[
            pl.BlockSpec((c, sb),
                         lambda j: (0, jnp.minimum(jnp.maximum(j - 1, 0), nb - 1))),
            pl.BlockSpec((9 * ZIP, c), lambda j: (0, 0)),
        ],
        out_specs=pl.BlockSpec((9 * ZIP, sb), lambda j: (0, j)),
        compiler_params=_cparams("parallel"),
    )(x, w_all)

    # Column-boundary masks; sb % w == 0 so the per-block pattern is constant.
    col = jnp.arange(sb, dtype=jnp.int32) % w
    masks = jnp.stack([(col != 0), (col != w - 1)]).astype(jnp.float32)

    zip_pad = pl.pallas_call(
        functools.partial(_tap_combine_kernel, w=w, sbh=sbh, sb=sb),
        out_shape=jax.ShapeDtypeStruct((ZIP, nb * sb), jnp.float32),
        grid=(nb,),
        in_specs=[
            pl.BlockSpec((9 * ZIP, sbh), lambda i: (0, (i + 1) * k - 1)),  # left halo
            pl.BlockSpec((9 * ZIP, sb), lambda i: (0, i + 1)),             # main
            pl.BlockSpec((9 * ZIP, sbh), lambda i: (0, (i + 2) * k)),      # right halo
            pl.BlockSpec((ZIP, 1), lambda i: (0, 0)),
            pl.BlockSpec((2, sb), lambda i: (0, 0)),
        ],
        out_specs=pl.BlockSpec((ZIP, sb), lambda i: (0, i)),
        compiler_params=_cparams("parallel"),
    )(t_pad, t_pad, t_pad, b_fold.reshape(ZIP, 1), masks)
    return zip_pad, sb


# ----------------------------------------------------------------------------
# Point cloud: Linear(128 -> zip) + ReLU, emitted lane-dense as (ZIP, N).
# ----------------------------------------------------------------------------
def _linear_relu_cm_kernel(x_ref, w_ref, b_ref, o_ref):
    y = jax.lax.dot_general(w_ref[...], x_ref[...], (((0,), (1,)), ((), ())),
                            preferred_element_type=jnp.float32)
    o_ref[...] = jnp.maximum(y + b_ref[...], 0.0)


def linear_relu_cm(x, w, b):
    """x: (N, CIN) sample-major -> (ZIP, N) channel-major (lane-dense)."""
    n, din = x.shape
    dout = w.shape[1]
    blk = n if n * din * 4 <= 24 * 1024 * 1024 else 4096
    return pl.pallas_call(
        _linear_relu_cm_kernel,
        out_shape=jax.ShapeDtypeStruct((dout, n), jnp.float32),
        grid=(_cdiv(n, blk),),
        in_specs=[pl.BlockSpec((blk, din), lambda i: (i, 0)),
                  pl.BlockSpec((din, dout), lambda i: (0, 0)),
                  pl.BlockSpec((dout, 1), lambda i: (0, 0))],
        out_specs=pl.BlockSpec((dout, blk), lambda i: (0, i)),
        compiler_params=_cparams("parallel"),
    )(x, w, b.reshape(dout, 1))


# ----------------------------------------------------------------------------
# KDE marginal pdf.  Lean inner loop: sub, square, negate, exp (0.5 and sigma
# folded into the wrapper affine); invalid / padded samples are replaced by a
# large sentinel so exp underflows to exactly 0 (no per-element mask multiply
# on the (BINS, sb) tensor).  Leading size-2 "parallel" grid axis splits the
# sample range across the two v7x TensorCores; partial sums reduced outside.
# ----------------------------------------------------------------------------
def _kde_kernel(v_ref, sc_ref, off_ref, bins_ref, o_ref,
                *, s_total, kb, n_inner):
    c = pl.program_id(0)
    i = pl.program_id(1)

    @pl.when(i == 0)
    def _():
        o_ref[...] = jnp.zeros_like(o_ref)

    start = (c * n_inner + i) * kb
    lane = jax.lax.broadcasted_iota(jnp.int32, (1, kb), 1) + start
    u = v_ref[...] * sc_ref[...] + off_ref[...]              # (ZIP, kb)
    u = jnp.where(lane < s_total, u, _SENTINEL)
    bins = bins_ref[...]                                      # (BINS, 1)
    parts = []
    for ch in range(ZIP):
        r = u[ch:ch + 1, :] - bins                            # (BINS, kb)
        parts.append(jnp.sum(jnp.exp(-(r * r)), axis=1, keepdims=True))
    o_ref[...] += jnp.concatenate(parts, axis=1)              # (BINS, ZIP)


def _kde_block_size(width, target=16384):
    """Largest 128-multiple that exactly divides width (falls back to width)."""
    if width % 128 != 0:
        return width
    m = width // 128
    best = 1
    for d in range(1, min(m, max(1, target // 128)) + 1):
        if m % d == 0:
            best = d
    return 128 * best


def kde_marginal(vals_cm, s_total, bins):
    """vals_cm: (ZIP, width) lane-dense zip features (columns >= s_total are
    ignored) -> (ZIP, BINS) marginal pdf."""
    width = vals_cm.shape[1]
    v = vals_cm[:, :s_total]                         # lazy slice, fuses into reduce
    vmin = jnp.min(v, axis=1, keepdims=True)
    vmax = jnp.max(v, axis=1, keepdims=True)
    scale = _INV / (vmax - vmin + RANGE_EPS)
    offset = -vmin * scale
    bins_k = (bins * _INV).reshape(BINS, 1)

    kb = _kde_block_size(width)
    nblk = _cdiv(width, kb)
    n_inner = _cdiv(nblk, 2)

    parts = pl.pallas_call(
        functools.partial(_kde_kernel, s_total=s_total, kb=kb, n_inner=n_inner),
        out_shape=jax.ShapeDtypeStruct((2, BINS, ZIP), jnp.float32),
        grid=(2, n_inner),
        in_specs=[
            pl.BlockSpec((ZIP, kb),
                         lambda c, i: (0, jnp.minimum(c * n_inner + i, nblk - 1))),
            pl.BlockSpec((ZIP, 1), lambda c, i: (0, 0)),
            pl.BlockSpec((ZIP, 1), lambda c, i: (0, 0)),
            pl.BlockSpec((BINS, 1), lambda c, i: (0, 0)),
        ],
        out_specs=pl.BlockSpec((None, BINS, ZIP), lambda c, i: (c, 0, 0)),
        compiler_params=_cparams("parallel", "arbitrary"),
    )(vals_cm, scale, offset, bins_k)

    acc = parts[0] + parts[1]                        # (BINS, ZIP) partial sums
    pdf = acc / s_total                              # mean over samples
    pdf = pdf / (jnp.sum(pdf, axis=0, keepdims=True) + EPS)
    return pdf.T                                     # (ZIP, BINS)


# ----------------------------------------------------------------------------
# Fused (mix-folded) up Linear + ReLU + tau blend.
#   image: channel-major  out = relu(Wf @ z + b) * tau + base * (1 - tau)
#   pcd:   sample-major   out = relu(z^T @ Wf + b) * tau + base * (1 - tau)
# ----------------------------------------------------------------------------
def _fuse_img_kernel(z_ref, w_ref, b_ref, base_ref, o_ref):
    y = jnp.dot(w_ref[...], z_ref[...],
                preferred_element_type=jnp.float32) + b_ref[...]
    o_ref[...] = jnp.maximum(y, 0.0) * TAU + base_ref[...] * (1.0 - TAU)


def fuse_up_blend_img(z_pad, w_eff, b, base_cm, sb):
    c, s = base_cm.shape
    return pl.pallas_call(
        _fuse_img_kernel,
        out_shape=jax.ShapeDtypeStruct((c, s), jnp.float32),
        grid=(_cdiv(s, sb),),
        in_specs=[pl.BlockSpec((ZIP, sb), lambda i: (0, i)),
                  pl.BlockSpec((c, ZIP), lambda i: (0, 0)),
                  pl.BlockSpec((c, 1), lambda i: (0, 0)),
                  pl.BlockSpec((c, sb), lambda i: (0, i))],
        out_specs=pl.BlockSpec((c, sb), lambda i: (0, i)),
        compiler_params=_cparams("parallel"),
    )(z_pad, w_eff, b.reshape(c, 1), base_cm)


def _fuse_pcd_kernel(z_ref, w_ref, b_ref, base_ref, o_ref):
    y = jax.lax.dot_general(z_ref[...], w_ref[...], (((0,), (0,)), ((), ())),
                            preferred_element_type=jnp.float32) + b_ref[...]
    o_ref[...] = jnp.maximum(y, 0.0) * TAU + base_ref[...] * (1.0 - TAU)


def fuse_up_blend_pcd(z_cm, w_eff, b, base):
    n, c = base.shape
    blk = n if n * c * 4 <= 24 * 1024 * 1024 else 4096
    return pl.pallas_call(
        _fuse_pcd_kernel,
        out_shape=jax.ShapeDtypeStruct((n, c), jnp.float32),
        grid=(_cdiv(n, blk),),
        in_specs=[pl.BlockSpec((ZIP, blk), lambda i: (0, i)),
                  pl.BlockSpec((ZIP, c), lambda i: (0, 0)),
                  pl.BlockSpec((1, c), lambda i: (0, 0)),
                  pl.BlockSpec((blk, c), lambda i: (i, 0))],
        out_specs=pl.BlockSpec((blk, c), lambda i: (i, 0)),
        compiler_params=_cparams("parallel"),
    )(z_cm, w_eff, b.reshape(1, c), base)


# ----------------------------------------------------------------------------
# Full forward pass (glue in plain JAX, heavy ops in the kernels above).
# ----------------------------------------------------------------------------
def kde_diff_forward(params, img_feats_nchw, pcd_feats):
    _, C, H, W = img_feats_nchw.shape
    S = H * W
    N = pcd_feats.shape[0]
    img_cm = img_feats_nchw[0].reshape(C, S)            # channel-major view (free)

    # Fold inference-mode BatchNorm into the conv (parameter glue).
    inv = params["bn_gamma"] / jnp.sqrt(params["bn_var"] + 1e-5)
    w_fold = params["conv_w"] * inv[None, None, None, :]        # (3,3,CIN,ZIP)
    b_fold = (params["conv_b"] - params["bn_mean"]) * inv + params["bn_beta"]
    w_all = jnp.transpose(w_fold, (0, 1, 3, 2)).reshape(9 * ZIP, CIN)

    img_zip_pad, sb_img = conv_zip(img_feats_nchw[0], w_all, b_fold)  # (ZIP, >=S)
    pcd_zip_cm = linear_relu_cm(pcd_feats, params["lin3d_w"],
                                params["lin3d_b"])                    # (ZIP, N)

    bins = params["bins"]
    kde_img = kde_marginal(img_zip_pad, S, bins)         # (ZIP, BINS)
    kde_pcd = kde_marginal(pcd_zip_cm, N, bins)          # (ZIP, BINS)

    def l2norm_rows(a):                                  # F.normalize(dim=1)
        nrm = jnp.sqrt(jnp.sum(a * a, axis=1, keepdims=True))
        return a / jnp.maximum(nrm, 1e-12)

    Axx = l2norm_rows(kde_img @ kde_img.T)
    Ayy = l2norm_rows(kde_pcd @ kde_pcd.T)
    Axy = l2norm_rows(kde_img @ kde_pcd.T)

    # Fold the 2x2 mix matrices into the up-projection weights.
    w_eff_img = params["up2d_w"].T @ (Axx + Axy)         # (CIN, ZIP) channel-major
    w_eff_pcd = (Ayy + Axy).T @ params["up3d_w"]         # (ZIP, CIN) sample-major

    img_out_cm = fuse_up_blend_img(img_zip_pad, w_eff_img, params["up2d_b"],
                                   img_cm, sb_img)
    pcd_out = fuse_up_blend_pcd(pcd_zip_cm, w_eff_pcd, params["up3d_b"], pcd_feats)

    return img_out_cm.reshape(1, C, H, W), pcd_out


def init_params(key):
    ks = jax.random.split(key, 4)
    return {
        "conv_w": jax.random.normal(ks[0], (3, 3, CIN, ZIP), jnp.float32) * 0.05,
        "conv_b": jnp.zeros((ZIP,), jnp.float32),
        "bn_gamma": jnp.ones((ZIP,), jnp.float32),
        "bn_beta": jnp.zeros((ZIP,), jnp.float32),
        "bn_mean": jnp.zeros((ZIP,), jnp.float32),
        "bn_var": jnp.ones((ZIP,), jnp.float32),
        "lin3d_w": jax.random.normal(ks[1], (CIN, ZIP), jnp.float32) * 0.05,
        "lin3d_b": jnp.zeros((ZIP,), jnp.float32),
        "up2d_w": jax.random.normal(ks[2], (ZIP, CIN), jnp.float32) * 0.1,
        "up2d_b": jnp.zeros((CIN,), jnp.float32),
        "up3d_w": jax.random.normal(ks[3], (ZIP, CIN), jnp.float32) * 0.1,
        "up3d_b": jnp.zeros((CIN,), jnp.float32),
        "bins": jnp.linspace(0.0, 1.0, BINS).astype(jnp.float32),
    }


if __name__ == "__main__":
    key = jax.random.PRNGKey(0)
    kp, ki, kc = jax.random.split(key, 3)
    params = init_params(kp)

    H, W, N = 16, 16, 200
    img_feats_f = jax.random.normal(ki, (1, CIN, H, W), jnp.float32)
    pcd_feats_f = jax.random.normal(kc, (N, CIN), jnp.float32)

    fwd = jax.jit(functools.partial(kde_diff_forward, params))
    img_out, pcd_out = fwd(img_feats_f, pcd_feats_f)
    jax.block_until_ready((img_out, pcd_out))

    assert img_out.shape == (1, CIN, H, W)
    assert pcd_out.shape == (N, CIN)
    assert bool(jnp.all(jnp.isfinite(img_out))) and bool(jnp.all(jnp.isfinite(pcd_out)))
    print("KERNEL_OK")
</pallas_src>

<mosaic_0001>
module attributes {stable_mosaic.version = 11 : i64} {
  func.func @_linear_relu_cm_kernel(%arg0: i32, %arg1: memref<200x128xf32, #tpu.memory_space<vmem>>, %arg2: memref<128x2xf32, #tpu.memory_space<vmem>>, %arg3: memref<2x1xf32, #tpu.memory_space<vmem>>, %arg4: memref<2x200xf32, #tpu.memory_space<vmem>>) attributes {dimension_semantics = [#tpu.dimension_semantics<parallel>], iteration_bounds = array<i64: 1>, scalar_prefetch = 0 : i64, scratch_operands = 0 : i64, tpu.core_type = #tpu.core_type<tc>, window_params = [{transform_indices = @transform_0, window_bounds = array<i64: 200, 128>}, {pipeline_mode = #tpu.pipeline_mode<synchronous>, transform_indices = @transform_1, window_bounds = array<i64: 128, 2>}, {pipeline_mode = #tpu.pipeline_mode<synchronous>, transform_indices = @transform_2, window_bounds = array<i64: 2, 1>}, {transform_indices = @transform_3, window_bounds = array<i64: 2, 200>}]} {
    %c0 = arith.constant 0 : index
    %c0_0 = arith.constant 0 : index
    %0 = vector.load %arg2[%c0, %c0_0] : memref<128x2xf32, #tpu.memory_space<vmem>>, vector<128x2xf32>
    %c0_1 = arith.constant 0 : index
    %c0_2 = arith.constant 0 : index
    %1 = vector.load %arg1[%c0_1, %c0_2] : memref<200x128xf32, #tpu.memory_space<vmem>>, vector<200x128xf32>
    %cst = arith.constant dense<0.000000e+00> : vector<2x200xf32>
    %2 = tpu.matmul %0, %1, %cst {dimension_numbers = #tpu.dot_dimension_numbers<[0], [1], [1], [0], [0, 1, 1, 0], [], []>} : vector<128x2xf32>, vector<200x128xf32>, vector<2x200xf32> -> vector<2x200xf32>
    %c0_3 = arith.constant 0 : index
    %c0_4 = arith.constant 0 : index
    %3 = vector.load %arg3[%c0_3, %c0_4] : memref<2x1xf32, #tpu.memory_space<vmem>>, vector<2x1xf32>
    %4 = vector.broadcast %3 : vector<2x1xf32> to vector<2x200xf32>
    %5 = arith.addf %2, %4 : vector<2x200xf32>
    %cst_5 = arith.constant 0.000000e+00 : f32
    %6 = vector.broadcast %cst_5 : f32 to vector<2x200xf32>
    %7 = arith.maximumf %5, %6 : vector<2x200xf32>
    %c0_6 = arith.constant 0 : index
    %c0_7 = arith.constant 0 : index
    %8 = vector.load %arg4[%c0_6, %c0_7] : memref<2x200xf32, #tpu.memory_space<vmem>>, vector<2x200xf32>
    tpu.vector_store %arg4[%c0_6, %c0_7], %7 {strides = array<i32>} : memref<2x200xf32, #tpu.memory_space<vmem>>, vector<2x200xf32>,
    return
  }
  func.func @transform_0(%arg0: i32) -> (i32, i32) {
    %c0_i32 = arith.constant 0 : i32
    %c0_i32_0 = arith.constant 0 : i32
    return %arg0, %c0_i32 : i32, i32
  }
  func.func @transform_1(%arg0: i32) -> (i32, i32) {
    %c0_i32 = arith.constant 0 : i32
    %c0_i32_0 = arith.constant 0 : i32
    %c0_i32_1 = arith.constant 0 : i32
    return %c0_i32, %c0_i32_0 : i32, i32
  }
  func.func @transform_2(%arg0: i32) -> (i32, i32) {
    %c0_i32 = arith.constant 0 : i32
    %c0_i32_0 = arith.constant 0 : i32
    %c0_i32_1 = arith.constant 0 : i32
    return %c0_i32, %c0_i32_0 : i32, i32
  }
  func.func @transform_3(%arg0: i32) -> (i32, i32) {
    %c0_i32 = arith.constant 0 : i32
    %c0_i32_0 = arith.constant 0 : i32
    return %c0_i32, %arg0 : i32, i32
  }
}

module attributes {stable_mosaic.version = 11 : i64} {
  func.func @_kde_kernel(%arg0: i32, %arg1: i32, %arg2: memref<2x200xf32, #tpu.memory_space<vmem>>, %arg3: memref<2x1xf32, #tpu.memory_space<vmem>>, %arg4: memref<2x1xf32, #tpu.memory_space<vmem>>, %arg5: memref<32x1xf32, #tpu.memory_space<vmem>>, %arg6: memref<1x32x2xf32, #tpu.memory_space<vmem>>) attributes {dimension_semantics = [#tpu.dimension_semantics<parallel>, #tpu.dimension_semantics<arbitrary>], iteration_bounds = array<i64: 2, 1>, scalar_prefetch = 0 : i64, scratch_operands = 0 : i64, tpu.core_type = #tpu.core_type<tc>, window_params = [{transform_indices = @transform_0, window_bounds = array<i64: 2, 200>}, {pipeline_mode = #tpu.pipeline_mode<synchronous>, transform_indices = @transform_1, window_bounds = array<i64: 2, 1>}, {pipeline_mode = #tpu.pipeline_mode<synchronous>, transform_indices = @transform_2, window_bounds = array<i64: 2, 1>}, {pipeline_mode = #tpu.pipeline_mode<synchronous>, transform_indices = @transform_3, window_bounds = array<i64: 32, 1>}, {transform_indices = @transform_4, window_bounds = array<i64: 1, 32, 2>}]} {
    %c0_i32 = arith.constant 0 : i32
    %0 = arith.cmpi eq, %arg1, %c0_i32 : i32
    %1 = arith.extui %0 : i1 to i32
    %c0_i32_0 = arith.constant 0 : i32
    %2 = arith.cmpi ne, %1, %c0_i32_0 : i32
    scf.if %2 {
      %cst_19 = arith.constant 0.000000e+00 : f32
      %50 = vector.broadcast %cst_19 : f32 to vector<32x2xf32>
      %c0_20 = arith.constant 0 : index
      %c0_21 = arith.constant 0 : index
      %c0_22 = arith.constant 0 : index
      %51 = vector.load %arg6[%c0_20, %c0_21, %c0_22] : memref<1x32x2xf32, #tpu.memory_space<vmem>>, vector<1x32x2xf32>
      %52 = vector.shape_cast %51 : vector<1x32x2xf32> to vector<32x2xf32>
      %53 = vector.shape_cast %50 : vector<32x2xf32> to vector<1x32x2xf32>
      tpu.vector_store %arg6[%c0_20, %c0_21, %c0_22], %53 {strides = array<i32>} : memref<1x32x2xf32, #tpu.memory_space<vmem>>, vector<1x32x2xf32>,
    } else {
    }
    %c1_i32 = arith.constant 1 : i32
    %3 = arith.muli %arg0, %c1_i32 : i32
    %4 = arith.addi %3, %arg1 : i32
    %c200_i32 = arith.constant 200 : i32
    %5 = arith.muli %4, %c200_i32 : i32
    %6 = tpu.iota {dimensions = array<i32: 1>} : vector<1x200xi32>
    %7 = vector.broadcast %5 : i32 to vector<1x200xi32>
    %8 = arith.addi %6, %7 : vector<1x200xi32>
    %c0 = arith.constant 0 : index
    %c0_1 = arith.constant 0 : index
    %9 = vector.load %arg2[%c0, %c0_1] : memref<2x200xf32, #tpu.memory_space<vmem>>, vector<2x200xf32>
    %c0_2 = arith.constant 0 : index
    %c0_3 = arith.constant 0 : index
    %10 = vector.load %arg3[%c0_2, %c0_3] : memref<2x1xf32, #tpu.memory_space<vmem>>, vector<2x1xf32>
    %11 = vector.broadcast %10 : vector<2x1xf32> to vector<2x200xf32>
    %12 = arith.mulf %9, %11 : vector<2x200xf32>
    %c0_4 = arith.constant 0 : index
    %c0_5 = arith.constant 0 : index
    %13 = vector.load %arg4[%c0_4, %c0_5] : memref<2x1xf32, #tpu.memory_space<vmem>>, vector<2x1xf32>
    %14 = vector.broadcast %13 : vector<2x1xf32> to vector<2x200xf32>
    %15 = arith.addf %12, %14 : vector<2x200xf32>
    %c200_i32_6 = arith.constant 200 : i32
    %16 = vector.broadcast %c200_i32_6 : i32 to vector<1x200xi32>
    %17 = arith.cmpi slt, %8, %16 : vector<1x200xi32>
    %cst = arith.constant 1.000000e+09 : f32
    %18 = vector.shape_cast %17 : vector<1x200xi1> to vector<1x200xi1>
    %19 = vector.broadcast %18 : vector<1x200xi1> to vector<2x200xi1>
    %20 = vector.broadcast %cst : f32 to vector<2x200xf32>
    %21 = arith.select %19, %15, %20 : vector<2x200xi1>, vector<2x200xf32>
    %c0_7 = arith.constant 0 : index
    %c0_8 = arith.constant 0 : index
    %22 = vector.load %arg5[%c0_7, %c0_8] : memref<32x1xf32, #tpu.memory_space<vmem>>, vector<32x1xf32>
    %23 = vector.extract_strided_slice %21 {offsets = [0, 0], sizes = [1, 200], strides = [1, 1]} : vector<2x200xf32> to vector<1x200xf32>
    %24 = vector.broadcast %23 : vector<1x200xf32> to vector<32x200xf32>
    %25 = vector.broadcast %22 : vector<32x1xf32> to vector<32x200xf32>
    %26 = arith.subf %24, %25 : vector<32x200xf32>
    %27 = arith.mulf %26, %26 : vector<32x200xf32>
    %cst_9 = arith.constant 0.000000e+00 : f32
    %28 = vector.broadcast %cst_9 : f32 to vector<32x200xf32>
    %29 = arith.subf %28, %27 : vector<32x200xf32>
    %30 = math.exp %29 : vector<32x200xf32>
    %cst_10 = arith.constant dense<0.000000e+00> : vector<32xf32>
    %31 = vector.multi_reduction <add>, %30, %cst_10 [1] : vector<32x200xf32> to vector<32xf32>
    %32 = vector.shape_cast %31 : vector<32xf32> to vector<32x1xf32>
    %33 = vector.extract_strided_slice %21 {offsets = [1, 0], sizes = [1, 200], strides = [1, 1]} : vector<2x200xf32> to vector<1x200xf32>
    %34 = vector.broadcast %33 : vector<1x200xf32> to vector<32x200xf32>
    %35 = vector.broadcast %22 : vector<32x1xf32> to vector<32x200xf32>
    %36 = arith.subf %34, %35 : vector<32x200xf32>
    %37 = arith.mulf %36, %36 : vector<32x200xf32>
    %cst_11 = arith.constant 0.000000e+00 : f32
    %38 = vector.broadcast %cst_11 : f32 to vector<32x200xf32>
    %39 = arith.subf %38, %37 : vector<32x200xf32>
    %40 = math.exp %39 : vector<32x200xf32>
    %cst_12 = arith.constant dense<0.000000e+00> : vector<32xf32>
    %41 = vector.multi_reduction <add>, %40, %cst_12 [1] : vector<32x200xf32> to vector<32xf32>
    %42 = vector.shape_cast %41 : vector<32xf32> to vector<32x1xf32>
    %c0_13 = arith.constant 0 : index
    %c0_14 = arith.constant 0 : index
    %c0_15 = arith.constant 0 : index
    %43 = vector.load %arg6[%c0_13, %c0_14, %c0_15] : memref<1x32x2xf32, #tpu.memory_space<vmem>>, vector<1x32x2xf32>
    %44 = vector.shape_cast %43 : vector<1x32x2xf32> to vector<32x2xf32>
    %45 = tpu.concatenate %32, %42 in 1 : vector<32x1xf32>, vector<32x1xf32> -> vector<32x2xf32>
    %46 = arith.addf %44, %45 : vector<32x2xf32>
    %c0_16 = arith.constant 0 : index
    %c0_17 = arith.constant 0 : index
    %c0_18 = arith.constant 0 : index
    %47 = vector.load %arg6[%c0_16, %c0_17, %c0_18] : memref<1x32x2xf32, #tpu.memory_space<vmem>>, vector<1x32x2xf32>
    %48 = vector.shape_cast %47 : vector<1x32x2xf32> to vector<32x2xf32>
    %49 = vector.shape_cast %46 : vector<32x2xf32> to vector<1x32x2xf32>
    tpu.vector_store %arg6[%c0_16, %c0_17, %c0_18], %49 {strides = array<i32>} : memref<1x32x2xf32, #tpu.memory_space<vmem>>, vector<1x32x2xf32>,
    return
  }
  func.func @transform_0(%arg0: i32, %arg1: i32) -> (i32, i32) {
    %c1_i32 = arith.constant 1 : i32
    %0 = arith.muli %arg0, %c1_i32 : i32
    %1 = arith.addi %0, %arg1 : i32
    %c0_i32 = arith.constant 0 : i32
    %2 = arith.minsi %1, %c0_i32 : i32
    %c0_i32_0 = arith.constant 0 : i32
    %c0_i32_1 = arith.constant 0 : i32
    return %c0_i32_0, %2 : i32, i32
  }
  func.func @transform_1(%arg0: i32, %arg1: i32) -> (i32, i32) {
    %c0_i32 = arith.constant 0 : i32
    %c0_i32_0 = arith.constant 0 : i32
    %c0_i32_1 = arith.constant 0 : i32
    return %c0_i32, %c0_i32_0 : i32, i32
  }
  func.func @transform_2(%arg0: i32, %arg1: i32) -> (i32, i32) {
    %c0_i32 = arith.constant 0 : i32
    %c0_i32_0 = arith.constant 0 : i32
    %c0_i32_1 = arith.constant 0 : i32
    return %c0_i32, %c0_i32_0 : i32, i32
  }
  func.func @transform_3(%arg0: i32, %arg1: i32) -> (i32, i32) {
    %c0_i32 = arith.constant 0 : i32
    %c0_i32_0 = arith.constant 0 : i32
    %c0_i32_1 = arith.constant 0 : i32
    return %c0_i32, %c0_i32_0 : i32, i32
  }
  func.func @transform_4(%arg0: i32, %arg1: i32) -> (i32, i32, i32) {
    %c0_i32 = arith.constant 0 : i32
    %c0_i32_0 = arith.constant 0 : i32
    %c0_i32_1 = arith.constant 0 : i32
    return %arg0, %c0_i32, %c0_i32_0 : i32, i32, i32
  }
}

module attributes {stable_mosaic.version = 11 : i64} {
  func.func @_tap_project_kernel(%arg0: i32, %arg1: memref<128x256xf32, #tpu.memory_space<vmem>>, %arg2: memref<18x128xf32, #tpu.memory_space<vmem>>, %arg3: memref<18x256xf32, #tpu.memory_space<vmem>>) attributes {dimension_semantics = [#tpu.dimension_semantics<parallel>], iteration_bounds = array<i64: 3>, scalar_prefetch = 0 : i64, scratch_operands = 0 : i64, tpu.core_type = #tpu.core_type<tc>, window_params = [{transform_indices = @transform_0, window_bounds = array<i64: 128, 256>}, {pipeline_mode = #tpu.pipeline_mode<synchronous>, transform_indices = @transform_1, window_bounds = array<i64: 18, 128>}, {transform_indices = @transform_2, window_bounds = array<i64: 18, 256>}]} {
    %c0_i32 = arith.constant 0 : i32
    %0 = arith.cmpi eq, %arg0, %c0_i32 : i32
    %c2_i32 = arith.constant 2 : i32
    %1 = arith.cmpi eq, %arg0, %c2_i32 : i32
    %2 = arith.ori %0, %1 : i1
    %3 = arith.extui %2 : i1 to i32
    %c0_i32_0 = arith.constant 0 : i32
    %4 = arith.cmpi ne, %3, %c0_i32_0 : i32
    scf.if %4 {
      %cst = arith.constant 0.000000e+00 : f32
      %13 = vector.broadcast %cst : f32 to vector<18x256xf32>
      %c0 = arith.constant 0 : index
      %c0_5 = arith.constant 0 : index
      %14 = vector.load %arg3[%c0, %c0_5] : memref<18x256xf32, #tpu.memory_space<vmem>>, vector<18x256xf32>
      tpu.vector_store %arg3[%c0, %c0_5], %13 {strides = array<i32>} : memref<18x256xf32, #tpu.memory_space<vmem>>, vector<18x256xf32>,
    } else {
    }
    %c0_i32_1 = arith.constant 0 : i32
    %5 = arith.cmpi sgt, %arg0, %c0_i32_1 : i32
    %c1_i32 = arith.constant 1 : i32
    %6 = arith.cmpi slt, %arg0, %c1_i32 : i32
    %7 = arith.andi %5, %6 : i1
    %8 = arith.extui %7 : i1 to i32
    %c0_i32_2 = arith.constant 0 : i32
    %9 = arith.cmpi ne, %8, %c0_i32_2 : i32
    scf.if %9 {
      %c0 = arith.constant 0 : index
      %c0_5 = arith.constant 0 : index
      %13 = vector.load %arg2[%c0, %c0_5] : memref<18x128xf32, #tpu.memory_space<vmem>>, vector<18x128xf32>
      %c0_6 = arith.constant 0 : index
      %c0_7 = arith.constant 0 : index
      %14 = vector.load %arg1[%c0_6, %c0_7] : memref<128x256xf32, #tpu.memory_space<vmem>>, vector<128x256xf32>
      %cst = arith.constant dense<0.000000e+00> : vector<18x256xf32>
      %15 = tpu.matmul %13, %14, %cst {dimension_numbers = #tpu.dot_dimension_numbers<[1], [0], [0], [1], [0, 0, 1, 1], [], []>} : vector<18x128xf32>, vector<128x256xf32>, vector<18x256xf32> -> vector<18x256xf32>
      %c0_8 = arith.constant 0 : index
      %c0_9 = arith.constant 0 : index
      %16 = vector.load %arg3[%c0_8, %c0_9] : memref<18x256xf32, #tpu.memory_space<vmem>>, vector<18x256xf32>
      tpu.vector_store %arg3[%c0_8, %c0_9], %15 {strides = array<i32>} : memref<18x256xf32, #tpu.memory_space<vmem>>, vector<18x256xf32>,
    } else {
    }
    %c1_i32_3 = arith.constant 1 : i32
    %10 = arith.cmpi eq, %arg0, %c1_i32_3 : i32
    %11 = arith.extui %10 : i1 to i32
    %c0_i32_4 = arith.constant 0 : i32
    %12 = arith.cmpi ne, %11, %c0_i32_4 : i32
    scf.if %12 {
      %c0 = arith.constant 0 : index
      %c0_5 = arith.constant 0 : index
      %13 = vector.load %arg2[%c0, %c0_5] : memref<18x128xf32, #tpu.memory_space<vmem>>, vector<18x128xf32>
      %c0_6 = arith.constant 0 : index
      %c0_7 = arith.constant 0 : index
      %14 = vector.load %arg1[%c0_6, %c0_7] : memref<128x256xf32, #tpu.memory_space<vmem>>, vector<128x256xf32>
      %cst = arith.constant dense<0.000000e+00> : vector<18x256xf32>
      %15 = tpu.matmul %13, %14, %cst {dimension_numbers = #tpu.dot_dimension_numbers<[1], [0], [0], [1], [0, 0, 1, 1], [], []>} : vector<18x128xf32>, vector<128x256xf32>, vector<18x256xf32> -> vector<18x256xf32>
      %16 = tpu.iota {dimensions = array<i32: 1>} : vector<18x256xi32>
      %c0_i32_8 = arith.constant 0 : i32
      %17 = vector.broadcast %c0_i32_8 : i32 to vector<18x256xi32>
      %18 = arith.addi %16, %17 : vector<18x256xi32>
      %c256_i32 = arith.constant 256 : i32
      %19 = vector.broadcast %c256_i32 : i32 to vector<18x256xi32>
      %20 = arith.cmpi slt, %18, %19 : vector<18x256xi32>
      %cst_9 = arith.constant 0.000000e+00 : f32
      %21 = vector.broadcast %cst_9 : f32 to vector<18x256xf32>
      %22 = arith.select %20, %15, %21 : vector<18x256xi1>, vector<18x256xf32>
      %c0_10 = arith.constant 0 : index
      %c0_11 = arith.constant 0 : index
      %23 = vector.load %arg3[%c0_10, %c0_11] : memref<18x256xf32, #tpu.memory_space<vmem>>, vector<18x256xf32>
      tpu.vector_store %arg3[%c0_10, %c0_11], %22 {strides = array<i32>} : memref<18x256xf32, #tpu.memory_space<vmem>>, vector<18x256xf32>,
    } else {
    }
    return
  }
  func.func @transform_0(%arg0: i32) -> (i32, i32) {
    %c1_i32 = arith.constant 1 : i32
    %0 = arith.subi %arg0, %c1_i32 : i32
    %c0_i32 = arith.constant 0 : i32
    %1 = arith.maxsi %0, %c0_i32 : i32
    %c0_i32_0 = arith.constant 0 : i32
    %2 = arith.minsi %1, %c0_i32_0 : i32
    %c0_i32_1 = arith.constant 0 : i32
    %c0_i32_2 = arith.constant 0 : i32
    return %c0_i32_1, %2 : i32, i32
  }
  func.func @transform_1(%arg0: i32) -> (i32, i32) {
    %c0_i32 = arith.constant 0 : i32
    %c0_i32_0 = arith.constant 0 : i32
    %c0_i32_1 = arith.constant 0 : i32
    return %c0_i32, %c0_i32_0 : i32, i32
  }
  func.func @transform_2(%arg0: i32) -> (i32, i32) {
    %c0_i32 = arith.constant 0 : i32
    %c0_i32_0 = arith.constant 0 : i32
    return %c0_i32, %arg0 : i32, i32
  }
}

module attributes {stable_mosaic.version = 11 : i64} {
  func.func @_tap_combine_kernel(%arg0: i32, %arg1: memref<18x128xf32, #tpu.memory_space<vmem>>, %arg2: memref<18x256xf32, #tpu.memory_space<vmem>>, %arg3: memref<18x128xf32, #tpu.memory_space<vmem>>, %arg4: memref<2x1xf32, #tpu.memory_space<vmem>>, %arg5: memref<2x256xf32, #tpu.memory_space<vmem>>, %arg6: memref<2x256xf32, #tpu.memory_space<vmem>>) attributes {dimension_semantics = [#tpu.dimension_semantics<parallel>], iteration_bounds = array<i64: 1>, scalar_prefetch = 0 : i64, scratch_operands = 0 : i64, tpu.core_type = #tpu.core_type<tc>, window_params = [{transform_indices = @transform_0, window_bounds = array<i64: 18, 128>}, {transform_indices = @transform_1, window_bounds = array<i64: 18, 256>}, {transform_indices = @transform_2, window_bounds = array<i64: 18, 128>}, {pipeline_mode = #tpu.pipeline_mode<synchronous>, transform_indices = @transform_3, window_bounds = array<i64: 2, 1>}, {pipeline_mode = #tpu.pipeline_mode<synchronous>, transform_indices = @transform_4, window_bounds = array<i64: 2, 256>}, {transform_indices = @transform_5, window_bounds = array<i64: 2, 256>}]} {
    %c0 = arith.constant 0 : index
    %c0_0 = arith.constant 0 : index
    %0 = vector.load %arg1[%c0, %c0_0] : memref<18x128xf32, #tpu.memory_space<vmem>>, vector<18x128xf32>
    %c0_1 = arith.constant 0 : index
    %c0_2 = arith.constant 0 : index
    %1 = vector.load %arg2[%c0_1, %c0_2] : memref<18x256xf32, #tpu.memory_space<vmem>>, vector<18x256xf32>
    %c0_3 = arith.constant 0 : index
    %c0_4 = arith.constant 0 : index
    %2 = vector.load %arg3[%c0_3, %c0_4] : memref<18x128xf32, #tpu.memory_space<vmem>>, vector<18x128xf32>
    %3 = tpu.concatenate %0, %1, %2 in 1 : vector<18x128xf32>, vector<18x256xf32>, vector<18x128xf32> -> vector<18x512xf32>
    %cst = arith.constant 0.000000e+00 : f32
    %4 = vector.broadcast %cst : f32 to vector<2x256xf32>
    %5 = vector.extract_strided_slice %3 {offsets = [0, 111], sizes = [2, 256], strides = [1, 1]} : vector<18x512xf32> to vector<2x256xf32>
    %c0_5 = arith.constant 0 : index
    %c0_6 = arith.constant 0 : index
    %6 = vector.load %arg5[%c0_5, %c0_6] : memref<2x256xf32, #tpu.memory_space<vmem>>, vector<1x256xf32>
    %7 = vector.broadcast %6 : vector<1x256xf32> to vector<2x256xf32>
    %8 = arith.mulf %5, %7 : vector<2x256xf32>
    %9 = arith.addf %4, %8 : vector<2x256xf32>
    %10 = vector.extract_strided_slice %3 {offsets = [2, 112], sizes = [2, 256], strides = [1, 1]} : vector<18x512xf32> to vector<2x256xf32>
    %11 = arith.addf %9, %10 : vector<2x256xf32>
    %12 = vector.extract_strided_slice %3 {offsets = [4, 113], sizes = [2, 256], strides = [1, 1]} : vector<18x512xf32> to vector<2x256xf32>
    %c1 = arith.constant 1 : index
    %c0_7 = arith.constant 0 : index
    %13 = vector.load %arg5[%c1, %c0_7] : memref<2x256xf32, #tpu.memory_space<vmem>>, vector<1x256xf32>
    %14 = vector.broadcast %13 : vector<1x256xf32> to vector<2x256xf32>
    %15 = arith.mulf %12, %14 : vector<2x256xf32>
    %16 = arith.addf %11, %15 : vector<2x256xf32>
    %17 = vector.extract_strided_slice %3 {offsets = [6, 127], sizes = [2, 256], strides = [1, 1]} : vector<18x512xf32> to vector<2x256xf32>
    %c0_8 = arith.constant 0 : index
    %c0_9 = arith.constant 0 : index
    %18 = vector.load %arg5[%c0_8, %c0_9] : memref<2x256xf32, #tpu.memory_space<vmem>>, vector<1x256xf32>
    %19 = vector.broadcast %18 : vector<1x256xf32> to vector<2x256xf32>
    %20 = arith.mulf %17, %19 : vector<2x256xf32>
    %21 = arith.addf %16, %20 : vector<2x256xf32>
    %22 = vector.extract_strided_slice %3 {offsets = [8, 128], sizes = [2, 256], strides = [1, 1]} : vector<18x512xf32> to vector<2x256xf32>
    %23 = arith.addf %21, %22 : vector<2x256xf32>
    %24 = vector.extract_strided_slice %3 {offsets = [10, 129], sizes = [2, 256], strides = [1, 1]} : vector<18x512xf32> to vector<2x256xf32>
    %c1_10 = arith.constant 1 : index
    %c0_11 = arith.constant 0 : index
    %25 = vector.load %arg5[%c1_10, %c0_11] : memref<2x256xf32, #tpu.memory_space<vmem>>, vector<1x256xf32>
    %26 = vector.broadcast %25 : vector<1x256xf32> to vector<2x256xf32>
    %27 = arith.mulf %24, %26 : vector<2x256xf32>
    %28 = arith.addf %23, %27 : vector<2x256xf32>
    %29 = vector.extract_strided_slice %3 {offsets = [12, 143], sizes = [2, 256], strides = [1, 1]} : vector<18x512xf32> to vector<2x256xf32>
    %c0_12 = arith.constant 0 : index
    %c0_13 = arith.constant 0 : index
    %30 = vector.load %arg5[%c0_12, %c0_13] : memref<2x256xf32, #tpu.memory_space<vmem>>, vector<1x256xf32>
    %31 = vector.broadcast %30 : vector<1x256xf32> to vector<2x256xf32>
    %32 = arith.mulf %29, %31 : vector<2x256xf32>
    %33 = arith.addf %28, %32 : vector<2x256xf32>
    %34 = vector.extract_strided_slice %3 {offsets = [14, 144], sizes = [2, 256], strides = [1, 1]} : vector<18x512xf32> to vector<2x256xf32>
    %35 = arith.addf %33, %34 : vector<2x256xf32>
    %36 = vector.extract_strided_slice %3 {offsets = [16, 145], sizes = [2, 256], strides = [1, 1]} : vector<18x512xf32> to vector<2x256xf32>
    %c1_14 = arith.constant 1 : index
    %c0_15 = arith.constant 0 : index
    %37 = vector.load %arg5[%c1_14, %c0_15] : memref<2x256xf32, #tpu.memory_space<vmem>>, vector<1x256xf32>
    %38 = vector.broadcast %37 : vector<1x256xf32> to vector<2x256xf32>
    %39 = arith.mulf %36, %38 : vector<2x256xf32>
    %40 = arith.addf %35, %39 : vector<2x256xf32>
    %c0_16 = arith.constant 0 : index
    %c0_17 = arith.constant 0 : index
    %41 = vector.load %arg4[%c0_16, %c0_17] : memref<2x1xf32, #tpu.memory_space<vmem>>, vector<2x1xf32>
    %42 = vector.broadcast %41 : vector<2x1xf32> to vector<2x256xf32>
    %43 = arith.addf %40, %42 : vector<2x256xf32>
    %cst_18 = arith.constant 0.000000e+00 : f32
    %44 = vector.broadcast %cst_18 : f32 to vector<2x256xf32>
    %45 = arith.maximumf %43, %44 : vector<2x256xf32>
    %c0_19 = arith.constant 0 : index
    %c0_20 = arith.constant 0 : index
    %46 = vector.load %arg6[%c0_19, %c0_20] : memref<2x256xf32, #tpu.memory_space<vmem>>, vector<2x256xf32>
    tpu.vector_store %arg6[%c0_19, %c0_20], %45 {strides = array<i32>} : memref<2x256xf32, #tpu.memory_space<vmem>>, vector<2x256xf32>,
    return
  }
  func.func @transform_0(%arg0: i32) -> (i32, i32) {
    %c1_i32 = arith.constant 1 : i32
    %0 = arith.addi %arg0, %c1_i32 : i32
    %c2_i32 = arith.constant 2 : i32
    %1 = arith.muli %0, %c2_i32 : i32
    %c1_i32_0 = arith.constant 1 : i32
    %2 = arith.subi %1, %c1_i32_0 : i32
    %c0_i32 = arith.constant 0 : i32
    %c0_i32_1 = arith.constant 0 : i32
    return %c0_i32, %2 : i32, i32
  }
  func.func @transform_1(%arg0: i32) -> (i32, i32) {
    %c1_i32 = arith.constant 1 : i32
    %0 = arith.addi %arg0, %c1_i32 : i32
    %c0_i32 = arith.constant 0 : i32
    %c0_i32_0 = arith.constant 0 : i32
    return %c0_i32, %0 : i32, i32
  }
  func.func @transform_2(%arg0: i32) -> (i32, i32) {
    %c2_i32 = arith.constant 2 : i32
    %0 = arith.addi %arg0, %c2_i32 : i32
    %c2_i32_0 = arith.constant 2 : i32
    %1 = arith.muli %0, %c2_i32_0 : i32
    %c0_i32 = arith.constant 0 : i32
    %c0_i32_1 = arith.constant 0 : i32
    return %c0_i32, %1 : i32, i32
  }
  func.func @transform_3(%arg0: i32) -> (i32, i32) {
    %c0_i32 = arith.constant 0 : i32
    %c0_i32_0 = arith.constant 0 : i32
    %c0_i32_1 = arith.constant 0 : i32
    return %c0_i32, %c0_i32_0 : i32, i32
  }
  func.func @transform_4(%arg0: i32) -> (i32, i32) {
    %c0_i32 = arith.constant 0 : i32
    %c0_i32_0 = arith.constant 0 : i32
    %c0_i32_1 = arith.constant 0 : i32
    return %c0_i32, %c0_i32_0 : i32, i32
  }
  func.func @transform_5(%arg0: i32) -> (i32, i32) {
    %c0_i32 = arith.constant 0 : i32
    %c0_i32_0 = arith.constant 0 : i32
    return %c0_i32, %arg0 : i32, i32
  }
}

module attributes {stable_mosaic.version = 11 : i64} {
  func.func @_kde_kernel(%arg0: i32, %arg1: i32, %arg2: memref<2x256xf32, #tpu.memory_space<vmem>>, %arg3: memref<2x1xf32, #tpu.memory_space<vmem>>, %arg4: memref<2x1xf32, #tpu.memory_space<vmem>>, %arg5: memref<32x1xf32, #tpu.memory_space<vmem>>, %arg6: memref<1x32x2xf32, #tpu.memory_space<vmem>>) attributes {dimension_semantics = [#tpu.dimension_semantics<parallel>, #tpu.dimension_semantics<arbitrary>], iteration_bounds = array<i64: 2, 1>, scalar_prefetch = 0 : i64, scratch_operands = 0 : i64, tpu.core_type = #tpu.core_type<tc>, window_params = [{transform_indices = @transform_0, window_bounds = array<i64: 2, 256>}, {pipeline_mode = #tpu.pipeline_mode<synchronous>, transform_indices = @transform_1, window_bounds = array<i64: 2, 1>}, {pipeline_mode = #tpu.pipeline_mode<synchronous>, transform_indices = @transform_2, window_bounds = array<i64: 2, 1>}, {pipeline_mode = #tpu.pipeline_mode<synchronous>, transform_indices = @transform_3, window_bounds = array<i64: 32, 1>}, {transform_indices = @transform_4, window_bounds = array<i64: 1, 32, 2>}]} {
    %c0_i32 = arith.constant 0 : i32
    %0 = arith.cmpi eq, %arg1, %c0_i32 : i32
    %1 = arith.extui %0 : i1 to i32
    %c0_i32_0 = arith.constant 0 : i32
    %2 = arith.cmpi ne, %1, %c0_i32_0 : i32
    scf.if %2 {
      %cst_19 = arith.constant 0.000000e+00 : f32
      %50 = vector.broadcast %cst_19 : f32 to vector<32x2xf32>
      %c0_20 = arith.constant 0 : index
      %c0_21 = arith.constant 0 : index
      %c0_22 = arith.constant 0 : index
      %51 = vector.load %arg6[%c0_20, %c0_21, %c0_22] : memref<1x32x2xf32, #tpu.memory_space<vmem>>, vector<1x32x2xf32>
      %52 = vector.shape_cast %51 : vector<1x32x2xf32> to vector<32x2xf32>
      %53 = vector.shape_cast %50 : vector<32x2xf32> to vector<1x32x2xf32>
      tpu.vector_store %arg6[%c0_20, %c0_21, %c0_22], %53 {strides = array<i32>} : memref<1x32x2xf32, #tpu.memory_space<vmem>>, vector<1x32x2xf32>,
    } else {
    }
    %c1_i32 = arith.constant 1 : i32
    %3 = arith.muli %arg0, %c1_i32 : i32
    %4 = arith.addi %3, %arg1 : i32
    %c256_i32 = arith.constant 256 : i32
    %5 = arith.muli %4, %c256_i32 : i32
    %6 = tpu.iota {dimensions = array<i32: 1>} : vector<1x256xi32>
    %7 = vector.broadcast %5 : i32 to vector<1x256xi32>
    %8 = arith.addi %6, %7 : vector<1x256xi32>
    %c0 = arith.constant 0 : index
    %c0_1 = arith.constant 0 : index
    %9 = vector.load %arg2[%c0, %c0_1] : memref<2x256xf32, #tpu.memory_space<vmem>>, vector<2x256xf32>
    %c0_2 = arith.constant 0 : index
    %c0_3 = arith.constant 0 : index
    %10 = vector.load %arg3[%c0_2, %c0_3] : memref<2x1xf32, #tpu.memory_space<vmem>>, vector<2x1xf32>
    %11 = vector.broadcast %10 : vector<2x1xf32> to vector<2x256xf32>
    %12 = arith.mulf %9, %11 : vector<2x256xf32>
    %c0_4 = arith.constant 0 : index
    %c0_5 = arith.constant 0 : index
    %13 = vector.load %arg4[%c0_4, %c0_5] : memref<2x1xf32, #tpu.memory_space<vmem>>, vector<2x1xf32>
    %14 = vector.broadcast %13 : vector<2x1xf32> to vector<2x256xf32>
    %15 = arith.addf %12, %14 : vector<2x256xf32>
    %c256_i32_6 = arith.constant 256 : i32
    %16 = vector.broadcast %c256_i32_6 : i32 to vector<1x256xi32>
    %17 = arith.cmpi slt, %8, %16 : vector<1x256xi32>
    %cst = arith.constant 1.000000e+09 : f32
    %18 = vector.shape_cast %17 : vector<1x256xi1> to vector<1x256xi1>
    %19 = vector.broadcast %18 : vector<1x256xi1> to vector<2x256xi1>
    %20 = vector.broadcast %cst : f32 to vector<2x256xf32>
    %21 = arith.select %19, %15, %20 : vector<2x256xi1>, vector<2x256xf32>
    %c0_7 = arith.constant 0 : index
    %c0_8 = arith.constant 0 : index
    %22 = vector.load %arg5[%c0_7, %c0_8] : memref<32x1xf32, #tpu.memory_space<vmem>>, vector<32x1xf32>
    %23 = vector.extract_strided_slice %21 {offsets = [0, 0], sizes = [1, 256], strides = [1, 1]} : vector<2x256xf32> to vector<1x256xf32>
    %24 = vector.broadcast %23 : vector<1x256xf32> to vector<32x256xf32>
    %25 = vector.broadcast %22 : vector<32x1xf32> to vector<32x256xf32>
    %26 = arith.subf %24, %25 : vector<32x256xf32>
    %27 = arith.mulf %26, %26 : vector<32x256xf32>
    %cst_9 = arith.constant 0.000000e+00 : f32
    %28 = vector.broadcast %cst_9 : f32 to vector<32x256xf32>
    %29 = arith.subf %28, %27 : vector<32x256xf32>
    %30 = math.exp %29 : vector<32x256xf32>
    %cst_10 = arith.constant dense<0.000000e+00> : vector<32xf32>
    %31 = vector.multi_reduction <add>, %30, %cst_10 [1] : vector<32x256xf32> to vector<32xf32>
    %32 = vector.shape_cast %31 : vector<32xf32> to vector<32x1xf32>
    %33 = vector.extract_strided_slice %21 {offsets = [1, 0], sizes = [1, 256], strides = [1, 1]} : vector<2x256xf32> to vector<1x256xf32>
    %34 = vector.broadcast %33 : vector<1x256xf32> to vector<32x256xf32>
    %35 = vector.broadcast %22 : vector<32x1xf32> to vector<32x256xf32>
    %36 = arith.subf %34, %35 : vector<32x256xf32>
    %37 = arith.mulf %36, %36 : vector<32x256xf32>
    %cst_11 = arith.constant 0.000000e+00 : f32
    %38 = vector.broadcast %cst_11 : f32 to vector<32x256xf32>
    %39 = arith.subf %38, %37 : vector<32x256xf32>
    %40 = math.exp %39 : vector<32x256xf32>
    %cst_12 = arith.constant dense<0.000000e+00> : vector<32xf32>
    %41 = vector.multi_reduction <add>, %40, %cst_12 [1] : vector<32x256xf32> to vector<32xf32>
    %42 = vector.shape_cast %41 : vector<32xf32> to vector<32x1xf32>
    %c0_13 = arith.constant 0 : index
    %c0_14 = arith.constant 0 : index
    %c0_15 = arith.constant 0 : index
    %43 = vector.load %arg6[%c0_13, %c0_14, %c0_15] : memref<1x32x2xf32, #tpu.memory_space<vmem>>, vector<1x32x2xf32>
    %44 = vector.shape_cast %43 : vector<1x32x2xf32> to vector<32x2xf32>
    %45 = tpu.concatenate %32, %42 in 1 : vector<32x1xf32>, vector<32x1xf32> -> vector<32x2xf32>
    %46 = arith.addf %44, %45 : vector<32x2xf32>
    %c0_16 = arith.constant 0 : index
    %c0_17 = arith.constant 0 : index
    %c0_18 = arith.constant 0 : index
    %47 = vector.load %arg6[%c0_16, %c0_17, %c0_18] : memref<1x32x2xf32, #tpu.memory_space<vmem>>, vector<1x32x2xf32>
    %48 = vector.shape_cast %47 : vector<1x32x2xf32> to vector<32x2xf32>
    %49 = vector.shape_cast %46 : vector<32x2xf32> to vector<1x32x2xf32>
    tpu.vector_store %arg6[%c0_16, %c0_17, %c0_18], %49 {strides = array<i32>} : memref<1x32x2xf32, #tpu.memory_space<vmem>>, vector<1x32x2xf32>,
    return
  }
  func.func @transform_0(%arg0: i32, %arg1: i32) -> (i32, i32) {
    %c1_i32 = arith.constant 1 : i32
    %0 = arith.muli %arg0, %c1_i32 : i32
    %1 = arith.addi %0, %arg1 : i32
    %c0_i32 = arith.constant 0 : i32
    %2 = arith.minsi %1, %c0_i32 : i32
    %c0_i32_0 = arith.constant 0 : i32
    %c0_i32_1 = arith.constant 0 : i32
    return %c0_i32_0, %2 : i32, i32
  }
  func.func @transform_1(%arg0: i32, %arg1: i32) -> (i32, i32) {
    %c0_i32 = arith.constant 0 : i32
    %c0_i32_0 = arith.constant 0 : i32
    %c0_i32_1 = arith.constant 0 : i32
    return %c0_i32, %c0_i32_0 : i32, i32
  }
  func.func @transform_2(%arg0: i32, %arg1: i32) -> (i32, i32) {
    %c0_i32 = arith.constant 0 : i32
    %c0_i32_0 = arith.constant 0 : i32
    %c0_i32_1 = arith.constant 0 : i32
    return %c0_i32, %c0_i32_0 : i32, i32
  }
  func.func @transform_3(%arg0: i32, %arg1: i32) -> (i32, i32) {
    %c0_i32 = arith.constant 0 : i32
    %c0_i32_0 = arith.constant 0 : i32
    %c0_i32_1 = arith.constant 0 : i32
    return %c0_i32, %c0_i32_0 : i32, i32
  }
  func.func @transform_4(%arg0: i32, %arg1: i32) -> (i32, i32, i32) {
    %c0_i32 = arith.constant 0 : i32
    %c0_i32_0 = arith.constant 0 : i32
    %c0_i32_1 = arith.constant 0 : i32
    return %arg0, %c0_i32, %c0_i32_0 : i32, i32, i32
  }
}

module attributes {stable_mosaic.version = 11 : i64} {
  func.func @_fuse_img_kernel(%arg0: i32, %arg1: memref<2x256xf32, #tpu.memory_space<vmem>>, %arg2: memref<128x2xf32, #tpu.memory_space<vmem>>, %arg3: memref<128x1xf32, #tpu.memory_space<vmem>>, %arg4: memref<128x256xf32, #tpu.memory_space<vmem>>, %arg5: memref<128x256xf32, #tpu.memory_space<vmem>>) attributes {dimension_semantics = [#tpu.dimension_semantics<parallel>], iteration_bounds = array<i64: 1>, scalar_prefetch = 0 : i64, scratch_operands = 0 : i64, tpu.core_type = #tpu.core_type<tc>, window_params = [{transform_indices = @transform_0, window_bounds = array<i64: 2, 256>}, {pipeline_mode = #tpu.pipeline_mode<synchronous>, transform_indices = @transform_1, window_bounds = array<i64: 128, 2>}, {pipeline_mode = #tpu.pipeline_mode<synchronous>, transform_indices = @transform_2, window_bounds = array<i64: 128, 1>}, {transform_indices = @transform_3, window_bounds = array<i64: 128, 256>}, {transform_indices = @transform_4, window_bounds = array<i64: 128, 256>}]} {
    %c0 = arith.constant 0 : index
    %c0_0 = arith.constant 0 : index
    %0 = vector.load %arg2[%c0, %c0_0] : memref<128x2xf32, #tpu.memory_space<vmem>>, vector<128x2xf32>
    %c0_1 = arith.constant 0 : index
    %c0_2 = arith.constant 0 : index
    %1 = vector.load %arg1[%c0_1, %c0_2] : memref<2x256xf32, #tpu.memory_space<vmem>>, vector<2x256xf32>
    %cst = arith.constant dense<0.000000e+00> : vector<128x256xf32>
    %2 = tpu.matmul %0, %1, %cst {dimension_numbers = #tpu.dot_dimension_numbers<[1], [0], [0], [1], [0, 0, 1, 1], [], []>} : vector<128x2xf32>, vector<2x256xf32>, vector<128x256xf32> -> vector<128x256xf32>
    %c0_3 = arith.constant 0 : index
    %c0_4 = arith.constant 0 : index
    %3 = vector.load %arg3[%c0_3, %c0_4] : memref<128x1xf32, #tpu.memory_space<vmem>>, vector<128x1xf32>
    %4 = vector.broadcast %3 : vector<128x1xf32> to vector<128x256xf32>
    %5 = arith.addf %2, %4 : vector<128x256xf32>
    %cst_5 = arith.constant 0.000000e+00 : f32
    %6 = vector.broadcast %cst_5 : f32 to vector<128x256xf32>
    %7 = arith.maximumf %5, %6 : vector<128x256xf32>
    %cst_6 = arith.constant 1.000000e-01 : f32
    %8 = vector.broadcast %cst_6 : f32 to vector<128x256xf32>
    %9 = arith.mulf %7, %8 : vector<128x256xf32>
    %c0_7 = arith.constant 0 : index
    %c0_8 = arith.constant 0 : index
    %10 = vector.load %arg4[%c0_7, %c0_8] : memref<128x256xf32, #tpu.memory_space<vmem>>, vector<128x256xf32>
    %cst_9 = arith.constant 0.899999976 : f32
    %11 = vector.broadcast %cst_9 : f32 to vector<128x256xf32>
    %12 = arith.mulf %10, %11 : vector<128x256xf32>
    %13 = arith.addf %9, %12 : vector<128x256xf32>
    %c0_10 = arith.constant 0 : index
    %c0_11 = arith.constant 0 : index
    %14 = vector.load %arg5[%c0_10, %c0_11] : memref<128x256xf32, #tpu.memory_space<vmem>>, vector<128x256xf32>
    tpu.vector_store %arg5[%c0_10, %c0_11], %13 {strides = array<i32>} : memref<128x256xf32, #tpu.memory_space<vmem>>, vector<128x256xf32>,
    return
  }
  func.func @transform_0(%arg0: i32) -> (i32, i32) {
    %c0_i32 = arith.constant 0 : i32
    %c0_i32_0 = arith.constant 0 : i32
    return %c0_i32, %arg0 : i32, i32
  }
  func.func @transform_1(%arg0: i32) -> (i32, i32) {
    %c0_i32 = arith.constant 0 : i32
    %c0_i32_0 = arith.constant 0 : i32
    %c0_i32_1 = arith.constant 0 : i32
    return %c0_i32, %c0_i32_0 : i32, i32
  }
  func.func @transform_2(%arg0: i32) -> (i32, i32) {
    %c0_i32 = arith.constant 0 : i32
    %c0_i32_0 = arith.constant 0 : i32
    %c0_i32_1 = arith.constant 0 : i32
    return %c0_i32, %c0_i32_0 : i32, i32
  }
  func.func @transform_3(%arg0: i32) -> (i32, i32) {
    %c0_i32 = arith.constant 0 : i32
    %c0_i32_0 = arith.constant 0 : i32
    return %c0_i32, %arg0 : i32, i32
  }
  func.func @transform_4(%arg0: i32) -> (i32, i32) {
    %c0_i32 = arith.constant 0 : i32
    %c0_i32_0 = arith.constant 0 : i32
    return %c0_i32, %arg0 : i32, i32
  }
}

module attributes {stable_mosaic.version = 11 : i64} {
  func.func @_fuse_pcd_kernel(%arg0: i32, %arg1: memref<2x200xf32, #tpu.memory_space<vmem>>, %arg2: memref<2x128xf32, #tpu.memory_space<vmem>>, %arg3: memref<1x128xf32, #tpu.memory_space<vmem>>, %arg4: memref<200x128xf32, #tpu.memory_space<vmem>>, %arg5: memref<200x128xf32, #tpu.memory_space<vmem>>) attributes {dimension_semantics = [#tpu.dimension_semantics<parallel>], iteration_bounds = array<i64: 1>, scalar_prefetch = 0 : i64, scratch_operands = 0 : i64, tpu.core_type = #tpu.core_type<tc>, window_params = [{transform_indices = @transform_0, window_bounds = array<i64: 2, 200>}, {pipeline_mode = #tpu.pipeline_mode<synchronous>, transform_indices = @transform_1, window_bounds = array<i64: 2, 128>}, {pipeline_mode = #tpu.pipeline_mode<synchronous>, transform_indices = @transform_2, window_bounds = array<i64: 1, 128>}, {transform_indices = @transform_3, window_bounds = array<i64: 200, 128>}, {transform_indices = @transform_4, window_bounds = array<i64: 200, 128>}]} {
    %c0 = arith.constant 0 : index
    %c0_0 = arith.constant 0 : index
    %0 = vector.load %arg1[%c0, %c0_0] : memref<2x200xf32, #tpu.memory_space<vmem>>, vector<2x200xf32>
    %c0_1 = arith.constant 0 : index
    %c0_2 = arith.constant 0 : index
    %1 = vector.load %arg2[%c0_1, %c0_2] : memref<2x128xf32, #tpu.memory_space<vmem>>, vector<2x128xf32>
    %cst = arith.constant dense<0.000000e+00> : vector<200x128xf32>
    %2 = tpu.matmul %0, %1, %cst {dimension_numbers = #tpu.dot_dimension_numbers<[0], [0], [1], [1], [0, 1, 1, 1], [], []>} : vector<2x200xf32>, vector<2x128xf32>, vector<200x128xf32> -> vector<200x128xf32>
    %c0_3 = arith.constant 0 : index
    %c0_4 = arith.constant 0 : index
    %3 = vector.load %arg3[%c0_3, %c0_4] : memref<1x128xf32, #tpu.memory_space<vmem>>, vector<1x128xf32>
    %4 = vector.broadcast %3 : vector<1x128xf32> to vector<200x128xf32>
    %5 = arith.addf %2, %4 : vector<200x128xf32>
    %cst_5 = arith.constant 0.000000e+00 : f32
    %6 = vector.broadcast %cst_5 : f32 to vector<200x128xf32>
    %7 = arith.maximumf %5, %6 : vector<200x128xf32>
    %cst_6 = arith.constant 1.000000e-01 : f32
    %8 = vector.broadcast %cst_6 : f32 to vector<200x128xf32>
    %9 = arith.mulf %7, %8 : vector<200x128xf32>
    %c0_7 = arith.constant 0 : index
    %c0_8 = arith.constant 0 : index
    %10 = vector.load %arg4[%c0_7, %c0_8] : memref<200x128xf32, #tpu.memory_space<vmem>>, vector<200x128xf32>
    %cst_9 = arith.constant 0.899999976 : f32
    %11 = vector.broadcast %cst_9 : f32 to vector<200x128xf32>
    %12 = arith.mulf %10, %11 : vector<200x128xf32>
    %13 = arith.addf %9, %12 : vector<200x128xf32>
    %c0_10 = arith.constant 0 : index
    %c0_11 = arith.constant 0 : index
    %14 = vector.load %arg5[%c0_10, %c0_11] : memref<200x128xf32, #tpu.memory_space<vmem>>, vector<200x128xf32>
    tpu.vector_store %arg5[%c0_10, %c0_11], %13 {strides = array<i32>} : memref<200x128xf32, #tpu.memory_space<vmem>>, vector<200x128xf32>,
    return
  }
  func.func @transform_0(%arg0: i32) -> (i32, i32) {
    %c0_i32 = arith.constant 0 : i32
    %c0_i32_0 = arith.constant 0 : i32
    return %c0_i32, %arg0 : i32, i32
  }
  func.func @transform_1(%arg0: i32) -> (i32, i32) {
    %c0_i32 = arith.constant 0 : i32
    %c0_i32_0 = arith.constant 0 : i32
    %c0_i32_1 = arith.constant 0 : i32
    return %c0_i32, %c0_i32_0 : i32, i32
  }
  func.func @transform_2(%arg0: i32) -> (i32, i32) {
    %c0_i32 = arith.constant 0 : i32
    %c0_i32_0 = arith.constant 0 : i32
    %c0_i32_1 = arith.constant 0 : i32
    return %c0_i32, %c0_i32_0 : i32, i32
  }
  func.func @transform_3(%arg0: i32) -> (i32, i32) {
    %c0_i32 = arith.constant 0 : i32
    %c0_i32_0 = arith.constant 0 : i32
    return %arg0, %c0_i32 : i32, i32
  }
  func.func @transform_4(%arg0: i32) -> (i32, i32) {
    %c0_i32 = arith.constant 0 : i32
    %c0_i32_0 = arith.constant 0 : i32
    return %arg0, %c0_i32 : i32, i32
  }
}

</mosaic_0001>

<bundles_post_ra>
// kernel: mul.20
= control target key start
LH: loop header
LB: loop body
LE: loop exit
PB: predicated region body
PF: predicated region fallthrough
CT: control target
= control target key end

     0   :  { %s34_s0 = inlined_call_operand.vmem [shape: f32[2,1], index: 0, kind: input, shape index: {}]   ;;  %s35_s1 = inlined_call_operand.vmem [shape: f32[2,1], index: 1, kind: input, shape index: {}]   ;;  %s36_s2 = inlined_call_operand.vmem [shape: f32[2,1], index: 2, kind: output, shape index: {}]  }
   0x1   :  { %v3_v0 = vld [vmem:[%s34_s0] sm:$0x3] }
   0x2   :  { %v4_v1 = vld [vmem:[%s35_s1] sm:$0x3] }
   0x3   :  { %v7_v2 = vmul.f32 %v4_v1, %v3_v0 }
   0x5   :  { %9 = vst [vmem:[%s36_s2] sm:$0x3] %v7_v2 }

// kernel: kde_diff_forward.11
= control target key start
LH: loop header
LB: loop body
LE: loop exit
PB: predicated region body
PF: predicated region fallthrough
CT: control target
= control target key end

     0   :  { %s659_s15 = smov 0   ;;  %s661_s16 = smov 0   ;;  %s737_s0 = inlined_call_operand.vmem [shape: f32[2,200], index: 0, kind: input, shape index: {}]   ;;  %s738_s1 = inlined_call_operand.vmem [shape: f32[2,1], index: 1, kind: input, shape index: {}]   ;;  %s739_s2 = inlined_call_operand.vmem [shape: f32[2,1], index: 2, kind: input, shape index: {}]   ;;  %s740_s3 = inlined_call_operand.vmem [shape: f32[32,1], index: 3, kind: input, shape index: {}]   ;;  %s741_s4 = inlined_call_operand.vmem [shape: f32[2,32,2], index: 4, kind: output, shape index: {}]  }
   0x1   :  { %s663_s17 = smov 0  }
   0x2 LB: > { %s26_s18 = sadd.s32 1, %s624_s16  ;;  %p536_p0 = scmp.ge.s32.totalorder %s628_s17, 1  ;;  %s628_s17 = sphi %s663_s17, %s14_s17   ;;  %s624_s16 = sphi %s661_s16, %s743_s16   ;;  %s620_s15 = sphi %s659_s15, %s742_s15  }
   0x3   : > { %p28_p1 = scmp.ge.s32.totalorder %s26_s18, 2  ;;  %p187_p2 = scmp.lt.s32.totalorder %s628_s17, 3 }
   0x5   : > { %s745_s18 = smov (%p28_p1, %s26_s18), 0  ;;  %p188_p3 = pnand %p536_p0, %p187_p2 }
   0x6   : > { %v251_v0 = vld [vmem:[%s738_s1] sm:$0x3] (!%p188_p3)  ;;  %v630_v2 = vmov (!%p188_p3), 0   ;;  %v299_v4 = vld [vmem:[%s740_s3 + $0x8] sm:$0xff] (!%p188_p3)  ;;  %v300_v5 = vld [vmem:[%s740_s3 + $0x10] sm:$0xff] (!%p188_p3)  ;;  %p217_p4 = scmp.lt.s32.totalorder (!%p188_p3), %s620_s15, 0  ;;  %v244_v9 = vlaneseq (!%p188_p3) }
   0x7   : > { %191 = sbr.rel (%p188_p3) target bundleno = 337 (0x151), region = 36  ;;  %v298_v1 = vld [vmem:[%s740_s3] sm:$0xff] (!%p188_p3)  ;;  %572 = vset.pattern.permute.xlu0 (!%p188_p3), %v630_v2  ;;  %573 = vset.pattern.permute.xlu1 (!%p188_p3), %v630_v2  ;;  %v301_v6 = vld [vmem:[%s740_s3 + $0x18] sm:$0xff] (!%p188_p3)  ;;  %v631_v7 = vmov (!%p188_p3), 269488144   ;;  %vm370_vm2 = vcmask (!%p188_p3), 588800  }
   0x8   : > { %254 = vperm.xlu0 (!%p188_p3), %572, %v251_v0   ;;  %312 = vperm.xlu1 (!%p188_p3), %573, %v298_v1   ;;  %v265_v3 = vld [vmem:[%s739_s2] sm:$0x3] (!%p188_p3)  ;;  %v257_v8 = vunpack.c.l.s4 (!%p188_p3), %v631_v7  ;;  %v260_v11 = vshrl.u32 (!%p188_p3), %v244_v9, 7  ;;  %v632_v13 = vmov (!%p188_p3), 1983009808   ;;  %s243_s8 = smul.u32 (!%p188_p3), 200, %s620_s15 }
   0x9   : > { %v287_v14 = vunpack.c.l.s4 (!%p188_p3), %v632_v13  ;;  %v245_v15 = vand.u32 (!%p188_p3), 127, %v244_v9  ;;  %p228_p6 = scmp.lt.s32.totalorder (!%p188_p3), %s620_s15, 1  ;;  %vm237_vm3 = vcmask (!%p188_p3), 15360   ;;  %vm455_vm4 = vcmask (!%p188_p3), 7168  }
   0xa   : > { %v258_v10 = vunpack.c.0.s8 (!%p188_p3), %v257_v8  ;;  %v247_v19 = vstv (!%p188_p3), %s243_s8  ;;  %v304_v29 = vsub.s32 (!%p188_p3), 0, %v260_v11  ;;  %v389_v30 = vsub.s32 (!%p188_p3), 1, %v260_v11 }
   0xb   : > { %v288_v18 = vunpack.c.0.s8 (!%p188_p3), %v287_v14  ;;  %v246_v21 = vadd.s32 (!%p188_p3), 128, %v245_v15  ;;  %v248_v23 = vadd.s32 (!%p188_p3), %v247_v19, %v245_v15 }
   0xc   : > { %268 = vperm.xlu0 (!%p188_p3), %572, %v265_v3   ;;  %317 = vperm.xlu1 (!%p188_p3), %573, %v299_v4   ;;  %v261_v12 = vsub.s32 (!%p188_p3), %v258_v10, %v260_v11 }
   0xd   : > { %v291_v26 = vsub.s32 (!%p188_p3), %v288_v18, %v260_v11  ;;  %v249_v27 = vadd.s32 (!%p188_p3), %v247_v19, %v246_v21  ;;  %vm279_vm0 = vcmp.lt.s32.totalorder (!%p188_p3), %v248_v23, 200 }
   0xe   : > { %s218_s5 = scalar_select %p217_p4, %s620_s15, 0 }
   0xf   : > { %vm280_vm1 = vcmp.lt.s32.totalorder %v249_v27, 200  ;;  %s749_s15 = smov (!%p228_p6, %s620_s15), 1 }
  0x10   : > { %322 = vperm.xlu0 %572, %v300_v5   ;;  %327 = vperm.xlu1 %573, %v301_v6   ;;  %s537_s6 = sshll.u32 %s218_s5, 1  ;;  %s543_s12 = sshll.u32 %s749_s15, 5 }
  0x11   : > { %p220_p5 = scmp.lt.s32.totalorder %s537_s6, 1  ;;  %s232_s19 = scalar_lea.vmem %s741_s4, %s543_s12 }
  0x13   : > { %s747_s6 = smov (!%p220_p5, %s537_s6), 1 }
  0x14   : > { %s538_s7 = sshll.u32 %s747_s6, 1 }
  0x15   : > { %s223_s11 = scalar_lea.vmem %s737_s0, %s538_s7 }
  0x16   : > { %v250_v20 = vld [vmem:[%s223_s11] sm:$0xf] }
  0x87   : > { %v255_v16 = vpop.permute.xlu0 %254  ;;  %v313_v32 = vpop.permute.xlu1 %312 }
  0x88   : > { %v262_v17 = vrot.slane %v255_v16, %v261_v12 }
  0x8a   : > { %v264_v24 = vmul.f32 %v262_v17, %v250_v20 }
  0x8b   : > { %v269_v22 = vpop.permute.xlu0 %268  ;;  %v318_v48 = vpop.permute.xlu1 %317 }
  0x8c   : > { %v276_v25 = vrot.slane %v269_v22, %v261_v12 }
  0x8e   : > { %v278_v28 = vadd.f32 %v276_v25, %v264_v24 }
  0x8f   : > { %v323_v42 = vpop.permute.xlu0 %322  ;;  %v328_v5 = vpop.permute.xlu1 %327 }
  0x90   : > { %v292_v31 = vrot.slane %v278_v28, %v291_v26 }
  0x92   : > { %v293_v33 = vcombine.high %v292_v31, %v292_v31  ;;  %v296_v34 = vsel %vm279_vm0, %v292_v31, 1e+09 }
  0x93   : > { %v305_v35 = vrot.slane %v296_v34, %v304_v29  ;;  %v390_v36 = vrot.slane %v296_v34, %v389_v30 }
  0x94   : > { %v297_v37 = vsel %vm280_vm1, %v293_v33, 1e+09 }
  0x95   : > { %v309_v38 = vrot.slane %v297_v37, %v304_v29  ;;  %v394_v39 = vrot.slane %v297_v37, %v389_v30  ;;  %v330_v40 = vsub.f32 %v305_v35, %v313_v32  ;;  %v395_v41 = vsub.f32 %v390_v36, %v313_v32 }
  0x96   : > { %v334_v43 = vsub.f32 %v305_v35, %v323_v42  ;;  %v399_v55 = vsub.f32 %v390_v36, %v323_v42  ;;  %v332_v59 = vsub.f32 %v305_v35, %v318_v48  ;;  %v397_v0 = vsub.f32 %v390_v36, %v318_v48 }
  0x97   : > { %v331_v44 = vsub.f32 %v309_v38, %v313_v32  ;;  %v338_v45 = vmul.f32 %v330_v40, %v330_v40  ;;  %v396_v46 = vsub.f32 %v394_v39, %v313_v32  ;;  %v403_v47 = vmul.f32 %v395_v41, %v395_v41 }
  0x98   : > { %v335_v49 = vsub.f32 %v309_v38, %v323_v42  ;;  %v342_v50 = vmul.f32 %v334_v43, %v334_v43  ;;  %v400_v51 = vsub.f32 %v394_v39, %v323_v42  ;;  %v333_v4 = vsub.f32 %v309_v38, %v318_v48 }
  0x99   : > { %v339_v52 = vmul.f32 %v331_v44, %v331_v44  ;;  %v346_v53 = vsub.f32 0.0, %v338_v45  ;;  %v404_v54 = vmul.f32 %v396_v46, %v396_v46  ;;  %v411_v56 = vsub.f32 0.0, %v403_v47 }
  0x9a   : > { %v343_v57 = vmul.f32 %v335_v49, %v335_v49  ;;  %v408_v58 = vmul.f32 %v400_v51, %v400_v51  ;;  %v350_v61 = vsub.f32 0.0, %v342_v50  ;;  %v407_v8 = vmul.f32 %v399_v55, %v399_v55 }
  0x9b   : > { %v347_v60 = vsub.f32 0.0, %v339_v52  ;;  %v354_v62 = vmul.f32 1.442695, %v346_v53  ;;  %v412_v2 = vsub.f32 0.0, %v404_v54  ;;  %v419_v6 = vmul.f32 1.442695, %v411_v56 }
  0x9c   : > { %v351_v63 = vsub.f32 0.0, %v343_v57  ;;  %v416_v3 = vsub.f32 0.0, %v408_v58  ;;  %v340_v9 = vmul.f32 %v332_v59, %v332_v59  ;;  %v362_v10 = vmul.f32 1.442695, %v350_v61 }
  0x9d   : > { %v356_v1 = vmul.f32 1.442695, %v347_v60  ;;  %v341_v11 = vmul.f32 %v333_v4, %v333_v4  ;;  %v398_v12 = vsub.f32 %v394_v39, %v318_v48  ;;  %v336_v14 = vsub.f32 %v305_v35, %v328_v5 }
  0x9e   : > { %v364_v7 = vmul.f32 1.442695, %v351_v63  ;;  %v348_v13 = vsub.f32 0.0, %v340_v9  ;;  %v337_v15 = vsub.f32 %v309_v38, %v328_v5  ;;  %v421_v16 = vmul.f32 1.442695, %v412_v2 }
  0x9f   : > { %574 = vpow2.f32 %v356_v1  ;;  %v429_v17 = vmul.f32 1.442695, %v416_v3  ;;  %v349_v18 = vsub.f32 0.0, %v341_v11  ;;  %v406_v19 = vmul.f32 %v398_v12, %v398_v12 }
  0xa0   : > { %576 = vpow2.f32 %v354_v62  ;;  %v405_v20 = vmul.f32 %v397_v0, %v397_v0  ;;  %v344_v21 = vmul.f32 %v336_v14, %v336_v14  ;;  %v345_v22 = vmul.f32 %v337_v15, %v337_v15 }
  0xa1   : > { %578 = vpow2.f32 %v364_v7  ;;  %v358_v23 = vmul.f32 1.442695, %v348_v13  ;;  %v360_v24 = vmul.f32 1.442695, %v349_v18  ;;  %v414_v25 = vsub.f32 0.0, %v406_v19 }
  0xa2   : > { %580 = vpow2.f32 %v419_v6  ;;  %v352_v26 = vsub.f32 0.0, %v344_v21  ;;  %v353_v27 = vsub.f32 0.0, %v345_v22  ;;  %v401_v28 = vsub.f32 %v390_v36, %v328_v5 }
  0xa3   : > { %582 = vpow2.f32 %v362_v10  ;;  %v415_v29 = vsub.f32 0.0, %v407_v8  ;;  %v425_v30 = vmul.f32 1.442695, %v414_v25  ;;  %v402_v31 = vsub.f32 %v394_v39, %v328_v5 }
  0xa4   : > { %584 = vpow2.f32 %v421_v16  ;;  %v413_v32 = vsub.f32 0.0, %v405_v20  ;;  %v368_v33 = vmul.f32 1.442695, %v353_v27  ;;  %v366_v34 = vmul.f32 1.442695, %v352_v26 }
  0xa5   : > { %586 = vpow2.f32 %v360_v24  ;;  %v409_v35 = vmul.f32 %v401_v28, %v401_v28  ;;  %v410_v37 = vmul.f32 %v402_v31, %v402_v31  ;;  %v427_v40 = vmul.f32 1.442695, %v415_v29 }
  0xa6   : > { %588 = vpow2.f32 %v358_v23  ;;  %v423_v43 = vmul.f32 1.442695, %v413_v32  ;;  %v633_v11 = vmov 0.0  }
  0xa7   : > { %590 = vpow2.f32 %v429_v17  ;;  %v418_v41 = vsub.f32 0.0, %v410_v37  ;;  %v417_v39 = vsub.f32 0.0, %v409_v35  ;;  %238 = vst.msk [vmem:[%s232_s19] sm:$0xff] %vm237_vm3, %v633_v11  ;;  %239 = vst.msk [vmem:[%s232_s19 + $0x8] sm:$0xff] %vm237_vm3, %v633_v11 }
  0xa8   : > { %592 = vpow2.f32 %v425_v30  ;;  %240 = vst.msk [vmem:[%s232_s19 + $0x10] sm:$0xff] %vm237_vm3, %v633_v11  ;;  %241 = vst.msk [vmem:[%s232_s19 + $0x18] sm:$0xff] %vm237_vm3, %v633_v11 }
  0xa9   : > { %v575_v38 = vpop.eup %574  ;;  %594 = vpow2.f32 %v368_v33  ;;  %v433_v44 = vmul.f32 1.442695, %v418_v41  ;;  %v431_v51 = vmul.f32 1.442695, %v417_v39 }
  0xaa   : > { %v577_v42 = vpop.eup %576  ;;  %v371_v36 = vsel %vm370_vm2, %v575_v38, 0.0  ;;  %596 = vpow2.f32 %v366_v34 }
  0xab   : > { %v372_v45 = vadd.f32 %v577_v42, %v371_v36  ;;  %v579_v46 = vpop.eup %578  ;;  %598 = vpow2.f32 %v427_v40 }
  0xac   : > { %v581_v47 = vpop.eup %580  ;;  %v379_v48 = vsel %vm370_vm2, %v579_v46, 0.0  ;;  %600 = vpow2.f32 %v433_v44 }
  0xad   : > { %373 = vadd.xlane.f32.xlu0 %v372_v45  ;;  %v583_v49 = vpop.eup %582  ;;  %602 = vpow2.f32 %v423_v43 }
  0xae   : > { %v585_v50 = vpop.eup %584  ;;  %v380_v52 = vadd.f32 %v583_v49, %v379_v48  ;;  %604 = vpow2.f32 %v431_v51  ;;  %v451_v15 = vld [vmem:[%s232_s19] sm:$0xff]  ;;  %v452_v21 = vld [vmem:[%s232_s19 + $0x8] sm:$0xff] }
  0xaf   : > { %v587_v53 = vpop.eup %586  ;;  %v435_v59 = vsel %vm370_vm2, %v585_v50, 0.0  ;;  %v453_v20 = vld [vmem:[%s232_s19 + $0x10] sm:$0xff]  ;;  %v454_v28 = vld [vmem:[%s232_s19 + $0x18] sm:$0xff] }
  0xb0   : > { %v589_v54 = vpop.eup %588  ;;  %v375_v55 = vsel %vm370_vm2, %v587_v53, 0.0  ;;  %v436_v63 = vadd.f32 %v581_v47, %v435_v59 }
  0xb1   : > { %381 = vadd.xlane.f32.xlu0 %v380_v52  ;;  %v591_v56 = vpop.eup %590  ;;  %v376_v57 = vadd.f32 %v589_v54, %v375_v55 }
  0xb2   : > { %v593_v58 = vpop.eup %592  ;;  %v443_v2 = vsel %vm370_vm2, %v591_v56, 0.0 }
  0xb3   : > { %v595_v60 = vpop.eup %594  ;;  %377 = vadd.xlane.f32.xlu1 %v376_v57  ;;  %v439_v3 = vsel %vm370_vm2, %v593_v58, 0.0 }
  0xb4   : > { %v597_v61 = vpop.eup %596  ;;  %v383_v62 = vsel %vm370_vm2, %v595_v60, 0.0 }
  0xb5   : > { %v384_v0 = vadd.f32 %v597_v61, %v383_v62  ;;  %v599_v1 = vpop.eup %598 }
  0xb6   : > { %v601_v4 = vpop.eup %600  ;;  %v444_v6 = vadd.f32 %v599_v1, %v443_v2 }
  0xb7   : > { %437 = vadd.xlane.f32.xlu1 %v436_v63  ;;  %385 = vadd.xlane.f32.xlu0 %v384_v0  ;;  %v603_v5 = vpop.eup %602  ;;  %v447_v8 = vsel %vm370_vm2, %v601_v4, 0.0 }
  0xb8   : > { %v440_v7 = vadd.f32 %v603_v5, %v439_v3  ;;  %v605_v9 = vpop.eup %604 }
  0xb9   : > { %v448_v10 = vadd.f32 %v605_v9, %v447_v8 }
  0xbb   : > { %445 = vadd.xlane.f32.xlu1 %v444_v6  ;;  %441 = vadd.xlane.f32.xlu0 %v440_v7 }
  0xbf   : > { %449 = vadd.xlane.f32.xlu0 %v448_v10 }
 0x13a   : > { %v374_v12 = vpop.xlane.xlu0 %373 }
 0x13e   : > { %v382_v13 = vpop.xlane.xlu0 %381 }
 0x140   : > { %v378_v14 = vpop.xlane.xlu1 %377 }
 0x144   : > { %v438_v16 = vpop.xlane.xlu1 %437  ;;  %v386_v17 = vpop.xlane.xlu0 %385 }
 0x145   : > { %v456_v18 = vsel %vm455_vm4, %v374_v12, %v438_v16 }
 0x146   : > { %v460_v19 = vadd.f32 %v456_v18, %v451_v15 }
 0x148   : > { %465 = vst.msk [vmem:[%s232_s19] sm:$0xff] %vm237_vm3, %v460_v19  ;;  %v446_v22 = vpop.xlane.xlu1 %445  ;;  %v442_v23 = vpop.xlane.xlu0 %441 }
 0x149   : > { %v458_v24 = vsel %vm455_vm4, %v382_v13, %v446_v22  ;;  %v457_v25 = vsel %vm455_vm4, %v378_v14, %v442_v23 }
 0x14a   : > { %v462_v26 = vadd.f32 %v458_v24, %v453_v20  ;;  %v461_v27 = vadd.f32 %v457_v25, %v452_v21 }
 0x14c   : > { %467 = vst.msk [vmem:[%s232_s19 + $0x10] sm:$0xff] %vm237_vm3, %v462_v26  ;;  %466 = vst.msk [vmem:[%s232_s19 + $0x8] sm:$0xff] %vm237_vm3, %v461_v27  ;;  %v450_v29 = vpop.xlane.xlu0 %449 }
 0x14d   : > { %v459_v30 = vsel %vm455_vm4, %v386_v17, %v450_v29 }
 0x14e   : > { %v463_v31 = vadd.f32 %v459_v30, %v454_v28 }
 0x150   : > { %468 = vst.msk [vmem:[%s232_s19 + $0x18] sm:$0xff] %vm237_vm3, %v463_v31 }
 0x151 PF: > { %s14_s17 = sadd.s32 1, %s628_s17   ;;  %s742_s15 = smov %s624_s16 }
 0x152   : > { %p11_p7 = scmp.ge.s32.totalorder %s14_s17, 4   ;;  %s743_s16 = smov %s745_s18 }
 0x154   :  { %13 = sbr.rel (!%p11_p7) target bundleno = 2 (0x2), region = 70 }

// kernel: kde_diff_forward.8
= control target key start
LH: loop header
LB: loop body
LE: loop exit
PB: predicated region body
PF: predicated region fallthrough
CT: control target
= control target key end

     0   :  { %v164_v0 = vlaneseq  ;;  %v497_v10 = vmov 0   ;;  %s498_s7 = smov 113   ;;  %s500_s8 = smov 1   ;;  %vm223_vm0 = vcmask 924672   ;;  %vm199_vm1 = vcmask 1039360   ;;  %s647_s0 = inlined_call_operand.vmem [shape: f32[18,768], index: 0, kind: input, shape index: {}, may-alias: {0,1,2}]   ;;  %s648_s1 = inlined_call_operand.vmem [shape: f32[18,768], index: 1, kind: input, shape index: {}, may-alias: {0,1,2}]   ;;  %s649_s2 = inlined_call_operand.vmem [shape: f32[18,768], index: 2, kind: input, shape index: {}, may-alias: {0,1,2}]   ;;  %s650_s3 = inlined_call_operand.vmem [shape: f32[2,1], index: 3, kind: input, shape index: {}]   ;;  %s651_s4 = inlined_call_operand.vmem [shape: f32[2,256], index: 4, kind: input, shape index: {}]   ;;  %s652_s5 = inlined_call_operand.vmem [shape: f32[2,256], index: 5, kind: output, shape index: {}]  }
   0x1   :  { %v481_v1 = vld [vmem:[%s651_s4 + $0x1] ss:$2 sm:$0x3]  ;;  %v549_v3 = vld [vmem:[%s648_s1 + $0x10] sm:$0xff]  ;;  %v554_v4 = vld [vmem:[%s648_s1 + $0x18] sm:$0xff]  ;;  %496 = vset.pattern.permute.xlu0 %v497_v10  ;;  %s501_s15 = smov 15  }
   0x2   :  { %v544_v2 = vshrl.u32 %v164_v0, 7  ;;  %v559_v5 = vld [vmem:[%s648_s1 + $0x48] sm:$0xff]  ;;  %v162_v6 = vld [vmem:[%s651_s4] ss:$2 sm:$0x3]  ;;  %v574_v11 = vld [vmem:[%s649_s2 + $0x50] sm:$0xff] }
   0x3   :  { %v567_v7 = vld [vmem:[%s648_s1 + $0x40] sm:$0xff]  ;;  %s499_s4 = smov 127   ;;  %v476_v16 = vld [vmem:[%s648_s1 + $0x70] sm:$0xff]  ;;  %v477_v17 = vld [vmem:[%s648_s1 + $0x78] sm:$0xff]  ;;  %s502_s16 = smov 17   ;;  %v191_v21 = vrot.slane %v549_v3, 2 }
   0x4   :  { %v166_v8 = vsub.s32 0, %v544_v2  ;;  %v170_v9 = vsub.s32 1, %v544_v2  ;;  %84 = vst [vmem:[#allocation3 + $0x20] sm:$0xff] %v476_v16  ;;  %v480_v18 = vld [vmem:[%s649_s2 + $0x80] sm:$0xff]  ;;  %86 = vst [vmem:[#allocation3 + $0x28] sm:$0xff] %v477_v17  ;;  %v590_v19 = vld [vmem:[%s647_s0 + $0x8] sm:$0xff] }
   0x5   :  { %132 = vst [vmem:[#allocation4 + $0x10] sm:$0xff] %v480_v18  ;;  %s503_s1 = smov 111   ;;  %v190_v20 = vrot.slane %v590_v19, 2  ;;  %v192_v22 = vrot.slane %v554_v4, 2  ;;  %v364_v23 = vrot.slane %v567_v7, 6  ;;  %s504_s0 = smov 95  }
   0x6   :  { %v214_v12 = vrot.slane %v481_v1, %v166_v8  ;;  %v167_v13 = vrot.slane %v162_v6, %v166_v8  ;;  %v218_v14 = vrot.slane %v481_v1, %v170_v9  ;;  %v171_v15 = vrot.slane %v162_v6, %v170_v9  ;;  %v412_v24 = vld [vmem:[%s650_s3] sm:$0x3]  ;;  %s505_s20 = smov 126   ;;  %s506_s21 = smov 112  }
   0x7   :  { %s507_s3 = smov 110   ;;  %vm301_vm2 = vcmask 7168   ;;  %s508_s22 = smov 96   ;;  %vm334_vm3 = vcmask 121856   ;;  %v365_v55 = vrot.slane %v559_v5, 6  ;;  %v366_v59 = vrot.slane %v574_v11, 6 }
   0x8   :  { %219 = vrot.lane.b32.xlu0 %v214_v12, %s498_s7  ;;  %252 = vrot.lane.b32.xlu1 %v167_v13, %s499_s4  ;;  %vm386_vm4 = vcmask 138240   ;;  %s509_s23 = smov 94   ;;  %vm176_vm5 = vcmask 908288   ;;  %vm243_vm6 = vcmask 1031168   ;;  %vm275_vm7 = vcmask 916480  }
   0x9   :  { %vm321_vm8 = vcmask 900096   ;;  %vm354_vm9 = vcmask 785408   ;;  %vm373_vm10 = vcmask 777216   ;;  %vm403_vm11 = vcmask 769024  }
   0xb   :  { %v158_v61 = vld [vmem:[#allocation3 + $0x20] sm:$0x3]  ;;  %v159_v6 = vld [vmem:[#allocation3 + $0x28] sm:$0x3] }
   0xc   :  { %221 = vrot.lane.b32.xlu0 %v218_v14, %s498_s7  ;;  %254 = vrot.lane.b32.xlu1 %v171_v15, %s499_s4 }
  0x10   :  { %297 = vrot.lane.b32.xlu0 %v214_v12, %s500_s8  ;;  %299 = vrot.lane.b32.xlu1 %v218_v14, %s500_s8 }
  0x14   :  { %330 = vrot.lane.b32.xlu0 %v167_v13, %s501_s15  ;;  %332 = vrot.lane.b32.xlu1 %v171_v15, %s501_s15 }
  0x18   :  { %382 = vrot.lane.b32.xlu0 %v214_v12, %s502_s16  ;;  %384 = vrot.lane.b32.xlu1 %v218_v14, %s502_s16 }
  0x1c   :  { %172 = vrot.lane.b32.xlu0 %v167_v13, %s503_s1  ;;  %174 = vrot.lane.b32.xlu1 %v171_v15, %s503_s1 }
  0x20   :  { %193 = vrot.lane.b32.xlu0 %v190_v20, %s499_s4  ;;  %195 = vrot.lane.b32.xlu1 %v191_v21, %s499_s4 }
  0x24   :  { %197 = vrot.lane.b32.xlu0 %v192_v22, %s499_s4  ;;  %286 = vrot.lane.b32.xlu1 %v567_v7, %s503_s1 }
  0x28   :  { %288 = vrot.lane.b32.xlu0 %v559_v5, %s503_s1  ;;  %367 = vrot.lane.b32.xlu1 %v364_v23, %s504_s0 }
  0x2c   :  { %415 = vperm.xlu0 %496, %v412_v24  }
  0x7a   :  { %v220_v25 = vpop.permute.xlu0 %219  ;;  %v253_v26 = vpop.permute.xlu1 %252 }
  0x7b   :  { %v228_v27 = vmul.f32 %v590_v19, %v220_v25  ;;  %v260_v28 = vmul.f32 %v590_v19, %v253_v26 }
  0x7d   :  { %v234_v29 = vrot.slane %v228_v27, 4  ;;  %v266_v30 = vrot.slane %v260_v28, 6 }
  0x7e   :  { %v222_v31 = vpop.permute.xlu0 %221  ;;  %v255_v32 = vpop.permute.xlu1 %254 }
  0x7f   :  { %v230_v33 = vmul.f32 %v554_v4, %v222_v31  ;;  %v262_v34 = vmul.f32 %v554_v4, %v255_v32  ;;  %237 = vrot.lane.b32.xlu1 %v234_v29, %s505_s20  ;;  %269 = vrot.lane.b32.xlu0 %v266_v30, %s506_s21  ;;  %v224_v42 = vsel %vm223_vm0, %v220_v25, %v222_v31 }
  0x80   :  { %v229_v48 = vmul.f32 %v549_v3, %v224_v42  ;;  %v256_v50 = vsel %vm199_vm1, %v253_v26, %v255_v32 }
  0x81   :  { %v236_v35 = vrot.slane %v230_v33, 4  ;;  %v268_v36 = vrot.slane %v262_v34, 6  ;;  %v261_v53 = vmul.f32 %v549_v3, %v256_v50 }
  0x82   :  { %v298_v37 = vpop.permute.xlu0 %297  ;;  %v300_v38 = vpop.permute.xlu1 %299  ;;  %v235_v52 = vrot.slane %v229_v48, 4 }
  0x83   :  { %v306_v39 = vmul.f32 %v567_v7, %v298_v37  ;;  %v308_v40 = vmul.f32 %v574_v11, %v300_v38  ;;  %241 = vrot.lane.b32.xlu1 %v236_v35, %s505_s20  ;;  %273 = vrot.lane.b32.xlu0 %v268_v36, %s506_s21  ;;  %v302_v54 = vsel %vm301_vm2, %v298_v37, %v300_v38  ;;  %v267_v56 = vrot.slane %v261_v53, 6 }
  0x84   :  { %v307_v57 = vmul.f32 %v559_v5, %v302_v54 }
  0x85   :  { %v312_v41 = vrot.slane %v306_v39, 2  ;;  %v314_v45 = vrot.slane %v308_v40, 2 }
  0x86   :  { %v331_v43 = vpop.permute.xlu0 %330  ;;  %v333_v44 = vpop.permute.xlu1 %332  ;;  %v313_v62 = vrot.slane %v307_v57, 2 }
  0x87   :  { %v339_v46 = vmul.f32 %v567_v7, %v331_v43  ;;  %315 = vrot.lane.b32.xlu1 %v312_v41, %s507_s3  ;;  %v341_v47 = vmul.f32 %v574_v11, %v333_v44  ;;  %v335_v58 = vsel %vm334_vm3, %v331_v43, %v333_v44  ;;  %v161_v7 = vld [vmem:[#allocation4 + $0x10] sm:$0x3] }
  0x88   :  { %v340_v63 = vmul.f32 %v559_v5, %v335_v58 }
  0x89   :  { %v345_v49 = vrot.slane %v339_v46, 4  ;;  %v347_v51 = vrot.slane %v341_v47, 4 }
  0x8a   :  { %v383_v60 = vpop.permute.xlu0 %382  ;;  %v385_v0 = vpop.permute.xlu1 %384  ;;  %v346_v9 = vrot.slane %v340_v63, 4 }
  0x8b   :  { %319 = vrot.lane.b32.xlu1 %v314_v45, %s507_s3  ;;  %348 = vrot.lane.b32.xlu0 %v345_v49, %s508_s22  ;;  %v391_v1 = vmul.f32 %v383_v60, %v158_v61  ;;  %v387_v8 = vsel %vm386_vm4, %v383_v60, %v385_v0  ;;  %v393_v12 = vmul.f32 %v385_v0, %v161_v7  ;;  %v510_v7 = vmov 1983009808  }
  0x8c   :  { %v392_v10 = vmul.f32 %v387_v8, %v159_v6  ;;  %v429_v8 = vunpack.c.l.s4 %v510_v7 }
  0x8e   :  { %v173_v5 = vpop.permute.xlu0 %172  ;;  %v175_v11 = vpop.permute.xlu1 %174 }
  0x8f   :  { %352 = vrot.lane.b32.xlu1 %v347_v51, %s508_s22  ;;  %239 = vrot.lane.b32.xlu0 %v235_v52, %s505_s20  ;;  %v177_v26 = vsel %vm176_vm5, %v173_v5, %v175_v11  ;;  %v183_v27 = vmul.f32 %v554_v4, %v175_v11  ;;  %v181_v30 = vmul.f32 %v590_v19, %v173_v5 }
  0x90   :  { %v182_v31 = vmul.f32 %v549_v3, %v177_v26 }
  0x92   :  { %v194_v13 = vpop.permute.xlu0 %193  ;;  %v196_v14 = vpop.permute.xlu1 %195 }
  0x93   :  { %271 = vrot.lane.b32.xlu1 %v267_v56, %s506_s21  ;;  %369 = vrot.lane.b32.xlu0 %v365_v55, %s504_s0  ;;  %v200_v32 = vsel %vm199_vm1, %v194_v13, %v196_v14 }
  0x94   :  { %v205_v39 = vadd.f32 %v200_v32, %v181_v30 }
  0x96   :  { %v198_v15 = vpop.permute.xlu0 %197  ;;  %v287_v16 = vpop.permute.xlu1 %286 }
  0x97   :  { %371 = vrot.lane.b32.xlu1 %v366_v59, %s504_s0  ;;  %317 = vrot.lane.b32.xlu0 %v313_v62, %s507_s3  ;;  %v201_v33 = vsel %vm199_vm1, %v196_v14, %v198_v15  ;;  %v207_v34 = vadd.f32 %v198_v15, %v183_v27 }
  0x98   :  { %v206_v40 = vadd.f32 %v201_v33, %v182_v31 }
  0x9a   :  { %v289_v17 = vpop.permute.xlu0 %288  ;;  %v368_v18 = vpop.permute.xlu1 %367 }
  0x9b   :  { %350 = vrot.lane.b32.xlu1 %v346_v9, %s508_s22  ;;  %397 = vrot.lane.b32.xlu0 %v391_v1, %s509_s23  ;;  %v290_v48 = vsel %vm176_vm5, %v287_v16, %v289_v17 }
  0x9f   :  { %399 = vrot.lane.b32.xlu1 %v392_v10, %s509_s23  ;;  %401 = vrot.lane.b32.xlu0 %v393_v12, %s509_s23 }
  0xab   :  { %v629_v20 = vpop.permute.xlu0 %415 }
  0xf1   :  { %v238_v21 = vpop.permute.xlu1 %237  ;;  %v270_v22 = vpop.permute.xlu0 %269 }
  0xf5   :  { %v242_v23 = vpop.permute.xlu1 %241  ;;  %v274_v24 = vpop.permute.xlu0 %273 }
  0xf6   :  { %v251_v41 = vadd.f32 %v242_v23, %v207_v34 }
  0xf8   :  { %v283_v45 = vadd.f32 %v274_v24, %v251_v41 }
  0xf9   :  { %v316_v25 = vpop.permute.xlu1 %315 }
  0xfa   :  { %v296_v55 = vadd.f32 %v289_v17, %v283_v45 }
  0xfd   :  { %v320_v28 = vpop.permute.xlu1 %319  ;;  %v349_v29 = vpop.permute.xlu0 %348 }
 0x101   :  { %v353_v35 = vpop.permute.xlu1 %352  ;;  %v240_v36 = vpop.permute.xlu0 %239 }
 0x102   :  { %v244_v37 = vsel %vm243_vm6, %v238_v21, %v240_v36  ;;  %v245_v38 = vsel %vm243_vm6, %v240_v36, %v242_v23  ;;  %v430_v23 = vunpack.c.0.s8 %v429_v8 }
 0x103   :  { %v249_v4 = vadd.f32 %v244_v37, %v205_v39  ;;  %v250_v42 = vadd.f32 %v245_v38, %v206_v40 }
 0x105   :  { %v272_v43 = vpop.permute.xlu1 %271  ;;  %v370_v19 = vpop.permute.xlu0 %369 }
 0x106   :  { %v276_v44 = vsel %vm275_vm7, %v270_v22, %v272_v43  ;;  %v277_v3 = vsel %vm275_vm7, %v272_v43, %v274_v24  ;;  %v374_v9 = vsel %vm373_vm10, %v368_v18, %v370_v19 }
 0x107   :  { %v281_v46 = vadd.f32 %v276_v44, %v249_v4  ;;  %v282_v47 = vadd.f32 %v277_v3, %v250_v42 }
 0x109   :  { %v294_v49 = vadd.f32 %v287_v16, %v281_v46  ;;  %v372_v50 = vpop.permute.xlu1 %371  ;;  %v295_v51 = vadd.f32 %v290_v48, %v282_v47  ;;  %v318_v52 = vpop.permute.xlu0 %317 }
 0x10a   :  { %v322_v53 = vsel %vm321_vm8, %v316_v25, %v318_v52  ;;  %v323_v54 = vsel %vm321_vm8, %v318_v52, %v320_v28  ;;  %v375_v10 = vsel %vm373_vm10, %v370_v19, %v372_v50  ;;  %v433_v28 = vsub.s32 %v430_v23, %v544_v2 }
 0x10b   :  { %v327_v56 = vadd.f32 %v316_v25, %v294_v49  ;;  %v328_v57 = vadd.f32 %v322_v53, %v295_v51  ;;  %v329_v58 = vadd.f32 %v323_v54, %v296_v55 }
 0x10d   :  { %v351_v59 = vpop.permute.xlu1 %350  ;;  %v398_v60 = vpop.permute.xlu0 %397  ;;  %v360_v61 = vadd.f32 %v349_v29, %v327_v56 }
 0x10e   :  { %v355_v62 = vsel %vm354_vm9, %v349_v29, %v351_v59  ;;  %v356_v63 = vsel %vm354_vm9, %v351_v59, %v353_v35 }
 0x10f   :  { %v361_v0 = vadd.f32 %v355_v62, %v328_v57  ;;  %v362_v1 = vadd.f32 %v356_v63, %v329_v58  ;;  %v379_v6 = vadd.f32 %v368_v18, %v360_v61 }
 0x111   :  { %v409_v12 = vadd.f32 %v398_v60, %v379_v6  ;;  %v400_v5 = vpop.permute.xlu1 %399  ;;  %v380_v11 = vadd.f32 %v374_v9, %v361_v0  ;;  %v381_v13 = vadd.f32 %v375_v10, %v362_v1  ;;  %v402_v14 = vpop.permute.xlu0 %401 }
 0x112   :  { %v404_v15 = vsel %vm403_vm11, %v398_v60, %v400_v5  ;;  %v405_v16 = vsel %vm403_vm11, %v400_v5, %v402_v14 }
 0x113   :  { %v418_v17 = vadd.f32 %v629_v20, %v409_v12  ;;  %v410_v21 = vadd.f32 %v404_v15, %v380_v11  ;;  %v411_v22 = vadd.f32 %v405_v16, %v381_v13 }
 0x115   :  { %v419_v24 = vadd.f32 %v629_v20, %v410_v21  ;;  %v420_v25 = vadd.f32 %v629_v20, %v411_v22  ;;  %v421_v26 = vmax.f32 %v418_v17, 0.0 }
 0x117   :  { %v422_v27 = vmax.f32 %v419_v24, 0.0  ;;  %v423_v18 = vmax.f32 %v420_v25, 0.0 }
 0x119   :  { %v427_v29 = vcombine.low %v421_v26, %v422_v27  ;;  %v441_v31 = vrot.slane %v423_v18, %v433_v28 }
 0x11b   :  { %v434_v30 = vrot.slane %v427_v29, %v433_v28 }
 0x11d   :  { %v442_v32 = vcombine.low %v434_v30, %v441_v31 }
 0x11f   :  { %443 = vrot.lane.b32.xlu1 %v442_v32, %s502_s16 }
 0x191   :  { %v444_v33 = vpop.permute.xlu1 %443 }
 0x192   :  { %v445_v34 = vrot.slane %v444_v33, 2 }
 0x194   :  { %v446_v35 = vsel %vm386_vm4, %v444_v33, %v445_v34 }
 0x195   :  { %448 = vst [vmem:[%s652_s5] sm:$0xf] %v446_v35 }

// kernel: kde_diff_forward.9
= control target key start
LH: loop header
LB: loop body
LE: loop exit
PB: predicated region body
PF: predicated region fallthrough
CT: control target
= control target key end

     0   :  { %8 = vsyncpa [#allocation3], 0  ;;  %s383_s0 = inlined_call_operand.hbm [shape: f32[200,128], index: 0, kind: input, shape index: {}]   ;;  %s384_s1 = inlined_call_operand.hbm [shape: f32[128,2], index: 1, kind: input, shape index: {}]   ;;  %s385_s2 = inlined_call_operand.vmem [shape: f32[2,1], index: 2, kind: input, shape index: {}]   ;;  %s386_s3 = inlined_call_operand.vmem [shape: f32[2,200], index: 3, kind: output, shape index: {}]  }
   0x1   :  { %9 = vsyncpa [#allocation5], 0  ;;  %s309_s12 = smov [#allocation2]   ;;  %s261_s16 = scalar_lea.hbm %s383_s0, 3200 }
   0x2   :  { %s15_s13 = sshll.u32 %s309_s12, 4  ;;  %p262_p0 = scmp.ne.s32.totalorder %s383_s0, %s261_s16  ;;  %s16_s13 = int_to_ptr.vmem [resolvable:$true] %s15_s13 }
   0x3   :  { %p265_p1 = scmp.lt.u32.totalorder %s261_s16, %s383_s0 }
   0x5   :  { %p267_p2 = pnand %p265_p1, %p262_p0 }
   0x7   :  { %270 = shalt.err (!%p267_p2)
}
   0x8   :  { %s271_s21 = scalar_lea.vmem %s16_s13, 3200  ;;  %p276_p4 = scmp.lt.s32.totalorder %s16_s13, %s16_s13 }
   0x9   :  { %p272_p3 = scmp.ne.s32.totalorder %s16_s13, %s271_s21  ;;  %p277_p5 = scmp.lt.s32.totalorder %s271_s21, %s271_s21 }
   0xb   :  { %p278_p6 = por %p277_p5, %p276_p4 }
   0xd   :  { %p279_p7 = pnand %p278_p6, %p272_p3 }
   0xf   :  { %282 = shalt.err (!%p279_p7)
}
  0x10   :  { %s310_s22 = smov 128   ;;  %s311_s23 = smov 8  }
  0x11   :  { %21 = dma.hbm_to_vmem [thread:$0]  %s383_s0, 3200, %s16_s13, [#allocation3], %s310_s22, %s310_s22, %s311_s23  }
  0x12   :  { %s312_s26 = smov [#allocation4]   ;;  %s283_s30 = scalar_lea.hbm %s384_s1, 2048 }
  0x13   :  { %s27_s27 = sshll.u32 %s312_s26, 4  ;;  %p284_p8 = scmp.ne.s32.totalorder %s384_s1, %s283_s30  ;;  %s28_s27 = int_to_ptr.vmem [resolvable:$true] %s27_s27 }
  0x14   :  { %p287_p9 = scmp.lt.u32.totalorder %s283_s30, %s384_s1 }
  0x16   :  { %p289_p10 = pnand %p287_p9, %p284_p8 }
  0x18   :  { %292 = shalt.err (!%p289_p10)
}
  0x19   :  { %s293_s8 = scalar_lea.vmem %s28_s27, 2048  ;;  %p298_p12 = scmp.lt.s32.totalorder %s28_s27, %s28_s27 }
  0x1a   :  { %p294_p11 = scmp.ne.s32.totalorder %s28_s27, %s293_s8  ;;  %p299_p13 = scmp.lt.s32.totalorder %s293_s8, %s293_s8 }
  0x1c   :  { %p300_p0 = por %p299_p13, %p298_p12 }
  0x1e   :  { %p301_p1 = pnand %p300_p0, %p294_p11 }
  0x20   :  { %304 = shalt.err (!%p301_p1)
}
  0x21   :  { %33 = dma.hbm_to_vmem [thread:$0]  %s384_s1, 2048, %s28_s27, [#allocation5], %s310_s22, %s310_s22, %s311_s23  }
  0x22   :  { %305 = dma.done.wait [#allocation3], 3200  }
  0x23   :  { %306 = vsyncadd [#allocation3], 4294964096 }
  0x24   :  { %307 = dma.done.wait [#allocation5], 2048  }
  0x25   :  { %308 = vsyncadd [#allocation5], 4294965248  ;;  %v313_v0 = vmov 0.0|0.0   ;;  %v314_v1 = vmov 0.0   ;;  %v42_v2 = vld [vmem:[#allocation4] sm:$0xff]  ;;  %v43_v3 = vld [vmem:[#allocation4 + $0x8] sm:$0xff]  ;;  %v200_v60 = vlaneseq }
  0x26   :  { %215 = vmatprep.subr.bf16.mxu0 %v313_v0  ;;  %185 = vmatprep.mubr.f32.mxu0 %v314_v1  ;;  %v58_v4 = vld [vmem:[#allocation2] sm:$0xff]  ;;  %v59_v5 = vld [vmem:[#allocation2 + $0x8] sm:$0xff]  ;;  %v315_v6 = vmov 0   ;;  %v44_v8 = vld [vmem:[#allocation4 + $0x10] sm:$0xff]  ;;  %v316_v58 = vmov 1983009808  }
  0x27   :  { %89 = vxpose.xlu0.b32.start [1/16] (narrow) %v42_v2, 8  ;;  %259 = vset.pattern.permute.xlu1 %v315_v6  ;;  %v216_v7 = vpack.c.bf16 %v59_v5, %v58_v4  ;;  %v60_v9 = vld [vmem:[#allocation2 + $0x10] sm:$0xff]  ;;  %v61_v10 = vld [vmem:[#allocation2 + $0x18] sm:$0xff]  ;;  %v45_v11 = vld [vmem:[#allocation4 + $0x18] sm:$0xff]  ;;  %v198_v59 = vunpack.c.l.s4 %v316_v58  ;;  %v201_v2 = vshrl.u32 %v200_v60, 7  ;;  %vm205_vm0 = vcmask 1041408  }
  0x28   :  { %v219_v12 = vpack.c.bf16 %v61_v10, %v60_v9  ;;  %v83_v13 = vld [vmem:[%s385_s2] sm:$0x3]  ;;  %v46_v14 = vld [vmem:[#allocation4 + $0x20] sm:$0xff]  ;;  %v47_v17 = vld [vmem:[#allocation4 + $0x28] sm:$0xff]  ;;  %vm206_vm1 = vcmask 584706  }
  0x29   :  { %217 = vmatpush1.bf16.xpose.msra.mxu0 %v216_v7  ;;  %86 = vperm.xlu1 %259, %v83_v13   ;;  %v62_v15 = vld [vmem:[#allocation2 + $0x20] sm:$0xff]  ;;  %v63_v16 = vld [vmem:[#allocation2 + $0x28] sm:$0xff]  ;;  %v48_v19 = vld [vmem:[#allocation4 + $0x30] sm:$0xff]  ;;  %v199_v63 = vunpack.c.0.s8 %v198_v59 }
  0x2a   :  { %218 = vmatprep.subr.bf16.mxu0 %v313_v0  ;;  %v222_v18 = vpack.c.bf16 %v63_v16, %v62_v15  ;;  %v64_v20 = vld [vmem:[#allocation2 + $0x30] sm:$0xff]  ;;  %v65_v21 = vld [vmem:[#allocation2 + $0x38] sm:$0xff]  ;;  %v49_v22 = vld [vmem:[#allocation4 + $0x38] sm:$0xff] }
  0x2b   :  { %90 = vxpose.xlu0.b32.cont [2/16] (narrow) %v43_v3, 8  ;;  %v225_v23 = vpack.c.bf16 %v65_v21, %v64_v20  ;;  %v50_v24 = vld [vmem:[#allocation4 + $0x40] sm:$0xff]  ;;  %v66_v25 = vld [vmem:[#allocation2 + $0x40] sm:$0xff]  ;;  %v51_v27 = vld [vmem:[#allocation4 + $0x48] sm:$0xff] }
  0x2c   :  { %v67_v26 = vld [vmem:[#allocation2 + $0x48] sm:$0xff]  ;;  %v52_v29 = vld [vmem:[#allocation4 + $0x50] sm:$0xff]  ;;  %v68_v30 = vld [vmem:[#allocation2 + $0x50] sm:$0xff] }
  0x2d   :  { %v228_v28 = vpack.c.bf16 %v67_v26, %v66_v25  ;;  %v69_v31 = vld [vmem:[#allocation2 + $0x58] sm:$0xff]  ;;  %v53_v32 = vld [vmem:[#allocation4 + $0x58] sm:$0xff]  ;;  %v54_v34 = vld [vmem:[#allocation4 + $0x60] sm:$0xff] }
  0x2e   :  { %v231_v33 = vpack.c.bf16 %v69_v31, %v68_v30  ;;  %v70_v35 = vld [vmem:[#allocation2 + $0x60] sm:$0xff]  ;;  %v71_v36 = vld [vmem:[#allocation2 + $0x68] sm:$0xff]  ;;  %v55_v37 = vld [vmem:[#allocation4 + $0x68] sm:$0xff] }
  0x2f   :  { %91 = vxpose.xlu0.b32.cont [3/16] (narrow) %v44_v8, 8  ;;  %v234_v38 = vpack.c.bf16 %v71_v36, %v70_v35  ;;  %v56_v39 = vld [vmem:[#allocation4 + $0x70] sm:$0xff]  ;;  %v72_v40 = vld [vmem:[#allocation2 + $0x70] sm:$0xff]  ;;  %v57_v42 = vld [vmem:[#allocation4 + $0x78] sm:$0xff]  ;;  %v202_v8 = vsub.s32 %v199_v63, %v201_v2 }
  0x30   :  { %v73_v41 = vld [vmem:[#allocation2 + $0x78] sm:$0xff]  ;;  %v74_v44 = vld [vmem:[#allocation2 + $0x80] sm:$0xff]  ;;  %v75_v45 = vld [vmem:[#allocation2 + $0x88] sm:$0xff] }
  0x31   :  { %220 = vmatpush1.bf16.xpose.msra.mxu0 %v219_v12  ;;  %v237_v43 = vpack.c.bf16 %v73_v41, %v72_v40  ;;  %v240_v46 = vpack.c.bf16 %v75_v45, %v74_v44  ;;  %v76_v47 = vld [vmem:[#allocation2 + $0x90] sm:$0xff]  ;;  %v77_v48 = vld [vmem:[#allocation2 + $0x98] sm:$0xff]  ;;  %v78_v50 = vld [vmem:[#allocation2 + $0xa0] sm:$0xff] }
  0x32   :  { %221 = vmatprep.subr.bf16.mxu0 %v313_v0  ;;  %v243_v49 = vpack.c.bf16 %v77_v48, %v76_v47  ;;  %v79_v51 = vld [vmem:[#allocation2 + $0xa8] sm:$0xff]  ;;  %v80_v53 = vld [vmem:[#allocation2 + $0xb0] sm:$0xff]  ;;  %v81_v54 = vld [vmem:[#allocation2 + $0xb8] sm:$0xff] }
  0x33   :  { %92 = vxpose.xlu0.b32.cont [4/16] (narrow) %v45_v11, 8  ;;  %v246_v52 = vpack.c.bf16 %v79_v51, %v78_v50  ;;  %v249_v55 = vpack.c.bf16 %v81_v54, %v80_v53  ;;  %v82_v56 = vld [vmem:[#allocation2 + $0xc0] sm:$0xff]  ;;  %vm207_vm2 = vmor %vm206_vm1, %vm205_vm0 }
  0x37   :  { %93 = vxpose.xlu0.b32.cont [5/16] (narrow) %v46_v14, 8 }
  0x39   :  { %223 = vmatpush1.bf16.xpose.msra.mxu0 %v222_v18 }
  0x3a   :  { %224 = vmatprep.subr.bf16.mxu0 %v313_v0 }
  0x3b   :  { %94 = vxpose.xlu0.b32.cont [6/16] (narrow) %v47_v17, 8 }
  0x3f   :  { %95 = vxpose.xlu0.b32.cont [7/16] (narrow) %v48_v19, 8 }
  0x41   :  { %226 = vmatpush1.bf16.xpose.msra.mxu0 %v225_v23 }
  0x42   :  { %227 = vmatprep.subr.bf16.mxu0 %v313_v0 }
  0x43   :  { %96 = vxpose.xlu0.b32.cont [8/16] (narrow) %v49_v22, 8 }
  0x47   :  { %97 = vxpose.xlu0.b32.cont [9/16] (narrow) %v50_v24, 8 }
  0x49   :  { %229 = vmatpush1.bf16.xpose.msra.mxu0 %v228_v28 }
  0x4a   :  { %230 = vmatprep.subr.bf16.mxu0 %v313_v0 }
  0x4b   :  { %98 = vxpose.xlu0.b32.cont [10/16] (narrow) %v51_v27, 8 }
  0x4f   :  { %99 = vxpose.xlu0.b32.cont [11/16] (narrow) %v52_v29, 8 }
  0x51   :  { %232 = vmatpush1.bf16.xpose.msra.mxu0 %v231_v33 }
  0x52   :  { %233 = vmatprep.subr.bf16.mxu0 %v313_v0 }
  0x53   :  { %100 = vxpose.xlu0.b32.cont [12/16] (narrow) %v53_v32, 8 }
  0x57   :  { %101 = vxpose.xlu0.b32.cont [13/16] (narrow) %v54_v34, 8 }
  0x59   :  { %235 = vmatpush1.bf16.xpose.msra.mxu0 %v234_v38 }
  0x5a   :  { %236 = vmatprep.subr.bf16.mxu0 %v313_v0 }
  0x5b   :  { %102 = vxpose.xlu0.b32.cont [14/16] (narrow) %v55_v37, 8 }
  0x5f   :  { %103 = vxpose.xlu0.b32.cont [15/16] (narrow) %v56_v39, 8 }
  0x61   :  { %238 = vmatpush1.bf16.xpose.msra.mxu0 %v237_v43 }
  0x62   :  { %239 = vmatprep.subr.bf16.mxu0 %v313_v0 }
  0x63   :  { %104 = vxpose.xlu0.b32.end [16/16] (narrow) %v57_v42, 8 }
  0x69   :  { %241 = vmatpush1.bf16.xpose.msra.mxu0 %v240_v46 }
  0x6a   :  { %242 = vmatprep.subr.bf16.mxu0 %v313_v0 }
  0x71   :  { %244 = vmatpush1.bf16.xpose.msra.mxu0 %v243_v49 }
  0x72   :  { %245 = vmatprep.subr.bf16.mxu0 %v313_v0 }
  0x79   :  { %247 = vmatpush1.bf16.xpose.msra.mxu0 %v246_v52 }
  0x7a   :  { %248 = vmatprep.subr.bf16.mxu0 %v313_v0 }
  0x81   :  { %250 = vmatpush1.bf16.xpose.msra.mxu0 %v249_v55 }
  0x82   :  { %169 = vmatprep.subr.mxu0 %v314_v1 }
  0x89   :  { %170 = vmatpush1.xpose.msra.mxu0 %v82_v56 }
  0x8c   :  { %260 = vset.pattern.permute.xlu0 %v315_v6 }
  0xa7   :  { %v105_v57 = vpop.trf.xlu0 }
  0xa8   :  { %186 = vmatmul.mubr.f32.vlgmr.msra.gmra.mrb[0].mxu0 %v105_v57  ;;  %v87_v61 = vpop.permute.xlu1 %86 }
 0x17b   :  { %v187_v62 = vpop.f32.mrb[0].mxu0 }
 0x17c   :  { %v188_v0 = vadd.f32 %v187_v62, %v87_v61  ;;  %v189_v3 = vpop.f32.mrb[1].mxu0 }
 0x17d   :  { %v190_v4 = vadd.f32 %v189_v3, %v87_v61 }
 0x17e   :  { %v192_v5 = vmax.f32 %v188_v0, 0.0 }
 0x17f   :  { %v193_v7 = vmax.f32 %v190_v4, 0.0 }
 0x181   :  { %v196_v1 = vcombine.low %v192_v5, %v193_v7 }
 0x183   :  { %v203_v6 = vrot.slane %v196_v1, %v202_v8 }
 0x185   :  { %208 = vst.msk [vmem:[%s386_s3] sm:$0xf] %vm207_vm2, %v203_v6 }
 0x186   :  { %213 = vsyncpa [#allocation3], 1 }
 0x187   :  { %214 = vsyncpa [#allocation5], 1 }

// kernel: kde_diff_forward.7
= control target key start
LH: loop header
LB: loop body
LE: loop exit
PB: predicated region body
PF: predicated region fallthrough
CT: control target
= control target key end

     0   :  { %s741_s9 = smov 0   ;;  %s743_s10 = smov 0   ;;  %s1029_s0 = inlined_call_operand.vmem [shape: f32[128,256], index: 0, kind: input, shape index: {}]   ;;  %s1030_s1 = inlined_call_operand.vmem [shape: f32[18,128], index: 1, kind: input, shape index: {}]   ;;  %s1031_s2 = inlined_call_operand.vmem [shape: f32[18,768], index: 2, kind: output, shape index: {}]  }
   0x1   :  { %s745_s11 = smov 0  }
   0x2 LB: > { %s752_s12 = sadd.s32 4294967295, %s721_s11   ;;  %s754_s13 = sadd.s32 1, %s721_s11   ;;  %s721_s11 = sphi %s745_s11, %s1035_s11   ;;  %s717_s10 = sphi %s743_s10, %s1034_s10   ;;  %s713_s9 = sphi %s741_s9, %s1033_s9  }
   0x3   : > { %s73_s14 = ssub.s32 %s721_s11, %s754_s13  ;;  %s76_s15 = sadd.s32 1, %s717_s10 }
   0x4   : > { %p74_p0 = scmp.eq.s32.totalorder %s73_s14, 0  ;;  %p86_p1 = scmp.ne.s32.totalorder %s717_s10, %s713_s9 }
   0x5   : > { %p87_p2 = scmp.eq.s32.totalorder %s752_s12, 2  ;;  %p560_p3 = scmp.ge.s32.totalorder %s721_s11, 1 }
   0x6   : > { %s761_s16 = scalar_select %p74_p0, %s717_s10, %s76_s15  }
   0x7   : > { %p763_p4 = por %p87_p2, %p86_p1  ;;  %p133_p5 = scmp.lt.s32.totalorder %s721_s11, 4 }
   0x9   : > { %p134_p6 = pnand %p560_p3, %p133_p5 }
   0xa   : > { %s156_s18 = sand.u32 (!%p134_p6), 1, %s713_s9   ;;  %p176_p7 = scmp.eq.s32.totalorder (!%p134_p6), %s752_s12, 0 }
   0xb   : > { %137 = sbr.rel (%p134_p6) target bundleno = 543 (0x21f), region = 28 }
   0xc   : > { %s671_s19 = smul.u32 (!%p134_p6), 48, %s156_s18  ;;  %p178_p8 = por (!%p134_p6), %p176_p7, %p87_p2 }
   0xe   : > { %s768_s20 = scalar_lea.vmem (!%p134_p6), [#allocation2], %s671_s19 }
  0x12   : > { %181 = sbr.rel (!%p178_p8) target bundleno = 25 (0x19), region = 32  ;;  %v723_v0 = vmov (%p178_p8), 0.0  }
  0x13   : > { %182 = vst [vmem:[%s768_s20] sm:$0xff] (%p178_p8), %v723_v0  ;;  %183 = vst [vmem:[%s768_s20 + $0x8] sm:$0xff] (%p178_p8), %v723_v0 }
  0x14   : > { %184 = vst [vmem:[%s768_s20 + $0x10] sm:$0xff] (%p178_p8), %v723_v0  ;;  %185 = vst [vmem:[%s768_s20 + $0x18] sm:$0xff] (%p178_p8), %v723_v0 }
  0x15   : > { %186 = vst [vmem:[%s768_s20 + $0x20] sm:$0x3] (%p178_p8), %v723_v0  ;;  %187 = vst [vmem:[%s768_s20 + $0x28] sm:$0x3] (%p178_p8), %v723_v0 }
  0x19 PF: > { %p188_p9 = scmp.gt.s32.totalorder %s752_s12, 0  ;;  %p189_p10 = scmp.lt.s32.totalorder %s752_s12, 1 }
  0x1b   : > { %p190_p11 = pnand %p189_p10, %p188_p9 }
  0x1c   : > { %v198_v1 = vld [vmem:[%s1029_s0 + $0x8] sm:$0xff] (!%p190_p11)  ;;  %v200_v2 = vld [vmem:[%s1029_s0 + $0x18] sm:$0xff] (!%p190_p11)  ;;  %v197_v3 = vld [vmem:[%s1029_s0] sm:$0xff] (!%p190_p11)  ;;  %v724_v8 = vmov (!%p190_p11), 0.0  }
  0x1d   : > { %193 = sbr.rel (%p190_p11) target bundleno = 281 (0x119), region = 36  ;;  %v575_v4 = vpack.c.bf16 (!%p190_p11), %v200_v2, %v198_v1  ;;  %v199_v5 = vld [vmem:[%s1029_s0 + $0x10] sm:$0xff] (!%p190_p11)  ;;  %v202_v6 = vld [vmem:[%s1029_s0 + $0x28] sm:$0xff] (!%p190_p11)  ;;  %v204_v7 = vld [vmem:[%s1029_s0 + $0x38] sm:$0xff] (!%p190_p11)  ;;  %299 = vmatprep.mubr.f32.mxu1 (!%p190_p11), %v724_v8  ;;  %293 = vmatprep.mubr.f32.mxu0 (!%p190_p11), %v724_v8 }
  0x1e   : > { %v577_v9 = vpack.c.bf16 (!%p190_p11), %v199_v5, %v197_v3  ;;  %v579_v10 = vpack.c.bf16 (!%p190_p11), %v204_v7, %v202_v6  ;;  %v201_v11 = vld [vmem:[%s1029_s0 + $0x20] sm:$0xff] (!%p190_p11)  ;;  %v203_v12 = vld [vmem:[%s1029_s0 + $0x30] sm:$0xff] (!%p190_p11)  ;;  %v206_v13 = vld [vmem:[%s1029_s0 + $0x48] sm:$0xff] (!%p190_p11) }
  0x1f   : > { %639 = vmatprep.subr.bf16.mxu1 (!%p190_p11), %v575_v4  ;;  %576 = vmatprep.subr.bf16.mxu0 (!%p190_p11), %v575_v4  ;;  %v208_v14 = vld [vmem:[%s1029_s0 + $0x58] sm:$0xff] (!%p190_p11)  ;;  %v581_v15 = vpack.c.bf16 (!%p190_p11), %v203_v12, %v201_v11  ;;  %v205_v17 = vld [vmem:[%s1029_s0 + $0x40] sm:$0xff] (!%p190_p11)  ;;  %v207_v18 = vld [vmem:[%s1029_s0 + $0x50] sm:$0xff] (!%p190_p11) }
  0x20   : > { %647 = vmatpush1.bf16.msra.mxu1 (!%p190_p11), %v577_v9  ;;  %578 = vmatpush1.bf16.msra.mxu0 (!%p190_p11), %v577_v9  ;;  %v583_v16 = vpack.c.bf16 (!%p190_p11), %v208_v14, %v206_v13  ;;  %v210_v19 = vld [vmem:[%s1029_s0 + $0x68] sm:$0xff] (!%p190_p11)  ;;  %v212_v20 = vld [vmem:[%s1029_s0 + $0x78] sm:$0xff] (!%p190_p11)  ;;  %v585_v21 = vpack.c.bf16 (!%p190_p11), %v207_v18, %v205_v17  ;;  %v209_v23 = vld [vmem:[%s1029_s0 + $0x60] sm:$0xff] (!%p190_p11) }
  0x21   : > { %640 = vmatprep.subr.bf16.mxu1 (!%p190_p11), %v579_v10  ;;  %580 = vmatprep.subr.bf16.mxu0 (!%p190_p11), %v579_v10  ;;  %v587_v22 = vpack.c.bf16 (!%p190_p11), %v212_v20, %v210_v19  ;;  %v211_v24 = vld [vmem:[%s1029_s0 + $0x70] sm:$0xff] (!%p190_p11)  ;;  %v214_v25 = vld [vmem:[%s1029_s0 + $0x88] sm:$0xff] (!%p190_p11)  ;;  %v216_v26 = vld [vmem:[%s1029_s0 + $0x98] sm:$0xff] (!%p190_p11) }
  0x22   : > { %v589_v27 = vpack.c.bf16 (!%p190_p11), %v211_v24, %v209_v23  ;;  %v591_v28 = vpack.c.bf16 (!%p190_p11), %v216_v26, %v214_v25  ;;  %v213_v29 = vld [vmem:[%s1029_s0 + $0x80] sm:$0xff] (!%p190_p11)  ;;  %v215_v30 = vld [vmem:[%s1029_s0 + $0x90] sm:$0xff] (!%p190_p11)  ;;  %v218_v31 = vld [vmem:[%s1029_s0 + $0xa8] sm:$0xff] (!%p190_p11) }
  0x23   : > { %v220_v32 = vld [vmem:[%s1029_s0 + $0xb8] sm:$0xff] (!%p190_p11)  ;;  %v593_v33 = vpack.c.bf16 (!%p190_p11), %v215_v30, %v213_v29  ;;  %v217_v35 = vld [vmem:[%s1029_s0 + $0xa0] sm:$0xff] (!%p190_p11)  ;;  %v219_v36 = vld [vmem:[%s1029_s0 + $0xb0] sm:$0xff] (!%p190_p11) }
  0x24   : > { %648 = vmatpush1.bf16.msra.mxu1 %v581_v15  ;;  %582 = vmatpush1.bf16.msra.mxu0 %v581_v15  ;;  %v595_v34 = vpack.c.bf16 %v220_v32, %v218_v31  ;;  %v222_v37 = vld [vmem:[%s1029_s0 + $0xc8] sm:$0xff]  ;;  %v224_v38 = vld [vmem:[%s1029_s0 + $0xd8] sm:$0xff]  ;;  %v597_v39 = vpack.c.bf16 %v219_v36, %v217_v35  ;;  %v221_v41 = vld [vmem:[%s1029_s0 + $0xc0] sm:$0xff] }
  0x25   : > { %641 = vmatprep.subr.bf16.mxu1 %v583_v16  ;;  %584 = vmatprep.subr.bf16.mxu0 %v583_v16  ;;  %v599_v40 = vpack.c.bf16 %v224_v38, %v222_v37  ;;  %v223_v42 = vld [vmem:[%s1029_s0 + $0xd0] sm:$0xff]  ;;  %v226_v43 = vld [vmem:[%s1029_s0 + $0xe8] sm:$0xff]  ;;  %v228_v44 = vld [vmem:[%s1029_s0 + $0xf8] sm:$0xff] }
  0x26   : > { %v601_v45 = vpack.c.bf16 %v223_v42, %v221_v41  ;;  %v603_v46 = vpack.c.bf16 %v228_v44, %v226_v43  ;;  %v225_v47 = vld [vmem:[%s1029_s0 + $0xe0] sm:$0xff]  ;;  %v227_v48 = vld [vmem:[%s1029_s0 + $0xf0] sm:$0xff]  ;;  %v195_v50 = vld [vmem:[%s1030_s1 + $0x8] sm:$0xff] }
  0x27   : > { %v605_v49 = vpack.c.bf16 %v227_v48, %v225_v47  ;;  %v194_v51 = vld [vmem:[%s1030_s1] sm:$0xff]  ;;  %v196_v52 = vld [vmem:[%s1030_s1 + $0x10] sm:$0x3] }
  0x28   : > { %649 = vmatpush1.bf16.msra.mxu1 %v585_v21  ;;  %586 = vmatpush1.bf16.msra.mxu0 %v585_v21 }
  0x29   : > { %642 = vmatprep.subr.bf16.mxu1 %v587_v22  ;;  %588 = vmatprep.subr.bf16.mxu0 %v587_v22 }
  0x2c   : > { %650 = vmatpush1.bf16.msra.mxu1 %v589_v27  ;;  %590 = vmatpush1.bf16.msra.mxu0 %v589_v27 }
  0x2d   : > { %643 = vmatprep.subr.bf16.mxu1 %v591_v28  ;;  %592 = vmatprep.subr.bf16.mxu0 %v591_v28 }
  0x30   : > { %651 = vmatpush1.bf16.msra.mxu1 %v593_v33  ;;  %594 = vmatpush1.bf16.msra.mxu0 %v593_v33 }
  0x31   : > { %644 = vmatprep.subr.bf16.mxu1 %v595_v34  ;;  %596 = vmatprep.subr.bf16.mxu0 %v595_v34 }
  0x34   : > { %652 = vmatpush1.bf16.msra.mxu1 %v597_v39  ;;  %598 = vmatpush1.bf16.msra.mxu0 %v597_v39 }
  0x35   : > { %645 = vmatprep.subr.bf16.mxu1 %v599_v40  ;;  %600 = vmatprep.subr.bf16.mxu0 %v599_v40 }
  0x38   : > { %653 = vmatpush1.bf16.msra.mxu1 %v601_v45  ;;  %602 = vmatpush1.bf16.msra.mxu0 %v601_v45 }
  0x39   : > { %646 = vmatprep.subr.bf16.mxu1 %v603_v46  ;;  %604 = vmatprep.subr.bf16.mxu0 %v603_v46 }
  0x3c   : > { %654 = vmatpush1.bf16.msra.mxu1 %v605_v49  ;;  %606 = vmatpush1.bf16.msra.mxu0 %v605_v49 }
  0x3f   : > { %300 = vmatmul.mubr.f32.vlgmr.msra.gmra.mrb[0].mxu1 %v195_v50  ;;  %294 = vmatmul.mubr.f32.vlgmr.msra.gmra.mrb[0].mxu0 %v194_v51 }
  0x40   : > { %305 = vmatprep.mubr.f32.mxu1 %v724_v8 }
  0x43   : > { %306 = vmatmul.mubr.f32.gmra.mrb[2].mxu1 %v196_v52 }
 0x112   : > { %v301_v53 = vpop.f32.mrb[0].mxu1  ;;  %v295_v54 = vpop.f32.mrb[0].mxu0 }
 0x113   : > { %314 = vst [vmem:[%s768_s20 + $0x10] sm:$0xff] %v301_v53  ;;  %v303_v55 = vpop.f32.mrb[1].mxu1  ;;  %312 = vst [vmem:[%s768_s20] sm:$0xff] %v295_v54  ;;  %v297_v56 = vpop.f32.mrb[1].mxu0 }
 0x114   : > { %315 = vst [vmem:[%s768_s20 + $0x18] sm:$0xff] %v303_v55  ;;  %313 = vst [vmem:[%s768_s20 + $0x8] sm:$0xff] %v297_v56 }
 0x116   : > { %v307_v57 = vpop.f32.mrb[2].mxu1 }
 0x117   : > { %316 = vst [vmem:[%s768_s20 + $0x20] sm:$0x3] %v307_v57  ;;  %v309_v58 = vpop.f32.mrb[3].mxu1 }
 0x118   : > { %317 = vst [vmem:[%s768_s20 + $0x28] sm:$0x3] %v309_v58 }
 0x119 PF: > { %p569_p12 = scmp.ne.s32.totalorder %s752_s12, 1 }
 0x11a   : > { %v326_v59 = vld [vmem:[%s1029_s0 + $0x8] sm:$0xff] (!%p569_p12)  ;;  %v328_v60 = vld [vmem:[%s1029_s0 + $0x18] sm:$0xff] (!%p569_p12)  ;;  %v325_v61 = vld [vmem:[%s1029_s0] sm:$0xff] (!%p569_p12)  ;;  %v725_v2 = vmov (!%p569_p12), 0.0  }
 0x11b   : > { %321 = sbr.rel (%p569_p12) target bundleno = 535 (0x217), region = 40  ;;  %v607_v62 = vpack.c.bf16 (!%p569_p12), %v328_v60, %v326_v59  ;;  %v327_v63 = vld [vmem:[%s1029_s0 + $0x10] sm:$0xff] (!%p569_p12)  ;;  %v330_v0 = vld [vmem:[%s1029_s0 + $0x28] sm:$0xff] (!%p569_p12)  ;;  %v332_v1 = vld [vmem:[%s1029_s0 + $0x38] sm:$0xff] (!%p569_p12)  ;;  %427 = vmatprep.mubr.f32.mxu1 (!%p569_p12), %v725_v2  ;;  %421 = vmatprep.mubr.f32.mxu0 (!%p569_p12), %v725_v2 }
 0x11c   : > { %v609_v3 = vpack.c.bf16 (!%p569_p12), %v327_v63, %v325_v61  ;;  %v611_v4 = vpack.c.bf16 (!%p569_p12), %v332_v1, %v330_v0  ;;  %v329_v5 = vld [vmem:[%s1029_s0 + $0x20] sm:$0xff] (!%p569_p12)  ;;  %v331_v6 = vld [vmem:[%s1029_s0 + $0x30] sm:$0xff] (!%p569_p12)  ;;  %v334_v7 = vld [vmem:[%s1029_s0 + $0x48] sm:$0xff] (!%p569_p12) }
 0x11d   : > { %655 = vmatprep.subr.bf16.mxu1 (!%p569_p12), %v607_v62  ;;  %608 = vmatprep.subr.bf16.mxu0 (!%p569_p12), %v607_v62  ;;  %v336_v8 = vld [vmem:[%s1029_s0 + $0x58] sm:$0xff] (!%p569_p12)  ;;  %v613_v9 = vpack.c.bf16 (!%p569_p12), %v331_v6, %v329_v5  ;;  %v333_v11 = vld [vmem:[%s1029_s0 + $0x40] sm:$0xff] (!%p569_p12)  ;;  %v335_v12 = vld [vmem:[%s1029_s0 + $0x50] sm:$0xff] (!%p569_p12) }
 0x11e   : > { %663 = vmatpush1.bf16.msra.mxu1 (!%p569_p12), %v609_v3  ;;  %610 = vmatpush1.bf16.msra.mxu0 (!%p569_p12), %v609_v3  ;;  %v615_v10 = vpack.c.bf16 (!%p569_p12), %v336_v8, %v334_v7  ;;  %v338_v13 = vld [vmem:[%s1029_s0 + $0x68] sm:$0xff] (!%p569_p12)  ;;  %v340_v14 = vld [vmem:[%s1029_s0 + $0x78] sm:$0xff] (!%p569_p12)  ;;  %v617_v15 = vpack.c.bf16 (!%p569_p12), %v335_v12, %v333_v11  ;;  %v337_v17 = vld [vmem:[%s1029_s0 + $0x60] sm:$0xff] (!%p569_p12) }
 0x11f   : > { %656 = vmatprep.subr.bf16.mxu1 (!%p569_p12), %v611_v4  ;;  %612 = vmatprep.subr.bf16.mxu0 (!%p569_p12), %v611_v4  ;;  %v619_v16 = vpack.c.bf16 (!%p569_p12), %v340_v14, %v338_v13  ;;  %v339_v18 = vld [vmem:[%s1029_s0 + $0x70] sm:$0xff] (!%p569_p12)  ;;  %v342_v19 = vld [vmem:[%s1029_s0 + $0x88] sm:$0xff] (!%p569_p12)  ;;  %v344_v20 = vld [vmem:[%s1029_s0 + $0x98] sm:$0xff] (!%p569_p12) }
 0x120   : > { %v621_v21 = vpack.c.bf16 (!%p569_p12), %v339_v18, %v337_v17  ;;  %v623_v22 = vpack.c.bf16 (!%p569_p12), %v344_v20, %v342_v19  ;;  %v341_v23 = vld [vmem:[%s1029_s0 + $0x80] sm:$0xff] (!%p569_p12)  ;;  %v343_v24 = vld [vmem:[%s1029_s0 + $0x90] sm:$0xff] (!%p569_p12)  ;;  %v346_v25 = vld [vmem:[%s1029_s0 + $0xa8] sm:$0xff] (!%p569_p12) }
 0x121   : > { %v348_v26 = vld [vmem:[%s1029_s0 + $0xb8] sm:$0xff] (!%p569_p12)  ;;  %v625_v27 = vpack.c.bf16 (!%p569_p12), %v343_v24, %v341_v23  ;;  %v345_v29 = vld [vmem:[%s1029_s0 + $0xa0] sm:$0xff] (!%p569_p12)  ;;  %v347_v30 = vld [vmem:[%s1029_s0 + $0xb0] sm:$0xff] (!%p569_p12) }
 0x122   : > { %664 = vmatpush1.bf16.msra.mxu1 %v613_v9  ;;  %614 = vmatpush1.bf16.msra.mxu0 %v613_v9  ;;  %v627_v28 = vpack.c.bf16 %v348_v26, %v346_v25  ;;  %v350_v31 = vld [vmem:[%s1029_s0 + $0xc8] sm:$0xff]  ;;  %v352_v32 = vld [vmem:[%s1029_s0 + $0xd8] sm:$0xff]  ;;  %v629_v33 = vpack.c.bf16 %v347_v30, %v345_v29  ;;  %v349_v35 = vld [vmem:[%s1029_s0 + $0xc0] sm:$0xff] }
 0x123   : > { %657 = vmatprep.subr.bf16.mxu1 %v615_v10  ;;  %616 = vmatprep.subr.bf16.mxu0 %v615_v10  ;;  %v631_v34 = vpack.c.bf16 %v352_v32, %v350_v31  ;;  %v351_v36 = vld [vmem:[%s1029_s0 + $0xd0] sm:$0xff]  ;;  %v354_v37 = vld [vmem:[%s1029_s0 + $0xe8] sm:$0xff]  ;;  %v356_v38 = vld [vmem:[%s1029_s0 + $0xf8] sm:$0xff] }
 0x124   : > { %v633_v39 = vpack.c.bf16 %v351_v36, %v349_v35  ;;  %v635_v40 = vpack.c.bf16 %v356_v38, %v354_v37  ;;  %v353_v41 = vld [vmem:[%s1029_s0 + $0xe0] sm:$0xff]  ;;  %v355_v42 = vld [vmem:[%s1029_s0 + $0xf0] sm:$0xff]  ;;  %v323_v44 = vld [vmem:[%s1030_s1 + $0x8] sm:$0xff] }
 0x125   : > { %v637_v43 = vpack.c.bf16 %v355_v42, %v353_v41  ;;  %v322_v45 = vld [vmem:[%s1030_s1] sm:$0xff]  ;;  %v324_v46 = vld [vmem:[%s1030_s1 + $0x10] sm:$0x3] }
 0x126   : > { %665 = vmatpush1.bf16.msra.mxu1 %v617_v15  ;;  %618 = vmatpush1.bf16.msra.mxu0 %v617_v15 }
 0x127   : > { %658 = vmatprep.subr.bf16.mxu1 %v619_v16  ;;  %620 = vmatprep.subr.bf16.mxu0 %v619_v16 }
 0x12a   : > { %666 = vmatpush1.bf16.msra.mxu1 %v621_v21  ;;  %622 = vmatpush1.bf16.msra.mxu0 %v621_v21 }
 0x12b   : > { %659 = vmatprep.subr.bf16.mxu1 %v623_v22  ;;  %624 = vmatprep.subr.bf16.mxu0 %v623_v22 }
 0x12e   : > { %667 = vmatpush1.bf16.msra.mxu1 %v625_v27  ;;  %626 = vmatpush1.bf16.msra.mxu0 %v625_v27 }
 0x12f   : > { %660 = vmatprep.subr.bf16.mxu1 %v627_v28  ;;  %628 = vmatprep.subr.bf16.mxu0 %v627_v28 }
 0x132   : > { %668 = vmatpush1.bf16.msra.mxu1 %v629_v33  ;;  %630 = vmatpush1.bf16.msra.mxu0 %v629_v33 }
 0x133   : > { %661 = vmatprep.subr.bf16.mxu1 %v631_v34  ;;  %632 = vmatprep.subr.bf16.mxu0 %v631_v34 }
 0x136   : > { %669 = vmatpush1.bf16.msra.mxu1 %v633_v39  ;;  %634 = vmatpush1.bf16.msra.mxu0 %v633_v39 }
 0x137   : > { %662 = vmatprep.subr.bf16.mxu1 %v635_v40  ;;  %636 = vmatprep.subr.bf16.mxu0 %v635_v40 }
 0x13a   : > { %670 = vmatpush1.bf16.msra.mxu1 %v637_v43  ;;  %638 = vmatpush1.bf16.msra.mxu0 %v637_v43 }
 0x13d   : > { %428 = vmatmul.mubr.f32.vlgmr.msra.gmra.mrb[0].mxu1 %v323_v44  ;;  %422 = vmatmul.mubr.f32.vlgmr.msra.gmra.mrb[0].mxu0 %v322_v45 }
 0x13e   : > { %433 = vmatprep.mubr.f32.mxu1 %v725_v2 }
 0x141   : > { %434 = vmatmul.mubr.f32.gmra.mrb[2].mxu1 %v324_v46 }
 0x210   : > { %v429_v47 = vpop.f32.mrb[0].mxu1  ;;  %v423_v48 = vpop.f32.mrb[0].mxu0 }
 0x211   : > { %453 = vst [vmem:[%s768_s20 + $0x10] sm:$0xff] %v429_v47  ;;  %v431_v49 = vpop.f32.mrb[1].mxu1  ;;  %451 = vst [vmem:[%s768_s20] sm:$0xff] %v423_v48  ;;  %v425_v50 = vpop.f32.mrb[1].mxu0 }
 0x212   : > { %454 = vst [vmem:[%s768_s20 + $0x18] sm:$0xff] %v431_v49  ;;  %452 = vst [vmem:[%s768_s20 + $0x8] sm:$0xff] %v425_v50 }
 0x214   : > { %v435_v51 = vpop.f32.mrb[2].mxu1 }
 0x215   : > { %455 = vst [vmem:[%s768_s20 + $0x20] sm:$0x3] %v435_v51  ;;  %v437_v52 = vpop.f32.mrb[3].mxu1 }
 0x216   : > { %456 = vst [vmem:[%s768_s20 + $0x28] sm:$0x3] %v437_v52 }
 0x217 PF: > { %463 = sbr.rel (!%p763_p4) target bundleno = 543 (0x21f), region = 44  ;;  %s574_s29 = sshll.u32 (%p763_p4), %s752_s12, 4 }
 0x218   : > { %v479_v53 = vld [vmem:[%s768_s20] sm:$0xff] (%p763_p4)  ;;  %v483_v55 = vld [vmem:[%s768_s20 + $0x10] sm:$0xff] (%p763_p4)  ;;  %s466_s4 = scalar_lea.vmem (%p763_p4), %s1031_s2, %s574_s29 }
 0x219   : > { %v481_v54 = vld [vmem:[%s768_s20 + $0x8] sm:$0xff] (%p763_p4)  ;;  %v485_v56 = vld [vmem:[%s768_s20 + $0x18] sm:$0xff] (%p763_p4)  ;;  %480 = vst [vmem:[%s466_s4] sm:$0xff] (%p763_p4), %v479_v53  ;;  %484 = vst [vmem:[%s466_s4 + $0x30] sm:$0xff] (%p763_p4), %v483_v55 }
 0x21a   : > { %482 = vst [vmem:[%s466_s4 + $0x8] sm:$0xff] (%p763_p4), %v481_v54  ;;  %486 = vst [vmem:[%s466_s4 + $0x38] sm:$0xff] (%p763_p4), %v485_v56 }
 0x21c   : > { %v487_v57 = vld [vmem:[%s768_s20 + $0x20] sm:$0xff] (%p763_p4) }
 0x21d   : > { %v489_v58 = vld [vmem:[%s768_s20 + $0x28] sm:$0xff] (%p763_p4)  ;;  %488 = vst [vmem:[%s466_s4 + $0x60] sm:$0xff] (%p763_p4), %v487_v57 }
 0x21e   : > { %490 = vst [vmem:[%s466_s4 + $0x68] sm:$0xff] %v489_v58 }
 0x21f PF: > { %p9_p13 = scmp.ge.s32.totalorder %s754_s13, 5   ;;  %s1033_s9 = smov %s717_s10 }
 0x220   : > { %s1034_s10 = smov %s761_s16  ;;  %s1035_s11 = smov %s754_s13 }
 0x221   :  { %11 = sbr.rel (!%p9_p13) target bundleno = 2 (0x2), region = 93 }

// kernel: kde_diff_forward.10
= control target key start
LH: loop header
LB: loop body
LE: loop exit
PB: predicated region body
PF: predicated region fallthrough
CT: control target
= control target key end

     0   :  { %s651_s15 = smov 0   ;;  %s653_s16 = smov 0   ;;  %s721_s0 = inlined_call_operand.vmem [shape: f32[2,256], index: 0, kind: input, shape index: {}]   ;;  %s722_s1 = inlined_call_operand.vmem [shape: f32[2,1], index: 1, kind: input, shape index: {}]   ;;  %s723_s2 = inlined_call_operand.vmem [shape: f32[2,1], index: 2, kind: input, shape index: {}]   ;;  %s724_s3 = inlined_call_operand.vmem [shape: f32[32,1], index: 3, kind: input, shape index: {}]   ;;  %s725_s4 = inlined_call_operand.vmem [shape: f32[2,32,2], index: 4, kind: output, shape index: {}]  }
   0x1   :  { %s655_s17 = smov 0  }
   0x2 LB: > { %s26_s18 = sadd.s32 1, %s616_s16  ;;  %p527_p0 = scmp.ge.s32.totalorder %s620_s17, 1  ;;  %s620_s17 = sphi %s655_s17, %s14_s17   ;;  %s616_s16 = sphi %s653_s16, %s727_s16   ;;  %s612_s15 = sphi %s651_s15, %s726_s15  }
   0x3   : > { %p28_p1 = scmp.ge.s32.totalorder %s26_s18, 2  ;;  %p187_p2 = scmp.lt.s32.totalorder %s620_s17, 3 }
   0x5   : > { %s729_s18 = smov (%p28_p1, %s26_s18), 0  ;;  %p188_p3 = pnand %p527_p0, %p187_p2 }
   0x6   : > { %v251_v0 = vld [vmem:[%s722_s1] sm:$0x3] (!%p188_p3)  ;;  %v622_v2 = vmov (!%p188_p3), 0   ;;  %v299_v4 = vld [vmem:[%s724_s3 + $0x8] sm:$0xff] (!%p188_p3)  ;;  %v300_v5 = vld [vmem:[%s724_s3 + $0x10] sm:$0xff] (!%p188_p3)  ;;  %p217_p4 = scmp.lt.s32.totalorder (!%p188_p3), %s612_s15, 0  ;;  %v244_v9 = vlaneseq (!%p188_p3) }
   0x7   : > { %191 = sbr.rel (%p188_p3) target bundleno = 335 (0x14f), region = 36  ;;  %v298_v1 = vld [vmem:[%s724_s3] sm:$0xff] (!%p188_p3)  ;;  %564 = vset.pattern.permute.xlu0 (!%p188_p3), %v622_v2  ;;  %565 = vset.pattern.permute.xlu1 (!%p188_p3), %v622_v2  ;;  %v301_v6 = vld [vmem:[%s724_s3 + $0x18] sm:$0xff] (!%p188_p3)  ;;  %v623_v7 = vmov (!%p188_p3), 269488144   ;;  %s532_s8 = sshll.u32 (!%p188_p3), %s612_s15, 8 }
   0x8   : > { %254 = vperm.xlu0 (!%p188_p3), %564, %v251_v0   ;;  %312 = vperm.xlu1 (!%p188_p3), %565, %v298_v1   ;;  %v265_v3 = vld [vmem:[%s723_s2] sm:$0x3] (!%p188_p3)  ;;  %v257_v8 = vunpack.c.l.s4 (!%p188_p3), %v623_v7  ;;  %v260_v11 = vshrl.u32 (!%p188_p3), %v244_v9, 7  ;;  %v624_v13 = vmov (!%p188_p3), 1983009808   ;;  %v245_v15 = vand.u32 (!%p188_p3), 127, %v244_v9 }
   0x9   : > { %v287_v14 = vunpack.c.l.s4 (!%p188_p3), %v624_v13  ;;  %v247_v19 = vstv (!%p188_p3), %s532_s8  ;;  %p228_p6 = scmp.lt.s32.totalorder (!%p188_p3), %s612_s15, 1  ;;  %vm237_vm2 = vcmask (!%p188_p3), 15360   ;;  %vm446_vm3 = vcmask (!%p188_p3), 7168  }
   0xa   : > { %v258_v10 = vunpack.c.0.s8 (!%p188_p3), %v257_v8  ;;  %v246_v21 = vadd.s32 (!%p188_p3), 128, %v245_v15  ;;  %v248_v23 = vadd.s32 (!%p188_p3), %v247_v19, %v245_v15  ;;  %v304_v29 = vsub.s32 (!%p188_p3), 0, %v260_v11 }
   0xb   : > { %v288_v18 = vunpack.c.0.s8 (!%p188_p3), %v287_v14  ;;  %v384_v30 = vsub.s32 (!%p188_p3), 1, %v260_v11 }
   0xc   : > { %268 = vperm.xlu0 (!%p188_p3), %564, %v265_v3   ;;  %317 = vperm.xlu1 (!%p188_p3), %565, %v299_v4   ;;  %v261_v12 = vsub.s32 (!%p188_p3), %v258_v10, %v260_v11  ;;  %v249_v27 = vadd.s32 (!%p188_p3), %v247_v19, %v246_v21  ;;  %vm279_vm0 = vcmp.lt.s32.totalorder (!%p188_p3), %v248_v23, 256 }
   0xd   : > { %v291_v26 = vsub.s32 (!%p188_p3), %v288_v18, %v260_v11 }
   0xe   : > { %s218_s5 = scalar_select %p217_p4, %s612_s15, 0  ;;  %vm280_vm1 = vcmp.lt.s32.totalorder %v249_v27, 256 }
   0xf   : > { %s733_s15 = smov (!%p228_p6, %s612_s15), 1 }
  0x10   : > { %322 = vperm.xlu0 %564, %v300_v5   ;;  %327 = vperm.xlu1 %565, %v301_v6   ;;  %s528_s6 = sshll.u32 %s218_s5, 1  ;;  %s535_s12 = sshll.u32 %s733_s15, 5 }
  0x11   : > { %p220_p5 = scmp.lt.s32.totalorder %s528_s6, 1  ;;  %s232_s19 = scalar_lea.vmem %s725_s4, %s535_s12 }
  0x13   : > { %s731_s6 = smov (!%p220_p5, %s528_s6), 1 }
  0x14   : > { %s529_s7 = sshll.u32 %s731_s6, 1 }
  0x15   : > { %s223_s11 = scalar_lea.vmem %s721_s0, %s529_s7 }
  0x16   : > { %v250_v20 = vld [vmem:[%s223_s11] sm:$0xf] }
  0x87   : > { %v255_v16 = vpop.permute.xlu0 %254  ;;  %v313_v32 = vpop.permute.xlu1 %312 }
  0x88   : > { %v262_v17 = vrot.slane %v255_v16, %v261_v12 }
  0x8a   : > { %v264_v24 = vmul.f32 %v262_v17, %v250_v20 }
  0x8b   : > { %v269_v22 = vpop.permute.xlu0 %268  ;;  %v318_v47 = vpop.permute.xlu1 %317 }
  0x8c   : > { %v276_v25 = vrot.slane %v269_v22, %v261_v12 }
  0x8e   : > { %v278_v28 = vadd.f32 %v276_v25, %v264_v24 }
  0x8f   : > { %v323_v42 = vpop.permute.xlu0 %322  ;;  %v328_v3 = vpop.permute.xlu1 %327 }
  0x90   : > { %v292_v31 = vrot.slane %v278_v28, %v291_v26 }
  0x92   : > { %v293_v33 = vcombine.high %v292_v31, %v292_v31  ;;  %v296_v34 = vsel %vm279_vm0, %v292_v31, 1e+09 }
  0x93   : > { %v305_v35 = vrot.slane %v296_v34, %v304_v29  ;;  %v385_v36 = vrot.slane %v296_v34, %v384_v30 }
  0x94   : > { %v297_v37 = vsel %vm280_vm1, %v293_v33, 1e+09 }
  0x95   : > { %v309_v38 = vrot.slane %v297_v37, %v304_v29  ;;  %v389_v39 = vrot.slane %v297_v37, %v384_v30  ;;  %v330_v40 = vsub.f32 %v305_v35, %v313_v32  ;;  %v390_v41 = vsub.f32 %v385_v36, %v313_v32 }
  0x96   : > { %v334_v43 = vsub.f32 %v305_v35, %v323_v42  ;;  %v332_v56 = vsub.f32 %v305_v35, %v318_v47  ;;  %v394_v61 = vsub.f32 %v385_v36, %v323_v42  ;;  %v392_v62 = vsub.f32 %v385_v36, %v318_v47 }
  0x97   : > { %v331_v44 = vsub.f32 %v309_v38, %v313_v32  ;;  %v338_v45 = vmul.f32 %v330_v40, %v330_v40  ;;  %v391_v46 = vsub.f32 %v389_v39, %v313_v32  ;;  %v335_v48 = vsub.f32 %v309_v38, %v323_v42 }
  0x98   : > { %v342_v49 = vmul.f32 %v334_v43, %v334_v43  ;;  %v398_v52 = vmul.f32 %v390_v41, %v390_v41  ;;  %v395_v53 = vsub.f32 %v389_v39, %v323_v42  ;;  %v333_v2 = vsub.f32 %v309_v38, %v318_v47 }
  0x99   : > { %v339_v50 = vmul.f32 %v331_v44, %v331_v44  ;;  %v346_v51 = vsub.f32 0.0, %v338_v45  ;;  %v399_v54 = vmul.f32 %v391_v46, %v391_v46  ;;  %v343_v55 = vmul.f32 %v335_v48, %v335_v48 }
  0x9a   : > { %v350_v59 = vsub.f32 0.0, %v342_v49  ;;  %v406_v0 = vsub.f32 0.0, %v398_v52  ;;  %v403_v1 = vmul.f32 %v395_v53, %v395_v53  ;;  %v340_v6 = vmul.f32 %v332_v56, %v332_v56 }
  0x9b   : > { %v347_v57 = vsub.f32 0.0, %v339_v50  ;;  %v354_v58 = vmul.f32 1.442695, %v346_v51  ;;  %v351_v60 = vsub.f32 0.0, %v343_v55  ;;  %v407_v4 = vsub.f32 0.0, %v399_v54 }
  0x9c   : > { %v362_v7 = vmul.f32 1.442695, %v350_v59  ;;  %v341_v8 = vmul.f32 %v333_v2, %v333_v2  ;;  %v393_v9 = vsub.f32 %v389_v39, %v318_v47  ;;  %v402_v10 = vmul.f32 %v394_v61, %v394_v61 }
  0x9d   : > { %v356_v63 = vmul.f32 1.442695, %v347_v57  ;;  %566 = vpow2.f32 %v354_v58  ;;  %v364_v5 = vmul.f32 1.442695, %v351_v60  ;;  %v348_v11 = vsub.f32 0.0, %v340_v6 }
  0x9e   : > { %v336_v12 = vsub.f32 %v305_v35, %v328_v3  ;;  %v337_v13 = vsub.f32 %v309_v38, %v328_v3  ;;  %v414_v14 = vmul.f32 1.442695, %v406_v0  ;;  %v349_v15 = vsub.f32 0.0, %v341_v8 }
  0x9f   : > { %568 = vpow2.f32 %v356_v63  ;;  %v400_v16 = vmul.f32 %v392_v62, %v392_v62  ;;  %v401_v17 = vmul.f32 %v393_v9, %v393_v9  ;;  %v358_v18 = vmul.f32 1.442695, %v348_v11 }
  0xa0   : > { %570 = vpow2.f32 %v364_v5  ;;  %v344_v19 = vmul.f32 %v336_v12, %v336_v12  ;;  %v345_v20 = vmul.f32 %v337_v13, %v337_v13  ;;  %v416_v21 = vmul.f32 1.442695, %v407_v4 }
  0xa1   : > { %572 = vpow2.f32 %v362_v7  ;;  %v411_v22 = vsub.f32 0.0, %v403_v1  ;;  %v360_v23 = vmul.f32 1.442695, %v349_v15  ;;  %v409_v24 = vsub.f32 0.0, %v401_v17 }
  0xa2   : > { %v352_v25 = vsub.f32 0.0, %v344_v19  ;;  %v353_v26 = vsub.f32 0.0, %v345_v20  ;;  %v396_v27 = vsub.f32 %v385_v36, %v328_v3  ;;  %v410_v28 = vsub.f32 0.0, %v402_v10 }
  0xa3   : > { %574 = vpow2.f32 %v358_v18  ;;  %v408_v29 = vsub.f32 0.0, %v400_v16  ;;  %v397_v30 = vsub.f32 %v389_v39, %v328_v3  ;;  %v424_v34 = vmul.f32 1.442695, %v411_v22 }
  0xa4   : > { %576 = vpow2.f32 %v360_v23  ;;  %v366_v31 = vmul.f32 1.442695, %v352_v25  ;;  %v368_v32 = vmul.f32 1.442695, %v353_v26  ;;  %v404_v33 = vmul.f32 %v396_v27, %v396_v27 }
  0xa5   : > { %578 = vpow2.f32 %v414_v14  ;;  %v405_v35 = vmul.f32 %v397_v30, %v397_v30  ;;  %v420_v38 = vmul.f32 1.442695, %v409_v24  ;;  %v422_v41 = vmul.f32 1.442695, %v410_v28 }
  0xa6   : > { %580 = vpow2.f32 %v416_v21  ;;  %v418_v43 = vmul.f32 1.442695, %v408_v29  ;;  %v412_v36 = vsub.f32 0.0, %v404_v33  ;;  %v625_v3 = vmov 0.0  }
  0xa7   : > { %v567_v37 = vpop.eup %566  ;;  %582 = vpow2.f32 %v366_v31  ;;  %v413_v42 = vsub.f32 0.0, %v405_v35  ;;  %238 = vst.msk [vmem:[%s232_s19] sm:$0xff] %vm237_vm2, %v625_v3  ;;  %239 = vst.msk [vmem:[%s232_s19 + $0x8] sm:$0xff] %vm237_vm2, %v625_v3 }
  0xa8   : > { %584 = vpow2.f32 %v368_v32  ;;  %v426_v47 = vmul.f32 1.442695, %v412_v36  ;;  %240 = vst.msk [vmem:[%s232_s19 + $0x10] sm:$0xff] %vm237_vm2, %v625_v3  ;;  %241 = vst.msk [vmem:[%s232_s19 + $0x18] sm:$0xff] %vm237_vm2, %v625_v3 }
  0xa9   : > { %v569_v40 = vpop.eup %568  ;;  %586 = vpow2.f32 %v424_v34  ;;  %v428_v45 = vmul.f32 1.442695, %v413_v42 }
  0xaa   : > { %v370_v44 = vadd.f32 %v569_v40, %v567_v37  ;;  %v571_v39 = vpop.eup %570  ;;  %588 = vpow2.f32 %v420_v38 }
  0xab   : > { %v573_v46 = vpop.eup %572  ;;  %590 = vpow2.f32 %v422_v41 }
  0xac   : > { %371 = vadd.xlane.f32.xlu0 %v370_v44  ;;  %592 = vpow2.f32 %v418_v43  ;;  %v376_v48 = vadd.f32 %v573_v46, %v571_v39 }
  0xad   : > { %v575_v49 = vpop.eup %574  ;;  %594 = vpow2.f32 %v428_v45 }
  0xae   : > { %v577_v50 = vpop.eup %576  ;;  %596 = vpow2.f32 %v426_v47  ;;  %v442_v7 = vld [vmem:[%s232_s19] sm:$0xff]  ;;  %v443_v13 = vld [vmem:[%s232_s19 + $0x8] sm:$0xff] }
  0xaf   : > { %v579_v51 = vpop.eup %578  ;;  %v373_v52 = vadd.f32 %v577_v50, %v575_v49  ;;  %v444_v12 = vld [vmem:[%s232_s19 + $0x10] sm:$0xff]  ;;  %v445_v20 = vld [vmem:[%s232_s19 + $0x18] sm:$0xff] }
  0xb0   : > { %377 = vadd.xlane.f32.xlu0 %v376_v48  ;;  %v581_v53 = vpop.eup %580 }
  0xb1   : > { %v583_v54 = vpop.eup %582  ;;  %374 = vadd.xlane.f32.xlu1 %v373_v52  ;;  %v430_v57 = vadd.f32 %v581_v53, %v579_v51 }
  0xb2   : > { %v585_v55 = vpop.eup %584 }
  0xb3   : > { %v587_v56 = vpop.eup %586  ;;  %v379_v58 = vadd.f32 %v585_v55, %v583_v54 }
  0xb4   : > { %v589_v59 = vpop.eup %588 }
  0xb5   : > { %v591_v60 = vpop.eup %590  ;;  %431 = vadd.xlane.f32.xlu1 %v430_v57  ;;  %380 = vadd.xlane.f32.xlu0 %v379_v58 }
  0xb6   : > { %v593_v61 = vpop.eup %592  ;;  %v436_v62 = vadd.f32 %v591_v60, %v587_v56 }
  0xb7   : > { %v433_v63 = vadd.f32 %v593_v61, %v589_v59  ;;  %v595_v0 = vpop.eup %594 }
  0xb8   : > { %v597_v1 = vpop.eup %596 }
  0xb9   : > { %437 = vadd.xlane.f32.xlu1 %v436_v62  ;;  %434 = vadd.xlane.f32.xlu0 %v433_v63  ;;  %v439_v2 = vadd.f32 %v597_v1, %v595_v0 }
  0xbd   : > { %440 = vadd.xlane.f32.xlu0 %v439_v2 }
 0x139   : > { %v372_v4 = vpop.xlane.xlu0 %371 }
 0x13d   : > { %v378_v5 = vpop.xlane.xlu0 %377 }
 0x13e   : > { %v375_v6 = vpop.xlane.xlu1 %374 }
 0x142   : > { %v432_v8 = vpop.xlane.xlu1 %431  ;;  %v381_v9 = vpop.xlane.xlu0 %380 }
 0x143   : > { %v447_v10 = vsel %vm446_vm3, %v372_v4, %v432_v8 }
 0x144   : > { %v451_v11 = vadd.f32 %v447_v10, %v442_v7 }
 0x146   : > { %456 = vst.msk [vmem:[%s232_s19] sm:$0xff] %vm237_vm2, %v451_v11  ;;  %v438_v14 = vpop.xlane.xlu1 %437  ;;  %v435_v15 = vpop.xlane.xlu0 %434 }
 0x147   : > { %v449_v16 = vsel %vm446_vm3, %v378_v5, %v438_v14  ;;  %v448_v17 = vsel %vm446_vm3, %v375_v6, %v435_v15 }
 0x148   : > { %v453_v18 = vadd.f32 %v449_v16, %v444_v12  ;;  %v452_v19 = vadd.f32 %v448_v17, %v443_v13 }
 0x14a   : > { %458 = vst.msk [vmem:[%s232_s19 + $0x10] sm:$0xff] %vm237_vm2, %v453_v18  ;;  %457 = vst.msk [vmem:[%s232_s19 + $0x8] sm:$0xff] %vm237_vm2, %v452_v19  ;;  %v441_v21 = vpop.xlane.xlu0 %440 }
 0x14b   : > { %v450_v22 = vsel %vm446_vm3, %v381_v9, %v441_v21 }
 0x14c   : > { %v454_v23 = vadd.f32 %v450_v22, %v445_v20 }
 0x14e   : > { %459 = vst.msk [vmem:[%s232_s19 + $0x18] sm:$0xff] %vm237_vm2, %v454_v23 }
 0x14f PF: > { %s14_s17 = sadd.s32 1, %s620_s17   ;;  %s726_s15 = smov %s616_s16 }
 0x150   : > { %p11_p7 = scmp.ge.s32.totalorder %s14_s17, 4   ;;  %s727_s16 = smov %s729_s18 }
 0x152   :  { %13 = sbr.rel (!%p11_p7) target bundleno = 2 (0x2), region = 70 }

// kernel: kde_diff_forward.13
= control target key start
LH: loop header
LB: loop body
LE: loop exit
PB: predicated region body
PF: predicated region fallthrough
CT: control target
= control target key end

     0   :  { %vm178_vm0 = vcmask 1041408   ;;  %v700_v1 = vmov 0.0   ;;  %s930_s0 = inlined_call_operand.vmem [shape: f32[2,200], index: 0, kind: input, shape index: {}]   ;;  %s931_s1 = inlined_call_operand.vmem [shape: f32[2,128], index: 1, kind: input, shape index: {}]   ;;  %s932_s2 = inlined_call_operand.vmem [shape: f32[1,128], index: 2, kind: input, shape index: {}]   ;;  %s933_s3 = inlined_call_operand.vmem [shape: f32[200,128], index: 3, kind: input, shape index: {}]   ;;  %s934_s4 = inlined_call_operand.hbm [shape: f32[200,128], index: 4, kind: output, shape index: {}]  }
   0x1   :  { %v539_v0 = vld.sshfl [vmem:[%s930_s0] sm:$0x33 pattern:$0x76325410]  ;;  %592 = vmatprep.subr.mxu0 %v700_v1 }
   0x2   :  { %38 = vxpose.xlu0.b32.start.end [1/1] (short) %v539_v0, 128  ;;  %v19_v2 = vld [vmem:[%s931_s1] sm:$0x3] }
   0x3   :  { %9 = vsyncpa [#allocation3], 0  ;;  %593 = vmatpush3.msk.msra.mxu0 %vm178_vm0, %v19_v2  ;;  %vm701_vm1 = vmmov 0   ;;  %669 = vmatprep.subr.mxu1 %v700_v1  ;;  %v35_v3 = vcombine.high %v539_v0, %v539_v0  ;;  %vm102_vm2 = vcmask 15360   ;;  %v816_v29 = vld [vmem:[%s932_s2] ss:$0 sm:$0xff] }
   0x4   :  { %594 = vmatprep.mubr.msk.f32.mxu0 %vm701_vm1, %v700_v1  ;;  %633 = vmatprep.mubr.msk.f32.mxu1 %vm701_vm1, %v700_v1  ;;  %v422_v31 = vld [vmem:[%s933_s3] sm:$0xff]  ;;  %v423_v37 = vld [vmem:[%s933_s3 + $0x8] sm:$0xff]  ;;  %v424_v45 = vld [vmem:[%s933_s3 + $0x10] sm:$0xff]  ;;  %s702_s13 = smov [#allocation2]  }
   0x5   :  { %670 = vmatpush3.msk.msra.mxu1 %vm178_vm0, %v19_v2  ;;  %v447_v35 = vmul.f32 0.9, %v422_v31  ;;  %v448_v43 = vmul.f32 0.9, %v423_v37  ;;  %v449_v51 = vmul.f32 0.9, %v424_v45 }
   0x6   :  { %v425_v53 = vld [vmem:[%s933_s3 + $0x18] sm:$0xff]  ;;  %v426_v61 = vld [vmem:[%s933_s3 + $0x20] sm:$0xff]  ;;  %s527_s14 = sshll.u32 %s702_s13, 4  ;;  %s528_s14 = int_to_ptr.vmem [resolvable:$true] %s527_s14 }
   0x7   :  { %v450_v59 = vmul.f32 0.9, %v425_v53  ;;  %s676_s15 = scalar_lea.vmem %s528_s14, 3200  ;;  %p681_p1 = scmp.lt.s32.totalorder %s528_s14, %s528_s14 }
   0x8   :  { %p677_p0 = scmp.ne.s32.totalorder %s528_s14, %s676_s15  ;;  %p682_p2 = scmp.lt.s32.totalorder %s676_s15, %s676_s15 }
   0xa   :  { %p683_p3 = por %p682_p2, %p681_p1 }
   0xc   :  { %p684_p4 = pnand %p683_p3, %p677_p0 }
  0x3f   :  { %70 = vxpose.xlu0.b32.start.end [1/1] (short) (narrow) %v35_v3, 72  ;;  %v451_v3 = vmul.f32 0.9, %v426_v61 }
  0x82   :  { %v54_v4 = vpop.trf.xlu0 }
  0x83   :  { %595 = vmatmul.mubr.msk.f32.vlgmr.msra.gmra.mrb[0].mxu0 %vm102_vm2, %v54_v4 }
  0x84   :  { %597 = vmatprep.mubr.msk.f32.mxu0 %vm701_vm1, %v700_v1 }
  0x86   :  { %v55_v5 = vpop.trf.xlu0 }
  0x87   :  { %598 = vmatmul.mubr.msk.f32.gmra.mrb[2].mxu0 %vm102_vm2, %v55_v5  ;;  %v427_v5 = vld [vmem:[%s933_s3 + $0x28] sm:$0xff] }
  0x88   :  { %600 = vmatprep.mubr.msk.f32.mxu0 %vm701_vm1, %v700_v1 }
  0x8a   :  { %v56_v6 = vpop.trf.xlu0 }
  0x8b   :  { %601 = vmatmul.mubr.msk.f32.gmra.mrb[4].mxu0 %vm102_vm2, %v56_v6 }
  0x8c   :  { %603 = vmatprep.mubr.msk.f32.mxu0 %vm701_vm1, %v700_v1 }
  0x8e   :  { %v57_v7 = vpop.trf.xlu0 }
  0x8f   :  { %604 = vmatmul.mubr.msk.f32.gmra.mrb[6].mxu0 %vm102_vm2, %v57_v7 }
  0x90   :  { %606 = vmatprep.mubr.msk.f32.mxu0 %vm701_vm1, %v700_v1 }
  0x92   :  { %v58_v8 = vpop.trf.xlu0 }
  0x93   :  { %607 = vmatmul.mubr.msk.f32.gmra.mrb[8].mxu0 %vm102_vm2, %v58_v8 }
  0x94   :  { %609 = vmatprep.mubr.msk.f32.mxu0 %vm701_vm1, %v700_v1 }
  0x96   :  { %v59_v9 = vpop.trf.xlu0 }
  0x97   :  { %610 = vmatmul.mubr.msk.f32.gmra.mrb[10].mxu0 %vm102_vm2, %v59_v9 }
  0x98   :  { %612 = vmatprep.mubr.msk.f32.mxu0 %vm701_vm1, %v700_v1 }
  0x9a   :  { %v60_v10 = vpop.trf.xlu0 }
  0x9b   :  { %613 = vmatmul.mubr.msk.f32.gmra.mrb[12].mxu0 %vm102_vm2, %v60_v10 }
  0x9c   :  { %615 = vmatprep.mubr.msk.f32.mxu0 %vm701_vm1, %v700_v1 }
  0x9e   :  { %v61_v11 = vpop.trf.xlu0 }
  0x9f   :  { %616 = vmatmul.mubr.msk.f32.gmra.mrb[14].mxu0 %vm102_vm2, %v61_v11  ;;  %v452_v11 = vmul.f32 0.9, %v427_v5 }
  0xa0   :  { %618 = vmatprep.mubr.msk.f32.mxu0 %vm701_vm1, %v700_v1 }
  0xa2   :  { %v62_v12 = vpop.trf.xlu0 }
  0xa3   :  { %619 = vmatmul.mubr.msk.f32.gmra.mrb[16].mxu0 %vm102_vm2, %v62_v12 }
  0xa4   :  { %621 = vmatprep.mubr.msk.f32.mxu0 %vm701_vm1, %v700_v1 }
  0xa6   :  { %v63_v13 = vpop.trf.xlu0 }
  0xa7   :  { %622 = vmatmul.mubr.msk.f32.gmra.mrb[18].mxu0 %vm102_vm2, %v63_v13  ;;  %v428_v13 = vld [vmem:[%s933_s3 + $0x30] sm:$0xff] }
  0xa8   :  { %624 = vmatprep.mubr.msk.f32.mxu0 %vm701_vm1, %v700_v1 }
  0xaa   :  { %v64_v14 = vpop.trf.xlu0 }
  0xab   :  { %625 = vmatmul.mubr.msk.f32.gmra.mrb[20].mxu0 %vm102_vm2, %v64_v14 }
  0xac   :  { %627 = vmatprep.mubr.msk.f32.mxu0 %vm701_vm1, %v700_v1 }
  0xae   :  { %v65_v15 = vpop.trf.xlu0 }
  0xaf   :  { %628 = vmatmul.mubr.msk.f32.gmra.mrb[22].mxu0 %vm102_vm2, %v65_v15 }
  0xb0   :  { %630 = vmatprep.mubr.msk.f32.mxu0 %vm701_vm1, %v700_v1 }
  0xb2   :  { %v66_v16 = vpop.trf.xlu0 }
  0xb3   :  { %631 = vmatmul.mubr.msk.f32.gmra.mrb[24].mxu0 %vm102_vm2, %v66_v16 }
  0xb6   :  { %v67_v17 = vpop.trf.xlu0 }
  0xb7   :  { %634 = vmatmul.mubr.msk.f32.vlgmr.msra.gmra.mrb[0].mxu1 %vm102_vm2, %v67_v17 }
  0xb8   :  { %636 = vmatprep.mubr.msk.f32.mxu1 %vm701_vm1, %v700_v1 }
  0xba   :  { %v68_v18 = vpop.trf.xlu0 }
  0xbb   :  { %637 = vmatmul.mubr.msk.f32.gmra.mrb[2].mxu1 %vm102_vm2, %v68_v18 }
  0xbc   :  { %639 = vmatprep.mubr.msk.f32.mxu1 %vm701_vm1, %v700_v1 }
  0xbe   :  { %v69_v19 = vpop.trf.xlu0 }
  0xbf   :  { %640 = vmatmul.mubr.msk.f32.gmra.mrb[4].mxu1 %vm102_vm2, %v69_v19  ;;  %v453_v19 = vmul.f32 0.9, %v428_v13 }
  0xc0   :  { %642 = vmatprep.mubr.msk.f32.mxu1 %vm701_vm1, %v700_v1 }
  0xc2   :  { %v86_v20 = vpop.trf.xlu0 }
  0xc3   :  { %643 = vmatmul.mubr.msk.f32.gmra.mrb[6].mxu1 %vm102_vm2, %v86_v20 }
  0xc4   :  { %645 = vmatprep.mubr.msk.f32.mxu1 %vm701_vm1, %v700_v1 }
  0xc6   :  { %v87_v21 = vpop.trf.xlu0 }
  0xc7   :  { %646 = vmatmul.mubr.msk.f32.gmra.mrb[8].mxu1 %vm102_vm2, %v87_v21  ;;  %v429_v21 = vld [vmem:[%s933_s3 + $0x38] sm:$0xff] }
  0xc8   :  { %648 = vmatprep.mubr.msk.f32.mxu1 %vm701_vm1, %v700_v1 }
  0xca   :  { %v88_v22 = vpop.trf.xlu0 }
  0xcb   :  { %649 = vmatmul.mubr.msk.f32.gmra.mrb[10].mxu1 %vm102_vm2, %v88_v22 }
  0xcc   :  { %651 = vmatprep.mubr.msk.f32.mxu1 %vm701_vm1, %v700_v1 }
  0xce   :  { %v89_v23 = vpop.trf.xlu0 }
  0xcf   :  { %652 = vmatmul.mubr.msk.f32.gmra.mrb[12].mxu1 %vm102_vm2, %v89_v23 }
  0xd0   :  { %654 = vmatprep.mubr.msk.f32.mxu1 %vm701_vm1, %v700_v1 }
  0xd2   :  { %v90_v24 = vpop.trf.xlu0 }
  0xd3   :  { %655 = vmatmul.mubr.msk.f32.gmra.mrb[14].mxu1 %vm102_vm2, %v90_v24 }
  0xd4   :  { %657 = vmatprep.mubr.msk.f32.mxu1 %vm701_vm1, %v700_v1 }
  0xd6   :  { %v91_v25 = vpop.trf.xlu0 }
  0xd7   :  { %658 = vmatmul.mubr.msk.f32.gmra.mrb[16].mxu1 %vm102_vm2, %v91_v25 }
  0xd8   :  { %660 = vmatprep.mubr.msk.f32.mxu1 %vm701_vm1, %v700_v1 }
  0xda   :  { %v92_v26 = vpop.trf.xlu0 }
  0xdb   :  { %661 = vmatmul.mubr.msk.f32.gmra.mrb[18].mxu1 %vm102_vm2, %v92_v26 }
  0xdc   :  { %663 = vmatprep.mubr.msk.f32.mxu1 %vm701_vm1, %v700_v1 }
  0xde   :  { %v93_v27 = vpop.trf.xlu0 }
  0xdf   :  { %664 = vmatmul.mubr.msk.f32.gmra.mrb[20].mxu1 %vm102_vm2, %v93_v27  ;;  %v454_v27 = vmul.f32 0.9, %v429_v21 }
  0xe0   :  { %666 = vmatprep.mubr.msk.f32.mxu1 %vm701_vm1, %v700_v1 }
  0xe2   :  { %v94_v28 = vpop.trf.xlu0 }
  0xe3   :  { %667 = vmatmul.mubr.msk.f32.gmra.mrb[22].mxu1 %vm102_vm2, %v94_v28 }
 0x156   :  { %v248_v30 = vpop.f32.mrb[0].mxu0 }
 0x157   :  { %v249_v32 = vadd.f32 %v816_v29, %v248_v30  ;;  %v596_v33 = vpop.f32.mrb[1].mxu0  ;;  %v430_v30 = vld [vmem:[%s933_s3 + $0x40] sm:$0xff] }
 0x159   :  { %v372_v34 = vmax.f32 %v249_v32, 0.0 }
 0x15a   :  { %v253_v36 = vpop.f32.mrb[2].mxu0 }
 0x15b   :  { %v397_v38 = vmul.f32 0.1, %v372_v34  ;;  %v254_v39 = vadd.f32 %v816_v29, %v253_v36  ;;  %v599_v40 = vpop.f32.mrb[3].mxu0  ;;  %v455_v36 = vmul.f32 0.9, %v430_v30 }
 0x15d   :  { %v472_v41 = vadd.f32 %v447_v35, %v397_v38  ;;  %v373_v42 = vmax.f32 %v254_v39, 0.0  ;;  %v431_v38 = vld [vmem:[%s933_s3 + $0x48] sm:$0xff] }
 0x15e   :  { %v258_v44 = vpop.f32.mrb[4].mxu0 }
 0x15f   :  { %497 = vst [vmem:[#allocation2] sm:$0xff] %v472_v41  ;;  %v398_v46 = vmul.f32 0.1, %v373_v42  ;;  %v259_v47 = vadd.f32 %v816_v29, %v258_v44  ;;  %v602_v48 = vpop.f32.mrb[5].mxu0  ;;  %v456_v44 = vmul.f32 0.9, %v431_v38 }
 0x161   :  { %v473_v49 = vadd.f32 %v448_v43, %v398_v46  ;;  %v374_v50 = vmax.f32 %v259_v47, 0.0  ;;  %v432_v46 = vld [vmem:[%s933_s3 + $0x50] sm:$0xff] }
 0x162   :  { %v263_v52 = vpop.f32.mrb[6].mxu0 }
 0x163   :  { %498 = vst [vmem:[#allocation2 + $0x8] sm:$0xff] %v473_v49  ;;  %v399_v54 = vmul.f32 0.1, %v374_v50  ;;  %v264_v55 = vadd.f32 %v816_v29, %v263_v52  ;;  %v605_v56 = vpop.f32.mrb[7].mxu0  ;;  %v457_v52 = vmul.f32 0.9, %v432_v46 }
 0x165   :  { %v474_v57 = vadd.f32 %v449_v51, %v399_v54  ;;  %v375_v58 = vmax.f32 %v264_v55, 0.0  ;;  %v433_v54 = vld [vmem:[%s933_s3 + $0x58] sm:$0xff] }
 0x166   :  { %v268_v60 = vpop.f32.mrb[8].mxu0 }
 0x167   :  { %499 = vst [vmem:[#allocation2 + $0x10] sm:$0xff] %v474_v57  ;;  %v400_v62 = vmul.f32 0.1, %v375_v58  ;;  %v269_v63 = vadd.f32 %v816_v29, %v268_v60  ;;  %v608_v0 = vpop.f32.mrb[9].mxu0  ;;  %v458_v60 = vmul.f32 0.9, %v433_v54 }
 0x169   :  { %v475_v1 = vadd.f32 %v450_v59, %v400_v62  ;;  %v376_v2 = vmax.f32 %v269_v63, 0.0  ;;  %v434_v62 = vld [vmem:[%s933_s3 + $0x60] sm:$0xff] }
 0x16a   :  { %v273_v4 = vpop.f32.mrb[10].mxu0 }
 0x16b   :  { %500 = vst [vmem:[#allocation2 + $0x18] sm:$0xff] %v475_v1  ;;  %v401_v6 = vmul.f32 0.1, %v376_v2  ;;  %v274_v7 = vadd.f32 %v816_v29, %v273_v4  ;;  %v611_v8 = vpop.f32.mrb[11].mxu0  ;;  %v459_v4 = vmul.f32 0.9, %v434_v62 }
 0x16d   :  { %v476_v9 = vadd.f32 %v451_v3, %v401_v6  ;;  %v377_v10 = vmax.f32 %v274_v7, 0.0  ;;  %v435_v6 = vld [vmem:[%s933_s3 + $0x68] sm:$0xff] }
 0x16e   :  { %v278_v12 = vpop.f32.mrb[12].mxu0 }
 0x16f   :  { %501 = vst [vmem:[#allocation2 + $0x20] sm:$0xff] %v476_v9  ;;  %v402_v14 = vmul.f32 0.1, %v377_v10  ;;  %v279_v15 = vadd.f32 %v816_v29, %v278_v12  ;;  %v614_v16 = vpop.f32.mrb[13].mxu0  ;;  %v460_v12 = vmul.f32 0.9, %v435_v6 }
 0x171   :  { %v477_v17 = vadd.f32 %v452_v11, %v402_v14  ;;  %v378_v18 = vmax.f32 %v279_v15, 0.0  ;;  %v436_v14 = vld [vmem:[%s933_s3 + $0x70] sm:$0xff] }
 0x172   :  { %v283_v20 = vpop.f32.mrb[14].mxu0 }
 0x173   :  { %502 = vst [vmem:[#allocation2 + $0x28] sm:$0xff] %v477_v17  ;;  %v403_v22 = vmul.f32 0.1, %v378_v18  ;;  %v284_v23 = vadd.f32 %v816_v29, %v283_v20  ;;  %v617_v24 = vpop.f32.mrb[15].mxu0  ;;  %v461_v20 = vmul.f32 0.9, %v436_v14 }
 0x175   :  { %v478_v25 = vadd.f32 %v453_v19, %v403_v22  ;;  %v379_v26 = vmax.f32 %v284_v23, 0.0  ;;  %v437_v22 = vld [vmem:[%s933_s3 + $0x78] sm:$0xff] }
 0x176   :  { %v288_v28 = vpop.f32.mrb[16].mxu0 }
 0x177   :  { %503 = vst [vmem:[#allocation2 + $0x30] sm:$0xff] %v478_v25  ;;  %v404_v31 = vmul.f32 0.1, %v379_v26  ;;  %v289_v32 = vadd.f32 %v816_v29, %v288_v28  ;;  %v620_v33 = vpop.f32.mrb[17].mxu0  ;;  %v462_v28 = vmul.f32 0.9, %v437_v22 }
 0x179   :  { %v479_v34 = vadd.f32 %v454_v27, %v404_v31  ;;  %v380_v35 = vmax.f32 %v289_v32, 0.0  ;;  %v438_v31 = vld [vmem:[%s933_s3 + $0x80] sm:$0xff] }
 0x17a   :  { %v293_v37 = vpop.f32.mrb[18].mxu0 }
 0x17b   :  { %504 = vst [vmem:[#allocation2 + $0x38] sm:$0xff] %v479_v34  ;;  %v405_v39 = vmul.f32 0.1, %v380_v35  ;;  %v294_v40 = vadd.f32 %v816_v29, %v293_v37  ;;  %v623_v41 = vpop.f32.mrb[19].mxu0  ;;  %v463_v37 = vmul.f32 0.9, %v438_v31 }
 0x17d   :  { %v480_v42 = vadd.f32 %v455_v36, %v405_v39  ;;  %v381_v43 = vmax.f32 %v294_v40, 0.0  ;;  %v439_v39 = vld [vmem:[%s933_s3 + $0x88] sm:$0xff] }
 0x17e   :  { %v298_v45 = vpop.f32.mrb[20].mxu0 }
 0x17f   :  { %505 = vst [vmem:[#allocation2 + $0x40] sm:$0xff] %v480_v42  ;;  %v406_v47 = vmul.f32 0.1, %v381_v43  ;;  %v299_v48 = vadd.f32 %v816_v29, %v298_v45  ;;  %v626_v49 = vpop.f32.mrb[21].mxu0  ;;  %v464_v45 = vmul.f32 0.9, %v439_v39 }
 0x181   :  { %v481_v50 = vadd.f32 %v456_v44, %v406_v47  ;;  %v382_v51 = vmax.f32 %v299_v48, 0.0  ;;  %v440_v47 = vld [vmem:[%s933_s3 + $0x90] sm:$0xff] }
 0x182   :  { %v303_v53 = vpop.f32.mrb[22].mxu0 }
 0x183   :  { %506 = vst [vmem:[#allocation2 + $0x48] sm:$0xff] %v481_v50  ;;  %v407_v55 = vmul.f32 0.1, %v382_v51  ;;  %v304_v56 = vadd.f32 %v816_v29, %v303_v53  ;;  %v629_v57 = vpop.f32.mrb[23].mxu0  ;;  %v465_v53 = vmul.f32 0.9, %v440_v47 }
 0x185   :  { %v482_v58 = vadd.f32 %v457_v52, %v407_v55  ;;  %v383_v59 = vmax.f32 %v304_v56, 0.0  ;;  %v441_v55 = vld [vmem:[%s933_s3 + $0x98] sm:$0xff] }
 0x186   :  { %v308_v61 = vpop.f32.mrb[24].mxu0 }
 0x187   :  { %507 = vst [vmem:[#allocation2 + $0x50] sm:$0xff] %v482_v58  ;;  %v408_v63 = vmul.f32 0.1, %v383_v59  ;;  %v309_v0 = vadd.f32 %v816_v29, %v308_v61  ;;  %v632_v1 = vpop.f32.mrb[25].mxu0  ;;  %v466_v61 = vmul.f32 0.9, %v441_v55 }
 0x189   :  { %v483_v2 = vadd.f32 %v458_v60, %v408_v63  ;;  %v384_v3 = vmax.f32 %v309_v0, 0.0  ;;  %v442_v63 = vld [vmem:[%s933_s3 + $0xa0] sm:$0xff] }
 0x18a   :  { %v313_v5 = vpop.f32.mrb[0].mxu1 }
 0x18b   :  { %508 = vst [vmem:[#allocation2 + $0x58] sm:$0xff] %v483_v2  ;;  %v409_v7 = vmul.f32 0.1, %v384_v3  ;;  %v314_v8 = vadd.f32 %v816_v29, %v313_v5  ;;  %v635_v9 = vpop.f32.mrb[1].mxu1  ;;  %v467_v5 = vmul.f32 0.9, %v442_v63 }
 0x18d   :  { %v484_v10 = vadd.f32 %v459_v4, %v409_v7  ;;  %v385_v11 = vmax.f32 %v314_v8, 0.0  ;;  %v443_v7 = vld [vmem:[%s933_s3 + $0xa8] sm:$0xff] }
 0x18e   :  { %v318_v13 = vpop.f32.mrb[2].mxu1 }
 0x18f   :  { %509 = vst [vmem:[#allocation2 + $0x60] sm:$0xff] %v484_v10  ;;  %v410_v15 = vmul.f32 0.1, %v385_v11  ;;  %v319_v16 = vadd.f32 %v816_v29, %v318_v13  ;;  %v638_v17 = vpop.f32.mrb[3].mxu1  ;;  %v468_v13 = vmul.f32 0.9, %v443_v7 }
 0x191   :  { %v485_v18 = vadd.f32 %v460_v12, %v410_v15  ;;  %v386_v19 = vmax.f32 %v319_v16, 0.0  ;;  %v444_v15 = vld [vmem:[%s933_s3 + $0xb0] sm:$0xff] }
 0x192   :  { %v323_v21 = vpop.f32.mrb[4].mxu1 }
 0x193   :  { %510 = vst [vmem:[#allocation2 + $0x68] sm:$0xff] %v485_v18  ;;  %v411_v23 = vmul.f32 0.1, %v386_v19  ;;  %v324_v24 = vadd.f32 %v816_v29, %v323_v21  ;;  %v641_v25 = vpop.f32.mrb[5].mxu1  ;;  %v469_v21 = vmul.f32 0.9, %v444_v15 }
 0x195   :  { %v486_v26 = vadd.f32 %v461_v20, %v411_v23  ;;  %v387_v27 = vmax.f32 %v324_v24, 0.0  ;;  %v445_v23 = vld [vmem:[%s933_s3 + $0xb8] sm:$0xff] }
 0x196   :  { %v328_v30 = vpop.f32.mrb[6].mxu1 }
 0x197   :  { %511 = vst [vmem:[#allocation2 + $0x70] sm:$0xff] %v486_v26  ;;  %v412_v32 = vmul.f32 0.1, %v387_v27  ;;  %v329_v33 = vadd.f32 %v816_v29, %v328_v30  ;;  %v644_v34 = vpop.f32.mrb[7].mxu1  ;;  %v470_v30 = vmul.f32 0.9, %v445_v23 }
 0x199   :  { %v487_v35 = vadd.f32 %v462_v28, %v412_v32  ;;  %v388_v36 = vmax.f32 %v329_v33, 0.0  ;;  %v446_v32 = vld [vmem:[%s933_s3 + $0xc0] sm:$0xff] }
 0x19a   :  { %v333_v38 = vpop.f32.mrb[8].mxu1 }
 0x19b   :  { %512 = vst [vmem:[#allocation2 + $0x78] sm:$0xff] %v487_v35  ;;  %v413_v40 = vmul.f32 0.1, %v388_v36  ;;  %v334_v41 = vadd.f32 %v816_v29, %v333_v38  ;;  %v647_v42 = vpop.f32.mrb[9].mxu1  ;;  %v471_v38 = vmul.f32 0.9, %v446_v32 }
 0x19d   :  { %v488_v43 = vadd.f32 %v463_v37, %v413_v40  ;;  %v389_v44 = vmax.f32 %v334_v41, 0.0 }
 0x19e   :  { %v338_v46 = vpop.f32.mrb[10].mxu1 }
 0x19f   :  { %513 = vst [vmem:[#allocation2 + $0x80] sm:$0xff] %v488_v43  ;;  %v414_v48 = vmul.f32 0.1, %v389_v44  ;;  %v339_v49 = vadd.f32 %v816_v29, %v338_v46  ;;  %v650_v50 = vpop.f32.mrb[11].mxu1 }
 0x1a1   :  { %v489_v51 = vadd.f32 %v464_v45, %v414_v48  ;;  %v390_v52 = vmax.f32 %v339_v49, 0.0 }
 0x1a2   :  { %v343_v54 = vpop.f32.mrb[12].mxu1 }
 0x1a3   :  { %514 = vst [vmem:[#allocation2 + $0x88] sm:$0xff] %v489_v51  ;;  %v415_v56 = vmul.f32 0.1, %v390_v52  ;;  %v344_v57 = vadd.f32 %v816_v29, %v343_v54  ;;  %v653_v58 = vpop.f32.mrb[13].mxu1 }
 0x1a5   :  { %v490_v59 = vadd.f32 %v465_v53, %v415_v56  ;;  %v391_v60 = vmax.f32 %v344_v57, 0.0 }
 0x1a6   :  { %v348_v62 = vpop.f32.mrb[14].mxu1 }
 0x1a7   :  { %515 = vst [vmem:[#allocation2 + $0x90] sm:$0xff] %v490_v59  ;;  %v416_v0 = vmul.f32 0.1, %v391_v60  ;;  %v349_v1 = vadd.f32 %v816_v29, %v348_v62  ;;  %v656_v2 = vpop.f32.mrb[15].mxu1 }
 0x1a9   :  { %v491_v3 = vadd.f32 %v466_v61, %v416_v0  ;;  %v392_v4 = vmax.f32 %v349_v1, 0.0 }
 0x1aa   :  { %v353_v6 = vpop.f32.mrb[16].mxu1 }
 0x1ab   :  { %516 = vst [vmem:[#allocation2 + $0x98] sm:$0xff] %v491_v3  ;;  %v417_v8 = vmul.f32 0.1, %v392_v4  ;;  %v354_v9 = vadd.f32 %v816_v29, %v353_v6  ;;  %v659_v10 = vpop.f32.mrb[17].mxu1 }
 0x1ad   :  { %v492_v11 = vadd.f32 %v467_v5, %v417_v8  ;;  %v393_v12 = vmax.f32 %v354_v9, 0.0 }
 0x1ae   :  { %v358_v14 = vpop.f32.mrb[18].mxu1 }
 0x1af   :  { %517 = vst [vmem:[#allocation2 + $0xa0] sm:$0xff] %v492_v11  ;;  %v418_v16 = vmul.f32 0.1, %v393_v12  ;;  %v359_v17 = vadd.f32 %v816_v29, %v358_v14  ;;  %v662_v18 = vpop.f32.mrb[19].mxu1 }
 0x1b1   :  { %v493_v19 = vadd.f32 %v468_v13, %v418_v16  ;;  %v394_v20 = vmax.f32 %v359_v17, 0.0 }
 0x1b2   :  { %v363_v22 = vpop.f32.mrb[20].mxu1 }
 0x1b3   :  { %518 = vst [vmem:[#allocation2 + $0xa8] sm:$0xff] %v493_v19  ;;  %v419_v24 = vmul.f32 0.1, %v394_v20  ;;  %v364_v25 = vadd.f32 %v816_v29, %v363_v22  ;;  %v665_v26 = vpop.f32.mrb[21].mxu1 }
 0x1b5   :  { %v494_v27 = vadd.f32 %v469_v21, %v419_v24  ;;  %v395_v28 = vmax.f32 %v364_v25, 0.0 }
 0x1b6   :  { %v368_v31 = vpop.f32.mrb[22].mxu1 }
 0x1b7   :  { %519 = vst [vmem:[#allocation2 + $0xb0] sm:$0xff] %v494_v27  ;;  %v420_v33 = vmul.f32 0.1, %v395_v28  ;;  %v369_v34 = vadd.f32 %v816_v29, %v368_v31  ;;  %v668_v35 = vpop.f32.mrb[23].mxu1 }
 0x1b9   :  { %v495_v36 = vadd.f32 %v470_v30, %v420_v33  ;;  %v396_v37 = vmax.f32 %v369_v34, 0.0 }
 0x1bb   :  { %520 = vst [vmem:[#allocation2 + $0xb8] sm:$0xff] %v495_v36  ;;  %v421_v39 = vmul.f32 0.1, %v396_v37 }
 0x1bd   :  { %v496_v40 = vadd.f32 %v471_v38, %v421_v39 }
 0x1bf   :  { %521 = vst [vmem:[#allocation2 + $0xc0] sm:$0xff] %v496_v40 }
 0x1c0   :  { %687 = shalt.err (!%p684_p4)
}
 0x1c1   :  { %s688_s17 = scalar_lea.hbm %s934_s4, 3200 }
 0x1c2   :  { %p689_p5 = scmp.ne.s32.totalorder %s934_s4, %s688_s17  ;;  %p692_p6 = scmp.lt.u32.totalorder %s688_s17, %s934_s4 }
 0x1c4   :  { %p694_p7 = pnand %p692_p6, %p689_p5 }
 0x1c6   :  { %697 = shalt.err (!%p694_p7)
}
 0x1c7   :  { %s703_s20 = smov 128   ;;  %s704_s21 = smov 8  }
 0x1c8   :  { %533 = dma.vmem_to_hbm [thread:$0]  %s528_s14, 3200, %s934_s4, [#allocation3], %s703_s20, %s703_s20, %s704_s21  }
 0x1c9   :  { %698 = dma.done.wait [#allocation3], 3200  }
 0x1ca   :  { %699 = vsyncadd [#allocation3], 4294964096 }
 0x1cb   :  { %537 = vsyncpa [#allocation3], 1 }

// kernel: kde_diff_forward.12
= control target key start
LH: loop header
LB: loop body
LE: loop exit
PB: predicated region body
PF: predicated region fallthrough
CT: control target
= control target key end

     0   :  { %vm188_vm0 = vcmask 1041408   ;;  %v575_v1 = vmov 0.0   ;;  %v576_v3 = vmov 0   ;;  %vm139_vm1 = vcmask 15360   ;;  %s1053_s0 = inlined_call_operand.vmem [shape: f32[2,256], index: 0, kind: input, shape index: {}]   ;;  %s1054_s1 = inlined_call_operand.vmem [shape: f32[128,2], index: 1, kind: input, shape index: {}]   ;;  %s1055_s2 = inlined_call_operand.vmem [shape: f32[128,1], index: 2, kind: input, shape index: {}]   ;;  %s1056_s3 = inlined_call_operand.vmem [shape: f32[128,256], index: 3, kind: input, shape index: {}]   ;;  %s1057_s4 = inlined_call_operand.vmem [shape: f32[128,256], index: 4, kind: output, shape index: {}]  }
   0x1   :  { %v550_v0 = vld.sshfl [vmem:[%s1053_s0] sm:$0x33 pattern:$0x76325410]  ;;  %257 = vmatprep.mubr.f32.mxu0 %v575_v1  ;;  %305 = vmatprep.mubr.f32.mxu1 %v575_v1  ;;  %v36_v6 = vld [vmem:[%s1055_s2 + $0x10] sm:$0xff]  ;;  %v18_v7 = vld [vmem:[%s1054_s1 + $0x8] sm:$0xff] }
   0x2   :  { %v138_v2 = vcombine.high %v550_v0, %v550_v0  ;;  %574 = vset.pattern.permute.xlu1 %v576_v3  ;;  %573 = vset.pattern.permute.xlu0 %v576_v3  ;;  %v17_v4 = vld [vmem:[%s1054_s1] sm:$0xff]  ;;  %v26_v8 = vld [vmem:[%s1054_s1 + $0x48] sm:$0xff]  ;;  %v37_v10 = vld [vmem:[%s1055_s2 + $0x18] sm:$0xff] }
   0x3   :  { %v25_v5 = vld [vmem:[%s1054_s1 + $0x40] sm:$0xff]  ;;  %62 = vperm.xlu1 %574, %v36_v6   ;;  %v35_v11 = vld [vmem:[%s1055_s2 + $0x8] sm:$0xff]  ;;  %v19_v12 = vld [vmem:[%s1054_s1 + $0x10] sm:$0xff] }
   0x4   :  { %551 = vmatprep.subr.msk.mxu0 %vm188_vm0, %v138_v2  ;;  %569 = vmatprep.subr.msk.mxu1 %vm188_vm0, %v138_v2  ;;  %v34_v9 = vld [vmem:[%s1055_s2] sm:$0xff]  ;;  %v27_v13 = vld [vmem:[%s1054_s1 + $0x50] sm:$0xff]  ;;  %v39_v14 = vld [vmem:[%s1055_s2 + $0x28] sm:$0xff] }
   0x5   :  { %552 = vmatpush1.msk.msra.mxu0 %vm188_vm0, %v550_v0  ;;  %570 = vmatpush1.msk.msra.mxu1 %vm188_vm0, %v550_v0  ;;  %v38_v15 = vld [vmem:[%s1055_s2 + $0x20] sm:$0xff]  ;;  %v20_v16 = vld [vmem:[%s1054_s1 + $0x18] sm:$0xff]  ;;  %v40_v19 = vld [vmem:[%s1055_s2 + $0x30] sm:$0xff] }
   0x6   :  { %553 = vmatmul.mubr.msk.f32.vlgmr.msra.gmra.mrb[0].mxu0 %vm139_vm1, %v17_v4  ;;  %561 = vmatmul.mubr.msk.f32.vlgmr.msra.gmra.mrb[0].mxu1 %vm139_vm1, %v25_v5  ;;  %v28_v17 = vld [vmem:[%s1054_s1 + $0x58] sm:$0xff]  ;;  %v21_v20 = vld [vmem:[%s1054_s1 + $0x20] sm:$0xff]  ;;  %v43_v22 = vld [vmem:[%s1055_s2 + $0x48] sm:$0xff] }
   0x7   :  { %263 = vmatprep.mubr.f32.mxu0 %v575_v1  ;;  %311 = vmatprep.mubr.f32.mxu1 %v575_v1  ;;  %v41_v18 = vld [vmem:[%s1055_s2 + $0x38] sm:$0xff]  ;;  %v29_v21 = vld [vmem:[%s1054_s1 + $0x60] sm:$0xff]  ;;  %v22_v24 = vld [vmem:[%s1054_s1 + $0x28] sm:$0xff] }
   0x8   :  { %52 = vperm.xlu0 %573, %v34_v9   ;;  %67 = vperm.xlu1 %574, %v37_v10   ;;  %v42_v23 = vld [vmem:[%s1055_s2 + $0x40] sm:$0xff]  ;;  %v30_v25 = vld [vmem:[%s1054_s1 + $0x68] sm:$0xff]  ;;  %v45_v26 = vld [vmem:[%s1055_s2 + $0x58] sm:$0xff] }
   0x9   :  { %v44_v27 = vld [vmem:[%s1055_s2 + $0x50] sm:$0xff]  ;;  %v47_v30 = vld [vmem:[%s1055_s2 + $0x68] sm:$0xff]  ;;  %v46_v31 = vld [vmem:[%s1055_s2 + $0x60] sm:$0xff] }
   0xa   :  { %554 = vmatmul.mubr.msk.f32.gmra.mrb[2].mxu0 %vm139_vm1, %v18_v7  ;;  %562 = vmatmul.mubr.msk.f32.gmra.mrb[2].mxu1 %vm139_vm1, %v26_v8  ;;  %v23_v28 = vld [vmem:[%s1054_s1 + $0x30] sm:$0xff]  ;;  %v24_v32 = vld [vmem:[%s1054_s1 + $0x38] sm:$0xff]  ;;  %v418_v39 = vld [vmem:[%s1056_s3] sm:$0xff] }
   0xb   :  { %269 = vmatprep.mubr.f32.mxu0 %v575_v1  ;;  %317 = vmatprep.mubr.f32.mxu1 %v575_v1  ;;  %v31_v29 = vld [vmem:[%s1054_s1 + $0x70] sm:$0xff]  ;;  %v32_v33 = vld [vmem:[%s1054_s1 + $0x78] sm:$0xff]  ;;  %v434_v41 = vld [vmem:[%s1056_s3 + $0x80] sm:$0xff]  ;;  %v758_v46 = vmul.f32 0.9, %v418_v39 }
   0xc   :  { %57 = vperm.xlu0 %573, %v35_v11   ;;  %77 = vperm.xlu1 %574, %v39_v14   ;;  %v49_v34 = vld [vmem:[%s1055_s2 + $0x78] sm:$0xff]  ;;  %v48_v35 = vld [vmem:[%s1055_s2 + $0x70] sm:$0xff]  ;;  %v419_v42 = vld [vmem:[%s1056_s3 + $0x8] sm:$0xff]  ;;  %v766_v49 = vmul.f32 0.9, %v434_v41 }
   0xd   :  { %v435_v43 = vld [vmem:[%s1056_s3 + $0x88] sm:$0xff]  ;;  %v420_v44 = vld [vmem:[%s1056_s3 + $0x10] sm:$0xff]  ;;  %v421_v48 = vld [vmem:[%s1056_s3 + $0x18] sm:$0xff]  ;;  %v768_v50 = vmul.f32 0.9, %v419_v42 }
   0xe   :  { %555 = vmatmul.mubr.msk.f32.gmra.mrb[4].mxu0 %vm139_vm1, %v19_v12  ;;  %563 = vmatmul.mubr.msk.f32.gmra.mrb[4].mxu1 %vm139_vm1, %v27_v13  ;;  %v436_v47 = vld [vmem:[%s1056_s3 + $0x90] sm:$0xff]  ;;  %v437_v51 = vld [vmem:[%s1056_s3 + $0x98] sm:$0xff]  ;;  %v422_v52 = vld [vmem:[%s1056_s3 + $0x20] sm:$0xff]  ;;  %v776_v53 = vmul.f32 0.9, %v435_v43 }
   0xf   :  { %275 = vmatprep.mubr.f32.mxu0 %v575_v1  ;;  %323 = vmatprep.mubr.f32.mxu1 %v575_v1  ;;  %v778_v54 = vmul.f32 0.9, %v420_v44  ;;  %v438_v55 = vld [vmem:[%s1056_s3 + $0xa0] sm:$0xff]  ;;  %v423_v56 = vld [vmem:[%s1056_s3 + $0x28] sm:$0xff]  ;;  %v786_v57 = vmul.f32 0.9, %v436_v47 }
  0x10   :  { %72 = vperm.xlu0 %573, %v38_v15   ;;  %87 = vperm.xlu1 %574, %v41_v18   ;;  %v788_v58 = vmul.f32 0.9, %v421_v48  ;;  %v439_v59 = vld [vmem:[%s1056_s3 + $0xa8] sm:$0xff]  ;;  %v424_v60 = vld [vmem:[%s1056_s3 + $0x30] sm:$0xff]  ;;  %v798_v62 = vmul.f32 0.9, %v437_v51 }
  0x11   :  { %v800_v63 = vmul.f32 0.9, %v422_v52  ;;  %v440_v0 = vld [vmem:[%s1056_s3 + $0xb0] sm:$0xff]  ;;  %v808_v2 = vmul.f32 0.9, %v438_v55  ;;  %v441_v4 = vld [vmem:[%s1056_s3 + $0xb8] sm:$0xff] }
  0x12   :  { %556 = vmatmul.mubr.msk.f32.gmra.mrb[6].mxu0 %vm139_vm1, %v20_v16  ;;  %564 = vmatmul.mubr.msk.f32.gmra.mrb[6].mxu1 %vm139_vm1, %v28_v17  ;;  %v810_v3 = vmul.f32 0.9, %v423_v56  ;;  %v426_v5 = vld [vmem:[%s1056_s3 + $0x40] sm:$0xff]  ;;  %v820_v7 = vmul.f32 0.9, %v439_v59  ;;  %v427_v10 = vld [vmem:[%s1056_s3 + $0x48] sm:$0xff] }
  0x13   :  { %281 = vmatprep.mubr.f32.mxu0 %v575_v1  ;;  %329 = vmatprep.mubr.f32.mxu1 %v575_v1  ;;  %v822_v8 = vmul.f32 0.9, %v424_v60  ;;  %v442_v9 = vld [vmem:[%s1056_s3 + $0xc0] sm:$0xff]  ;;  %v830_v11 = vmul.f32 0.9, %v440_v0  ;;  %v443_v13 = vld [vmem:[%s1056_s3 + $0xc8] sm:$0xff] }
  0x14   :  { %82 = vperm.xlu0 %573, %v40_v19   ;;  %97 = vperm.xlu1 %574, %v43_v22   ;;  %v428_v14 = vld [vmem:[%s1056_s3 + $0x50] sm:$0xff]  ;;  %v840_v15 = vmul.f32 0.9, %v441_v4  ;;  %v842_v16 = vmul.f32 0.9, %v426_v5  ;;  %v429_v18 = vld [vmem:[%s1056_s3 + $0x58] sm:$0xff] }
  0x15   :  { %v444_v17 = vld [vmem:[%s1056_s3 + $0xd0] sm:$0xff]  ;;  %v850_v19 = vmul.f32 0.9, %v442_v9  ;;  %v430_v22 = vld [vmem:[%s1056_s3 + $0x60] sm:$0xff]  ;;  %v433_v43 = vld [vmem:[%s1056_s3 + $0x78] sm:$0xff] }
  0x16   :  { %557 = vmatmul.mubr.msk.f32.gmra.mrb[8].mxu0 %vm139_vm1, %v21_v20  ;;  %565 = vmatmul.mubr.msk.f32.gmra.mrb[8].mxu1 %vm139_vm1, %v29_v21  ;;  %v852_v20 = vmul.f32 0.9, %v427_v10  ;;  %v445_v21 = vld [vmem:[%s1056_s3 + $0xd8] sm:$0xff]  ;;  %v448_v42 = vld [vmem:[%s1056_s3 + $0xf0] sm:$0xff]  ;;  %v907_v10 = vmul.f32 0.9, %v433_v43 }
  0x17   :  { %287 = vmatprep.mubr.f32.mxu0 %v575_v1  ;;  %335 = vmatprep.mubr.f32.mxu1 %v575_v1  ;;  %v449_v55 = vld [vmem:[%s1056_s3 + $0xf8] sm:$0xff]  ;;  %v905_v9 = vmul.f32 0.9, %v448_v42 }
  0x18   :  { %92 = vperm.xlu0 %573, %v42_v23   ;;  %107 = vperm.xlu1 %574, %v45_v26   ;;  %v446_v26 = vld [vmem:[%s1056_s3 + $0xe0] sm:$0xff] }
  0x19   :  { %v886_v41 = vmul.f32 0.9, %v446_v26 }
  0x1a   :  { %558 = vmatmul.mubr.msk.f32.gmra.mrb[10].mxu0 %vm139_vm1, %v22_v24  ;;  %566 = vmatmul.mubr.msk.f32.gmra.mrb[10].mxu1 %vm139_vm1, %v30_v25  ;;  %v862_v24 = vmul.f32 0.9, %v443_v13  ;;  %v864_v25 = vmul.f32 0.9, %v428_v14 }
  0x1b   :  { %293 = vmatprep.mubr.f32.mxu0 %v575_v1  ;;  %341 = vmatprep.mubr.f32.mxu1 %v575_v1 }
  0x1c   :  { %102 = vperm.xlu0 %573, %v44_v27   ;;  %117 = vperm.xlu1 %574, %v47_v30   ;;  %v869_v27 = vmul.f32 0.9, %v444_v17 }
  0x1e   :  { %559 = vmatmul.mubr.msk.f32.gmra.mrb[12].mxu0 %vm139_vm1, %v23_v28  ;;  %567 = vmatmul.mubr.msk.f32.gmra.mrb[12].mxu1 %vm139_vm1, %v31_v29  ;;  %v871_v28 = vmul.f32 0.9, %v429_v18  ;;  %v431_v29 = vld [vmem:[%s1056_s3 + $0x68] sm:$0xff] }
  0x1f   :  { %299 = vmatprep.mubr.f32.mxu0 %v575_v1  ;;  %347 = vmatprep.mubr.f32.mxu1 %v575_v1  ;;  %v425_v1 = vld [vmem:[%s1056_s3 + $0x38] sm:$0xff]  ;;  %v895_v52 = vmul.f32 0.9, %v431_v29 }
  0x20   :  { %112 = vperm.xlu0 %573, %v46_v31   ;;  %127 = vperm.xlu1 %574, %v49_v34   ;;  %v832_v12 = vmul.f32 0.9, %v425_v1  ;;  %v876_v31 = vmul.f32 0.9, %v445_v21  ;;  %v432_v34 = vld [vmem:[%s1056_s3 + $0x70] sm:$0xff] }
  0x21   :  { %v903_v0 = vmul.f32 0.9, %v432_v34  ;;  %v909_v21 = vmul.f32 0.9, %v449_v55 }
  0x22   :  { %560 = vmatmul.mubr.msk.f32.gmra.mrb[14].mxu0 %vm139_vm1, %v24_v32  ;;  %568 = vmatmul.mubr.msk.f32.gmra.mrb[14].mxu1 %vm139_vm1, %v32_v33  ;;  %v878_v32 = vmul.f32 0.9, %v430_v22  ;;  %v447_v33 = vld [vmem:[%s1056_s3 + $0xe8] sm:$0xff] }
  0x23   :  { %v901_v60 = vmul.f32 0.9, %v447_v33 }
  0x24   :  { %122 = vperm.xlu0 %573, %v48_v35  }
  0x82   :  { %v735_v37 = vpop.permute.xlu1 %62 }
  0x87   :  { %v733_v36 = vpop.permute.xlu0 %52  ;;  %v742_v40 = vpop.permute.xlu1 %67 }
  0x8b   :  { %v737_v38 = vpop.permute.xlu0 %57  ;;  %v796_v61 = vpop.permute.xlu1 %77 }
  0x8f   :  { %v756_v45 = vpop.permute.xlu0 %72  ;;  %v860_v23 = vpop.permute.xlu1 %87 }
  0x93   :  { %v818_v6 = vpop.permute.xlu0 %82  ;;  %v98_v1 = vpop.permute.xlu1 %97 }
  0x97   :  { %v93_v30 = vpop.permute.xlu0 %92 }
  0x9b   :  { %v103_v43 = vpop.permute.xlu0 %102 }
  0xd9   :  { %v259_v35 = vpop.f32.mrb[0].mxu0  ;;  %v307_v39 = vpop.f32.mrb[0].mxu1 }
  0xda   :  { %v260_v44 = vadd.f32 %v259_v35, %v733_v36  ;;  %v308_v47 = vadd.f32 %v307_v39, %v93_v30  ;;  %v261_v48 = vpop.f32.mrb[1].mxu0  ;;  %v309_v51 = vpop.f32.mrb[1].mxu1 }
  0xdb   :  { %v262_v56 = vadd.f32 %v261_v48, %v733_v36  ;;  %v310_v59 = vadd.f32 %v309_v51, %v93_v30 }
  0xdc   :  { %v354_v4 = vmax.f32 %v260_v44, 0.0  ;;  %v370_v5 = vmax.f32 %v308_v47, 0.0 }
  0xdd   :  { %v355_v13 = vmax.f32 %v262_v56, 0.0  ;;  %v371_v14 = vmax.f32 %v310_v59, 0.0  ;;  %v265_v17 = vpop.f32.mrb[2].mxu0  ;;  %v313_v18 = vpop.f32.mrb[2].mxu1 }
  0xde   :  { %v386_v22 = vmul.f32 0.1, %v354_v4  ;;  %v402_v36 = vmul.f32 0.1, %v370_v5  ;;  %v266_v26 = vadd.f32 %v265_v17, %v737_v38  ;;  %v314_v29 = vadd.f32 %v313_v18, %v98_v1  ;;  %v267_v30 = vpop.f32.mrb[3].mxu0  ;;  %v315_v33 = vpop.f32.mrb[3].mxu1 }
  0xdf   :  { %v387_v34 = vmul.f32 0.1, %v355_v13  ;;  %v403_v35 = vmul.f32 0.1, %v371_v14  ;;  %v268_v39 = vadd.f32 %v267_v30, %v737_v38  ;;  %v316_v42 = vadd.f32 %v315_v33, %v98_v1 }
  0xe0   :  { %v482_v44 = vadd.f32 %v758_v46, %v386_v22  ;;  %v498_v47 = vadd.f32 %v766_v49, %v402_v36  ;;  %v356_v48 = vmax.f32 %v266_v26, 0.0  ;;  %v372_v51 = vmax.f32 %v314_v29, 0.0  ;;  %v108_v36 = vpop.permute.xlu1 %107 }
  0xe1   :  { %v483_v55 = vadd.f32 %v768_v50, %v387_v34  ;;  %v499_v56 = vadd.f32 %v776_v53, %v403_v35  ;;  %v357_v59 = vmax.f32 %v268_v39, 0.0  ;;  %v373_v4 = vmax.f32 %v316_v42, 0.0  ;;  %v271_v5 = vpop.f32.mrb[4].mxu0  ;;  %v319_v17 = vpop.f32.mrb[4].mxu1 }
  0xe2   :  { %514 = vst [vmem:[%s1057_s4] sm:$0xff] %v482_v44  ;;  %530 = vst [vmem:[%s1057_s4 + $0x80] sm:$0xff] %v498_v47  ;;  %v388_v38 = vmul.f32 0.1, %v356_v48  ;;  %v404_v46 = vmul.f32 0.1, %v372_v51  ;;  %v272_v49 = vadd.f32 %v271_v5, %v735_v37  ;;  %v320_v1 = vadd.f32 %v319_v17, %v103_v43  ;;  %v273_v50 = vpop.f32.mrb[5].mxu0 }
  0xe3   :  { %v321_v13 = vpop.f32.mrb[5].mxu1  ;;  %515 = vst [vmem:[%s1057_s4 + $0x8] sm:$0xff] %v483_v55  ;;  %531 = vst [vmem:[%s1057_s4 + $0x88] sm:$0xff] %v499_v56  ;;  %v389_v53 = vmul.f32 0.1, %v357_v59  ;;  %v274_v18 = vadd.f32 %v273_v50, %v735_v37  ;;  %v113_v59 = vpop.permute.xlu0 %112 }
  0xe4   :  { %v405_v14 = vmul.f32 0.1, %v373_v4  ;;  %v322_v22 = vadd.f32 %v321_v13, %v103_v43  ;;  %v484_v26 = vadd.f32 %v778_v54, %v388_v38  ;;  %v500_v29 = vadd.f32 %v786_v57, %v404_v46 }
  0xe5   :  { %v358_v30 = vmax.f32 %v272_v49, 0.0  ;;  %v374_v33 = vmax.f32 %v320_v1, 0.0  ;;  %v485_v34 = vadd.f32 %v788_v58, %v389_v53  ;;  %v359_v39 = vmax.f32 %v274_v18, 0.0  ;;  %v277_v44 = vpop.f32.mrb[6].mxu0  ;;  %v325_v47 = vpop.f32.mrb[6].mxu1 }
  0xe6   :  { %v501_v35 = vadd.f32 %v798_v62, %v405_v14  ;;  %v375_v42 = vmax.f32 %v322_v22, 0.0  ;;  %516 = vst [vmem:[%s1057_s4 + $0x10] sm:$0xff] %v484_v26  ;;  %532 = vst [vmem:[%s1057_s4 + $0x90] sm:$0xff] %v500_v29  ;;  %v278_v57 = vadd.f32 %v277_v44, %v742_v40  ;;  %v326_v43 = vadd.f32 %v325_v47, %v108_v36  ;;  %v279_v58 = vpop.f32.mrb[7].mxu0  ;;  %v327_v48 = vpop.f32.mrb[7].mxu1 }
  0xe7   :  { %v390_v37 = vmul.f32 0.1, %v358_v30  ;;  %v406_v54 = vmul.f32 0.1, %v374_v33  ;;  %517 = vst [vmem:[%s1057_s4 + $0x18] sm:$0xff] %v485_v34  ;;  %v280_v55 = vadd.f32 %v279_v58, %v742_v40  ;;  %v328_v56 = vadd.f32 %v327_v48, %v108_v36  ;;  %v118_v29 = vpop.permute.xlu1 %117 }
  0xe8   :  { %533 = vst [vmem:[%s1057_s4 + $0x98] sm:$0xff] %v501_v35  ;;  %v391_v62 = vmul.f32 0.1, %v359_v39  ;;  %v407_v51 = vmul.f32 0.1, %v375_v42  ;;  %v360_v17 = vmax.f32 %v278_v57, 0.0 }
  0xe9   :  { %v486_v4 = vadd.f32 %v800_v63, %v390_v37  ;;  %v502_v5 = vadd.f32 %v808_v2, %v406_v54  ;;  %v376_v38 = vmax.f32 %v326_v43, 0.0  ;;  %v361_v1 = vmax.f32 %v280_v55, 0.0  ;;  %v283_v13 = vpop.f32.mrb[8].mxu0  ;;  %v331_v53 = vpop.f32.mrb[8].mxu1 }
  0xea   :  { %v487_v46 = vadd.f32 %v810_v3, %v391_v62  ;;  %v503_v49 = vadd.f32 %v820_v7, %v407_v51  ;;  %v377_v50 = vmax.f32 %v328_v56, 0.0  ;;  %v392_v40 = vmul.f32 0.1, %v360_v17  ;;  %v285_v3 = vpop.f32.mrb[9].mxu0  ;;  %v333_v18 = vpop.f32.mrb[9].mxu1 }
  0xeb   :  { %518 = vst [vmem:[%s1057_s4 + $0x20] sm:$0xff] %v486_v4  ;;  %534 = vst [vmem:[%s1057_s4 + $0xa0] sm:$0xff] %v502_v5  ;;  %v408_v63 = vmul.f32 0.1, %v376_v38  ;;  %v284_v2 = vadd.f32 %v283_v13, %v756_v45  ;;  %v332_v14 = vadd.f32 %v331_v53, %v113_v59  ;;  %v393_v7 = vmul.f32 0.1, %v361_v1  ;;  %v123_v51 = vpop.permute.xlu0 %122 }
  0xec   :  { %519 = vst [vmem:[%s1057_s4 + $0x28] sm:$0xff] %v487_v46  ;;  %535 = vst [vmem:[%s1057_s4 + $0xa8] sm:$0xff] %v503_v49  ;;  %v409_v22 = vmul.f32 0.1, %v377_v50  ;;  %v286_v36 = vadd.f32 %v285_v3, %v756_v45  ;;  %v334_v26 = vadd.f32 %v333_v18, %v113_v59  ;;  %v488_v30 = vadd.f32 %v822_v8, %v392_v40 }
  0xed   :  { %v504_v33 = vadd.f32 %v830_v11, %v408_v63  ;;  %v362_v34 = vmax.f32 %v284_v2, 0.0  ;;  %v378_v35 = vmax.f32 %v332_v14, 0.0  ;;  %v489_v39 = vadd.f32 %v832_v12, %v393_v7  ;;  %v289_v37 = vpop.f32.mrb[10].mxu0  ;;  %v337_v54 = vpop.f32.mrb[10].mxu1 }
  0xee   :  { %v505_v42 = vadd.f32 %v840_v15, %v409_v22  ;;  %v363_v44 = vmax.f32 %v286_v36, 0.0  ;;  %v379_v47 = vmax.f32 %v334_v26, 0.0  ;;  %520 = vst [vmem:[%s1057_s4 + $0x30] sm:$0xff] %v488_v30  ;;  %v290_v11 = vadd.f32 %v289_v37, %v796_v61  ;;  %v291_v12 = vpop.f32.mrb[11].mxu0  ;;  %v339_v43 = vpop.f32.mrb[11].mxu1 }
  0xef   :  { %536 = vst [vmem:[%s1057_s4 + $0xb0] sm:$0xff] %v504_v33  ;;  %v394_v45 = vmul.f32 0.1, %v362_v34  ;;  %v410_v8 = vmul.f32 0.1, %v378_v35  ;;  %v338_v57 = vadd.f32 %v337_v54, %v118_v29  ;;  %521 = vst [vmem:[%s1057_s4 + $0x38] sm:$0xff] %v489_v39  ;;  %v292_v48 = vadd.f32 %v291_v12, %v796_v61  ;;  %v128_v2 = vpop.permute.xlu1 %127 }
  0xf0   :  { %537 = vst [vmem:[%s1057_s4 + $0xb8] sm:$0xff] %v505_v42  ;;  %v395_v15 = vmul.f32 0.1, %v363_v44  ;;  %v411_v58 = vmul.f32 0.1, %v379_v47  ;;  %v340_v62 = vadd.f32 %v339_v43, %v118_v29  ;;  %v364_v59 = vmax.f32 %v290_v11, 0.0 }
  0xf1   :  { %v490_v55 = vadd.f32 %v842_v16, %v394_v45  ;;  %v506_v56 = vadd.f32 %v850_v19, %v410_v8  ;;  %v380_v4 = vmax.f32 %v338_v57, 0.0  ;;  %v365_v38 = vmax.f32 %v292_v48, 0.0  ;;  %v295_v49 = vpop.f32.mrb[12].mxu0  ;;  %v343_v1 = vpop.f32.mrb[12].mxu1 }
  0xf2   :  { %v491_v5 = vadd.f32 %v852_v20, %v395_v15  ;;  %v507_v17 = vadd.f32 %v862_v24, %v411_v58  ;;  %v381_v46 = vmax.f32 %v340_v62, 0.0  ;;  %v396_v61 = vmul.f32 0.1, %v364_v59  ;;  %v297_v20 = vpop.f32.mrb[13].mxu0  ;;  %v345_v13 = vpop.f32.mrb[13].mxu1 }
  0xf3   :  { %522 = vst [vmem:[%s1057_s4 + $0x40] sm:$0xff] %v490_v55  ;;  %538 = vst [vmem:[%s1057_s4 + $0xc0] sm:$0xff] %v506_v56  ;;  %v412_v16 = vmul.f32 0.1, %v380_v4  ;;  %v296_v19 = vadd.f32 %v295_v49, %v818_v6  ;;  %v344_v50 = vadd.f32 %v343_v1, %v123_v51  ;;  %v397_v24 = vmul.f32 0.1, %v365_v38 }
  0xf4   :  { %523 = vst [vmem:[%s1057_s4 + $0x48] sm:$0xff] %v491_v5  ;;  %539 = vst [vmem:[%s1057_s4 + $0xc8] sm:$0xff] %v507_v17  ;;  %v413_v53 = vmul.f32 0.1, %v381_v46  ;;  %v298_v40 = vadd.f32 %v297_v20, %v818_v6  ;;  %v346_v63 = vadd.f32 %v345_v13, %v123_v51  ;;  %v492_v14 = vadd.f32 %v864_v25, %v396_v61 }
  0xf5   :  { %v508_v3 = vadd.f32 %v869_v27, %v412_v16  ;;  %v366_v18 = vmax.f32 %v296_v19, 0.0  ;;  %v382_v7 = vmax.f32 %v344_v50, 0.0  ;;  %v493_v22 = vadd.f32 %v871_v28, %v397_v24  ;;  %v301_v30 = vpop.f32.mrb[14].mxu0  ;;  %v349_v33 = vpop.f32.mrb[14].mxu1 }
  0xf6   :  { %v509_v36 = vadd.f32 %v876_v31, %v413_v53  ;;  %v367_v26 = vmax.f32 %v298_v40, 0.0  ;;  %v383_v29 = vmax.f32 %v346_v63, 0.0  ;;  %524 = vst [vmem:[%s1057_s4 + $0x50] sm:$0xff] %v492_v14  ;;  %v302_v27 = vadd.f32 %v301_v30, %v860_v23  ;;  %v303_v28 = vpop.f32.mrb[15].mxu0  ;;  %v351_v35 = vpop.f32.mrb[15].mxu1 }
  0xf7   :  { %540 = vst [vmem:[%s1057_s4 + $0xd0] sm:$0xff] %v508_v3  ;;  %v398_v6 = vmul.f32 0.1, %v366_v18  ;;  %v414_v25 = vmul.f32 0.1, %v382_v7  ;;  %v350_v34 = vadd.f32 %v349_v33, %v128_v2  ;;  %525 = vst [vmem:[%s1057_s4 + $0x58] sm:$0xff] %v493_v22  ;;  %v304_v42 = vadd.f32 %v303_v28, %v860_v23 }
  0xf8   :  { %541 = vst [vmem:[%s1057_s4 + $0xd8] sm:$0xff] %v509_v36  ;;  %v399_v31 = vmul.f32 0.1, %v367_v26  ;;  %v415_v39 = vmul.f32 0.1, %v383_v29  ;;  %v352_v44 = vadd.f32 %v351_v35, %v128_v2  ;;  %v368_v54 = vmax.f32 %v302_v27, 0.0 }
  0xf9   :  { %v494_v47 = vadd.f32 %v878_v32, %v398_v6  ;;  %v510_v37 = vadd.f32 %v886_v41, %v414_v25  ;;  %v384_v45 = vmax.f32 %v350_v34, 0.0  ;;  %v369_v57 = vmax.f32 %v304_v42, 0.0 }
  0xfa   :  { %v495_v8 = vadd.f32 %v895_v52, %v399_v31  ;;  %v511_v11 = vadd.f32 %v901_v60, %v415_v39  ;;  %v385_v12 = vmax.f32 %v352_v44, 0.0  ;;  %v400_v23 = vmul.f32 0.1, %v368_v54 }
  0xfb   :  { %526 = vst [vmem:[%s1057_s4 + $0x60] sm:$0xff] %v494_v47  ;;  %542 = vst [vmem:[%s1057_s4 + $0xe0] sm:$0xff] %v510_v37  ;;  %v416_v32 = vmul.f32 0.1, %v384_v45  ;;  %v401_v41 = vmul.f32 0.1, %v369_v57 }
  0xfc   :  { %527 = vst [vmem:[%s1057_s4 + $0x68] sm:$0xff] %v495_v8  ;;  %543 = vst [vmem:[%s1057_s4 + $0xe8] sm:$0xff] %v511_v11  ;;  %v417_v52 = vmul.f32 0.1, %v385_v12  ;;  %v496_v60 = vadd.f32 %v903_v0, %v400_v23 }
  0xfd   :  { %v512_v43 = vadd.f32 %v905_v9, %v416_v32  ;;  %v497_v15 = vadd.f32 %v907_v10, %v401_v41 }
  0xfe   :  { %v513_v58 = vadd.f32 %v909_v21, %v417_v52  ;;  %528 = vst [vmem:[%s1057_s4 + $0x70] sm:$0xff] %v496_v60 }
  0xff   :  { %544 = vst [vmem:[%s1057_s4 + $0xf0] sm:$0xff] %v512_v43  ;;  %529 = vst [vmem:[%s1057_s4 + $0x78] sm:$0xff] %v497_v15 }
 0x100   :  { %545 = vst [vmem:[%s1057_s4 + $0xf8] sm:$0xff] %v513_v58 }

</bundles_post_ra>
